<compile_context>
chip_gen: v5e
topology: v5e:2x2
jax: 0.10.0
libtpu: 0.0.40
codegen_flags: <defaults>
</compile_context>

<pallas_src>
import jax
import jax.numpy as jnp
from jax.experimental import pallas as pl
from jax.experimental.pallas import tpu as pltpu

# Model dimensions (synthetic config).
CP = 128          # padded channel width (lane-dense)
H = W = 16        # input spatial size
C_IN = 4          # input channels
C1 = 8            # conv1 output channels
C2 = 16           # conv2 output channels
N_CLASSES = 10


# ----------------------------------------------------------------------------
# Fused kernel (one grid step == one batch element)
# ----------------------------------------------------------------------------

def _conv3x3_relu(src_ref, w_ref, b_ref, h_out, w_out):
    """3x3 'same' conv as 9 shifted (M, CP) @ (CP, CP) MXU matmuls + bias + ReLU.

    src_ref: (h_out+2, w_out+2, CP) zero-padded activation in VMEM (HWC).
    w_ref:   (9, CP, CP) per-tap (C_in, C_out) weights (zero padded).
    b_ref:   (1, CP) bias (zero padded).
    Returns an (h_out*w_out, CP) f32 value.
    """
    m = h_out * w_out
    acc = jnp.zeros((m, CP), jnp.float32)
    for di in range(3):
        for dj in range(3):
            tap = src_ref[pl.ds(di, h_out), pl.ds(dj, w_out), :]
            acc = acc + jnp.dot(tap.reshape(m, CP), w_ref[di * 3 + dj],
                                preferred_element_type=jnp.float32)
    return jnp.maximum(acc + b_ref[...], 0.0)


def _maxpool2x2(src_ref, h, w):
    """2x2 stride-2 max pool of an (h, w, CP) VMEM ref -> (h//2, w//2, CP) value."""
    # Pool along W (sublane dim) with stride-2 loads.
    wmax = jnp.maximum(src_ref[:, pl.ds(0, w // 2, 2), :],
                       src_ref[:, pl.ds(1, w // 2, 2), :])        # (h, w//2, CP)
    # Pool along H (leading dim): trivial leading-dim split, then elementwise max.
    wmax = wmax.reshape(h // 2, 2, w // 2, CP)
    return jnp.maximum(wmax[:, 0], wmax[:, 1])                    # (h//2, w//2, CP)


def fused_cnn_kernel(x_ref, iw_ref, w1_ref, b1_ref, w2_ref, b2_ref,
                     wf_ref, bf_ref, out_ref,
                     xw_ref, c1_ref, p1p_ref, c2_ref, p2_ref):
    # ---- importance weighting (folded into conv1 input staging; VPU filler) ----
    xw_ref[...] = x_ref[0] * iw_ref[...]                          # (H+2, W+2, CP)

    # ---- conv1 (4 -> 8, 3x3, pad 1) + ReLU ----
    a1 = _conv3x3_relu(xw_ref, w1_ref, b1_ref, H, W)              # (H*W, CP)
    c1_ref[...] = a1.reshape(H, W, CP)

    # ---- maxpool 2x2 ----
    p1 = _maxpool2x2(c1_ref, H, W)                                # (H/2, W/2, CP)

    # ---- zero-pad pooled activation for conv2 ----
    p1p_ref[...] = jnp.zeros_like(p1p_ref)
    p1p_ref[pl.ds(1, H // 2), pl.ds(1, W // 2), :] = p1

    # ---- conv2 (8 -> 16, 3x3, pad 1) + ReLU ----
    a2 = _conv3x3_relu(p1p_ref, w2_ref, b2_ref, H // 2, W // 2)   # (H/2*W/2, CP)
    c2_ref[...] = a2.reshape(H // 2, W // 2, CP)

    # ---- maxpool 2x2 ----
    p2_ref[...] = _maxpool2x2(c2_ref, H // 2, W // 2)             # (H/4, W/4, CP)

    # ---- linear (PyTorch NCHW flatten is folded into the weight layout) ----
    acc = jnp.zeros((1, CP), jnp.float32)
    for hh in range(H // 4):
        for ww in range(W // 4):
            row = p2_ref[pl.ds(hh, 1), pl.ds(ww, 1), :].reshape(1, CP)
            acc = acc + jnp.dot(row, wf_ref[hh * (W // 4) + ww],
                                preferred_element_type=jnp.float32)
    out_ref[...] = (acc + bf_ref[...]).reshape(1, 1, CP)


# ----------------------------------------------------------------------------
# Wrapper: parameter repacking (lane-dense, per-tap) + single pallas_call
# ----------------------------------------------------------------------------

def _pack_conv_weights(w_oihw, c_in, c_out):
    # (C_out, C_in, 3, 3) -> (9, CP, CP) with [di*3+dj, ci, co] = w[co, ci, di, dj]
    taps = jnp.transpose(w_oihw, (2, 3, 1, 0)).reshape(9, c_in, c_out)
    return jnp.zeros((9, CP, CP), jnp.float32).at[:, :c_in, :c_out].set(taps)


def _pack_bias(b, c_out):
    return jnp.zeros((1, CP), jnp.float32).at[0, :c_out].set(b)


def _pack_fc_weights(fc_w, fc_b):
    # fc_w: (N_CLASSES, C2*(H//4)*(W//4)) over the PyTorch NCHW flatten order.
    hp, wp = H // 4, W // 4
    fc4 = fc_w.reshape(N_CLASSES, C2, hp, wp)                      # (o, c, h, w)
    w_hw_c_o = jnp.transpose(fc4, (2, 3, 1, 0)).reshape(hp * wp, C2, N_CLASSES)
    wf = jnp.zeros((hp * wp, CP, CP), jnp.float32).at[:, :C2, :N_CLASSES].set(w_hw_c_o)
    bf = jnp.zeros((1, CP), jnp.float32).at[0, :N_CLASSES].set(fc_b)
    return wf, bf


@jax.jit
def forward(x_nchw, params):
    n = x_nchw.shape[0]

    # Input & importance weight as zero-padded, lane-dense NHWC slabs.
    x_nhwc = jnp.transpose(x_nchw, (0, 2, 3, 1))
    x_pad = jnp.zeros((n, H + 2, W + 2, CP), jnp.float32)
    x_pad = x_pad.at[:, 1:H + 1, 1:W + 1, :C_IN].set(x_nhwc)
    iw_hwc = jnp.transpose(params["importance_weight"], (1, 2, 0))
    iw_pad = jnp.zeros((H + 2, W + 2, CP), jnp.float32)
    iw_pad = iw_pad.at[1:H + 1, 1:W + 1, :C_IN].set(iw_hwc)

    w1 = _pack_conv_weights(params["conv1_w"], C_IN, C1)
    b1 = _pack_bias(params["conv1_b"], C1)
    w2 = _pack_conv_weights(params["conv2_w"], C1, C2)
    b2 = _pack_bias(params["conv2_b"], C2)
    wf, bf = _pack_fc_weights(params["fc_w"], params["fc_b"])

    out_pad = pl.pallas_call(
        fused_cnn_kernel,
        out_shape=jax.ShapeDtypeStruct((n, 1, CP), jnp.float32),
        grid_spec=pltpu.PrefetchScalarGridSpec(
            num_scalar_prefetch=0,
            grid=(n,),
            in_specs=[
                pl.BlockSpec((1, H + 2, W + 2, CP), lambda b: (b, 0, 0, 0)),
                pl.BlockSpec((H + 2, W + 2, CP), lambda b: (0, 0, 0)),
                pl.BlockSpec((9, CP, CP), lambda b: (0, 0, 0)),
                pl.BlockSpec((1, CP), lambda b: (0, 0)),
                pl.BlockSpec((9, CP, CP), lambda b: (0, 0, 0)),
                pl.BlockSpec((1, CP), lambda b: (0, 0)),
                pl.BlockSpec(((H // 4) * (W // 4), CP, CP), lambda b: (0, 0, 0)),
                pl.BlockSpec((1, CP), lambda b: (0, 0)),
            ],
            out_specs=pl.BlockSpec((1, 1, CP), lambda b: (b, 0, 0)),
            scratch_shapes=[
                pltpu.VMEM((H + 2, W + 2, CP), jnp.float32),            # weighted padded input
                pltpu.VMEM((H, W, CP), jnp.float32),                    # conv1 output
                pltpu.VMEM((H // 2 + 2, W // 2 + 2, CP), jnp.float32),  # padded pool1
                pltpu.VMEM((H // 2, W // 2, CP), jnp.float32),          # conv2 output
                pltpu.VMEM((H // 4, W // 4, CP), jnp.float32),          # pool2
            ],
        ),
        compiler_params=pltpu.CompilerParams(
            dimension_semantics=("parallel",),
            vmem_limit_bytes=32 * 1024 * 1024,
        ),
    )(x_pad, iw_pad, w1, b1, w2, b2, wf, bf)

    return out_pad.reshape(n, CP)[:, :N_CLASSES]


# ----------------------------------------------------------------------------
# Parameters + pure-JAX reference (correctness check)
# ----------------------------------------------------------------------------

def init_params(key, in_shape=(C_IN, H, W), n_classes=N_CLASSES):
    c, h, w = in_shape
    k1, k2, k3 = jax.random.split(key, 3)
    return {
        # torch.ones(*cfg['importance_weight_layer'])
        "importance_weight": jnp.ones((c, h, w), jnp.float32),
        "conv1_w": 0.1 * jax.random.normal(k1, (C1, c, 3, 3), jnp.float32),
        "conv1_b": jnp.zeros((C1,), jnp.float32),
        "conv2_w": 0.1 * jax.random.normal(k2, (C2, C1, 3, 3), jnp.float32),
        "conv2_b": jnp.zeros((C2,), jnp.float32),
        "fc_w": 0.05 * jax.random.normal(
            k3, (n_classes, C2 * (h // 4) * (w // 4)), jnp.float32),
        "fc_b": jnp.zeros((n_classes,), jnp.float32),
    }


def forward_ref(x, p):
    x = x * p["importance_weight"][None]

    def conv(x, w, b):
        y = jax.lax.conv_general_dilated(
            x, w, window_strides=(1, 1), padding=((1, 1), (1, 1)),
            dimension_numbers=("NCHW", "OIHW", "NCHW"))
        return jnp.maximum(y + b[None, :, None, None], 0.0)

    def pool(x):
        return jax.lax.reduce_window(
            x, -jnp.inf, jax.lax.max, (1, 1, 2, 2), (1, 1, 2, 2), "VALID")

    x = pool(conv(x, p["conv1_w"], p["conv1_b"]))
    x = pool(conv(x, p["conv2_w"], p["conv2_b"]))
    x = x.reshape(x.shape[0], -1)
    return x @ p["fc_w"].T + p["fc_b"][None]


# ----------------------------------------------------------------------------

if __name__ == "__main__":
    key = jax.random.PRNGKey(0)
    kx, kp, kw = jax.random.split(key, 3)
    x = jax.random.normal(kx, (2, C_IN, H, W), jnp.float32)   # NCHW input
    params = init_params(kp)
    # The module initializes the importance weight to ones; use a non-trivial
    # value here so the elementwise-scaling path is actually exercised.
    params["importance_weight"] = (
        1.0 + 0.1 * jax.random.normal(kw, (C_IN, H, W), jnp.float32))

    out = jax.block_until_ready(forward(x, params))
    ref = forward_ref(x, params)
    assert out.shape == (2, N_CLASSES), out.shape
    err = float(jnp.max(jnp.abs(out - ref)))
    assert jnp.allclose(out, ref, rtol=1e-3, atol=1e-3), err

    print("KERNEL_OK")
</pallas_src>

<mosaic_0001>
module attributes {stable_mosaic.version = 11 : i64} {
  func.func @fused_cnn_kernel(%arg0: i32, %arg1: memref<1x18x18x128xf32, #tpu.memory_space<vmem>>, %arg2: memref<18x18x128xf32, #tpu.memory_space<vmem>>, %arg3: memref<9x128x128xf32, #tpu.memory_space<vmem>>, %arg4: memref<1x128xf32, #tpu.memory_space<vmem>>, %arg5: memref<9x128x128xf32, #tpu.memory_space<vmem>>, %arg6: memref<1x128xf32, #tpu.memory_space<vmem>>, %arg7: memref<16x128x128xf32, #tpu.memory_space<vmem>>, %arg8: memref<1x128xf32, #tpu.memory_space<vmem>>, %arg9: memref<1x1x128xf32, #tpu.memory_space<vmem>>, %arg10: memref<18x18x128xf32, #tpu.memory_space<vmem>>, %arg11: memref<16x16x128xf32, #tpu.memory_space<vmem>>, %arg12: memref<10x10x128xf32, #tpu.memory_space<vmem>>, %arg13: memref<8x8x128xf32, #tpu.memory_space<vmem>>, %arg14: memref<4x4x128xf32, #tpu.memory_space<vmem>>) attributes {dimension_semantics = [#tpu.dimension_semantics<parallel>], iteration_bounds = array<i64: 2>, scalar_prefetch = 0 : i64, scratch_operands = 5 : i64, tpu.core_type = #tpu.core_type<tc>, window_params = [{transform_indices = @transform_0, window_bounds = array<i64: 1, 18, 18, 128>}, {pipeline_mode = #tpu.pipeline_mode<synchronous>, transform_indices = @transform_1, window_bounds = array<i64: 18, 18, 128>}, {pipeline_mode = #tpu.pipeline_mode<synchronous>, transform_indices = @transform_2, window_bounds = array<i64: 9, 128, 128>}, {pipeline_mode = #tpu.pipeline_mode<synchronous>, transform_indices = @transform_3, window_bounds = array<i64: 1, 128>}, {pipeline_mode = #tpu.pipeline_mode<synchronous>, transform_indices = @transform_4, window_bounds = array<i64: 9, 128, 128>}, {pipeline_mode = #tpu.pipeline_mode<synchronous>, transform_indices = @transform_5, window_bounds = array<i64: 1, 128>}, {pipeline_mode = #tpu.pipeline_mode<synchronous>, transform_indices = @transform_6, window_bounds = array<i64: 16, 128, 128>}, {pipeline_mode = #tpu.pipeline_mode<synchronous>, transform_indices = @transform_7, window_bounds = array<i64: 1, 128>}, {transform_indices = @transform_8, window_bounds = array<i64: 1, 1, 128>}]} {
    %c0 = arith.constant 0 : index
    %c0_0 = arith.constant 0 : index
    %c0_1 = arith.constant 0 : index
    %c0_2 = arith.constant 0 : index
    %0 = vector.load %arg1[%c0, %c0_0, %c0_1, %c0_2] : memref<1x18x18x128xf32, #tpu.memory_space<vmem>>, vector<1x18x18x128xf32>
    %1 = vector.shape_cast %0 : vector<1x18x18x128xf32> to vector<18x18x128xf32>
    %c0_3 = arith.constant 0 : index
    %c0_4 = arith.constant 0 : index
    %c0_5 = arith.constant 0 : index
    %2 = vector.load %arg2[%c0_3, %c0_4, %c0_5] : memref<18x18x128xf32, #tpu.memory_space<vmem>>, vector<18x18x128xf32>
    %3 = arith.mulf %1, %2 : vector<18x18x128xf32>
    %c0_6 = arith.constant 0 : index
    %c0_7 = arith.constant 0 : index
    %c0_8 = arith.constant 0 : index
    %4 = vector.load %arg10[%c0_6, %c0_7, %c0_8] : memref<18x18x128xf32, #tpu.memory_space<vmem>>, vector<18x18x128xf32>
    tpu.vector_store %arg10[%c0_6, %c0_7, %c0_8], %3 {strides = array<i32>} : memref<18x18x128xf32, #tpu.memory_space<vmem>>, vector<18x18x128xf32>,
    %cst = arith.constant 0.000000e+00 : f32
    %5 = vector.broadcast %cst : f32 to vector<256x128xf32>
    %c0_9 = arith.constant 0 : index
    %c0_10 = arith.constant 0 : index
    %c0_11 = arith.constant 0 : index
    %6 = vector.load %arg10[%c0_9, %c0_10, %c0_11] : memref<18x18x128xf32, #tpu.memory_space<vmem>>, vector<16x16x128xf32>
    %7 = vector.shape_cast %6 : vector<16x16x128xf32> to vector<256x128xf32>
    %c0_12 = arith.constant 0 : index
    %c0_13 = arith.constant 0 : index
    %c0_14 = arith.constant 0 : index
    %8 = vector.load %arg3[%c0_12, %c0_13, %c0_14] : memref<9x128x128xf32, #tpu.memory_space<vmem>>, vector<1x128x128xf32>
    %9 = vector.shape_cast %8 : vector<1x128x128xf32> to vector<128x128xf32>
    %cst_15 = arith.constant dense<0.000000e+00> : vector<256x128xf32>
    %10 = tpu.matmul %7, %9, %cst_15 {dimension_numbers = #tpu.dot_dimension_numbers<[1], [0], [0], [1], [0, 0, 1, 1], [], []>} : vector<256x128xf32>, vector<128x128xf32>, vector<256x128xf32> -> vector<256x128xf32>
    %11 = arith.addf %5, %10 : vector<256x128xf32>
    %c0_16 = arith.constant 0 : index
    %c1 = arith.constant 1 : index
    %c0_17 = arith.constant 0 : index
    %12 = vector.load %arg10[%c0_16, %c1, %c0_17] : memref<18x18x128xf32, #tpu.memory_space<vmem>>, vector<16x16x128xf32>
    %13 = vector.shape_cast %12 : vector<16x16x128xf32> to vector<256x128xf32>
    %c1_18 = arith.constant 1 : index
    %c0_19 = arith.constant 0 : index
    %c0_20 = arith.constant 0 : index
    %14 = vector.load %arg3[%c1_18, %c0_19, %c0_20] : memref<9x128x128xf32, #tpu.memory_space<vmem>>, vector<1x128x128xf32>
    %15 = vector.shape_cast %14 : vector<1x128x128xf32> to vector<128x128xf32>
    %cst_21 = arith.constant dense<0.000000e+00> : vector<256x128xf32>
    %16 = tpu.matmul %13, %15, %cst_21 {dimension_numbers = #tpu.dot_dimension_numbers<[1], [0], [0], [1], [0, 0, 1, 1], [], []>} : vector<256x128xf32>, vector<128x128xf32>, vector<256x128xf32> -> vector<256x128xf32>
    %17 = arith.addf %11, %16 : vector<256x128xf32>
    %c0_22 = arith.constant 0 : index
    %c2 = arith.constant 2 : index
    %c0_23 = arith.constant 0 : index
    %18 = vector.load %arg10[%c0_22, %c2, %c0_23] : memref<18x18x128xf32, #tpu.memory_space<vmem>>, vector<16x16x128xf32>
    %19 = vector.shape_cast %18 : vector<16x16x128xf32> to vector<256x128xf32>
    %c2_24 = arith.constant 2 : index
    %c0_25 = arith.constant 0 : index
    %c0_26 = arith.constant 0 : index
    %20 = vector.load %arg3[%c2_24, %c0_25, %c0_26] : memref<9x128x128xf32, #tpu.memory_space<vmem>>, vector<1x128x128xf32>
    %21 = vector.shape_cast %20 : vector<1x128x128xf32> to vector<128x128xf32>
    %cst_27 = arith.constant dense<0.000000e+00> : vector<256x128xf32>
    %22 = tpu.matmul %19, %21, %cst_27 {dimension_numbers = #tpu.dot_dimension_numbers<[1], [0], [0], [1], [0, 0, 1, 1], [], []>} : vector<256x128xf32>, vector<128x128xf32>, vector<256x128xf32> -> vector<256x128xf32>
    %23 = arith.addf %17, %22 : vector<256x128xf32>
    %c1_28 = arith.constant 1 : index
    %c0_29 = arith.constant 0 : index
    %c0_30 = arith.constant 0 : index
    %24 = vector.load %arg10[%c1_28, %c0_29, %c0_30] : memref<18x18x128xf32, #tpu.memory_space<vmem>>, vector<16x16x128xf32>
    %25 = vector.shape_cast %24 : vector<16x16x128xf32> to vector<256x128xf32>
    %c3 = arith.constant 3 : index
    %c0_31 = arith.constant 0 : index
    %c0_32 = arith.constant 0 : index
    %26 = vector.load %arg3[%c3, %c0_31, %c0_32] : memref<9x128x128xf32, #tpu.memory_space<vmem>>, vector<1x128x128xf32>
    %27 = vector.shape_cast %26 : vector<1x128x128xf32> to vector<128x128xf32>
    %cst_33 = arith.constant dense<0.000000e+00> : vector<256x128xf32>
    %28 = tpu.matmul %25, %27, %cst_33 {dimension_numbers = #tpu.dot_dimension_numbers<[1], [0], [0], [1], [0, 0, 1, 1], [], []>} : vector<256x128xf32>, vector<128x128xf32>, vector<256x128xf32> -> vector<256x128xf32>
    %29 = arith.addf %23, %28 : vector<256x128xf32>
    %c1_34 = arith.constant 1 : index
    %c1_35 = arith.constant 1 : index
    %c0_36 = arith.constant 0 : index
    %30 = vector.load %arg10[%c1_34, %c1_35, %c0_36] : memref<18x18x128xf32, #tpu.memory_space<vmem>>, vector<16x16x128xf32>
    %31 = vector.shape_cast %30 : vector<16x16x128xf32> to vector<256x128xf32>
    %c4 = arith.constant 4 : index
    %c0_37 = arith.constant 0 : index
    %c0_38 = arith.constant 0 : index
    %32 = vector.load %arg3[%c4, %c0_37, %c0_38] : memref<9x128x128xf32, #tpu.memory_space<vmem>>, vector<1x128x128xf32>
    %33 = vector.shape_cast %32 : vector<1x128x128xf32> to vector<128x128xf32>
    %cst_39 = arith.constant dense<0.000000e+00> : vector<256x128xf32>
    %34 = tpu.matmul %31, %33, %cst_39 {dimension_numbers = #tpu.dot_dimension_numbers<[1], [0], [0], [1], [0, 0, 1, 1], [], []>} : vector<256x128xf32>, vector<128x128xf32>, vector<256x128xf32> -> vector<256x128xf32>
    %35 = arith.addf %29, %34 : vector<256x128xf32>
    %c1_40 = arith.constant 1 : index
    %c2_41 = arith.constant 2 : index
    %c0_42 = arith.constant 0 : index
    %36 = vector.load %arg10[%c1_40, %c2_41, %c0_42] : memref<18x18x128xf32, #tpu.memory_space<vmem>>, vector<16x16x128xf32>
    %37 = vector.shape_cast %36 : vector<16x16x128xf32> to vector<256x128xf32>
    %c5 = arith.constant 5 : index
    %c0_43 = arith.constant 0 : index
    %c0_44 = arith.constant 0 : index
    %38 = vector.load %arg3[%c5, %c0_43, %c0_44] : memref<9x128x128xf32, #tpu.memory_space<vmem>>, vector<1x128x128xf32>
    %39 = vector.shape_cast %38 : vector<1x128x128xf32> to vector<128x128xf32>
    %cst_45 = arith.constant dense<0.000000e+00> : vector<256x128xf32>
    %40 = tpu.matmul %37, %39, %cst_45 {dimension_numbers = #tpu.dot_dimension_numbers<[1], [0], [0], [1], [0, 0, 1, 1], [], []>} : vector<256x128xf32>, vector<128x128xf32>, vector<256x128xf32> -> vector<256x128xf32>
    %41 = arith.addf %35, %40 : vector<256x128xf32>
    %c2_46 = arith.constant 2 : index
    %c0_47 = arith.constant 0 : index
    %c0_48 = arith.constant 0 : index
    %42 = vector.load %arg10[%c2_46, %c0_47, %c0_48] : memref<18x18x128xf32, #tpu.memory_space<vmem>>, vector<16x16x128xf32>
    %43 = vector.shape_cast %42 : vector<16x16x128xf32> to vector<256x128xf32>
    %c6 = arith.constant 6 : index
    %c0_49 = arith.constant 0 : index
    %c0_50 = arith.constant 0 : index
    %44 = vector.load %arg3[%c6, %c0_49, %c0_50] : memref<9x128x128xf32, #tpu.memory_space<vmem>>, vector<1x128x128xf32>
    %45 = vector.shape_cast %44 : vector<1x128x128xf32> to vector<128x128xf32>
    %cst_51 = arith.constant dense<0.000000e+00> : vector<256x128xf32>
    %46 = tpu.matmul %43, %45, %cst_51 {dimension_numbers = #tpu.dot_dimension_numbers<[1], [0], [0], [1], [0, 0, 1, 1], [], []>} : vector<256x128xf32>, vector<128x128xf32>, vector<256x128xf32> -> vector<256x128xf32>
    %47 = arith.addf %41, %46 : vector<256x128xf32>
    %c2_52 = arith.constant 2 : index
    %c1_53 = arith.constant 1 : index
    %c0_54 = arith.constant 0 : index
    %48 = vector.load %arg10[%c2_52, %c1_53, %c0_54] : memref<18x18x128xf32, #tpu.memory_space<vmem>>, vector<16x16x128xf32>
    %49 = vector.shape_cast %48 : vector<16x16x128xf32> to vector<256x128xf32>
    %c7 = arith.constant 7 : index
    %c0_55 = arith.constant 0 : index
    %c0_56 = arith.constant 0 : index
    %50 = vector.load %arg3[%c7, %c0_55, %c0_56] : memref<9x128x128xf32, #tpu.memory_space<vmem>>, vector<1x128x128xf32>
    %51 = vector.shape_cast %50 : vector<1x128x128xf32> to vector<128x128xf32>
    %cst_57 = arith.constant dense<0.000000e+00> : vector<256x128xf32>
    %52 = tpu.matmul %49, %51, %cst_57 {dimension_numbers = #tpu.dot_dimension_numbers<[1], [0], [0], [1], [0, 0, 1, 1], [], []>} : vector<256x128xf32>, vector<128x128xf32>, vector<256x128xf32> -> vector<256x128xf32>
    %53 = arith.addf %47, %52 : vector<256x128xf32>
    %c2_58 = arith.constant 2 : index
    %c2_59 = arith.constant 2 : index
    %c0_60 = arith.constant 0 : index
    %54 = vector.load %arg10[%c2_58, %c2_59, %c0_60] : memref<18x18x128xf32, #tpu.memory_space<vmem>>, vector<16x16x128xf32>
    %55 = vector.shape_cast %54 : vector<16x16x128xf32> to vector<256x128xf32>
    %c8 = arith.constant 8 : index
    %c0_61 = arith.constant 0 : index
    %c0_62 = arith.constant 0 : index
    %56 = vector.load %arg3[%c8, %c0_61, %c0_62] : memref<9x128x128xf32, #tpu.memory_space<vmem>>, vector<1x128x128xf32>
    %57 = vector.shape_cast %56 : vector<1x128x128xf32> to vector<128x128xf32>
    %cst_63 = arith.constant dense<0.000000e+00> : vector<256x128xf32>
    %58 = tpu.matmul %55, %57, %cst_63 {dimension_numbers = #tpu.dot_dimension_numbers<[1], [0], [0], [1], [0, 0, 1, 1], [], []>} : vector<256x128xf32>, vector<128x128xf32>, vector<256x128xf32> -> vector<256x128xf32>
    %59 = arith.addf %53, %58 : vector<256x128xf32>
    %c0_64 = arith.constant 0 : index
    %c0_65 = arith.constant 0 : index
    %60 = vector.load %arg4[%c0_64, %c0_65] : memref<1x128xf32, #tpu.memory_space<vmem>>, vector<1x128xf32>
    %61 = vector.broadcast %60 : vector<1x128xf32> to vector<256x128xf32>
    %62 = arith.addf %59, %61 : vector<256x128xf32>
    %cst_66 = arith.constant 0.000000e+00 : f32
    %63 = vector.broadcast %cst_66 : f32 to vector<256x128xf32>
    %64 = arith.maximumf %62, %63 : vector<256x128xf32>
    %65 = vector.shape_cast %64 : vector<256x128xf32> to vector<16x16x128xf32>
    %c0_67 = arith.constant 0 : index
    %c0_68 = arith.constant 0 : index
    %c0_69 = arith.constant 0 : index
    %66 = vector.load %arg11[%c0_67, %c0_68, %c0_69] : memref<16x16x128xf32, #tpu.memory_space<vmem>>, vector<16x16x128xf32>
    tpu.vector_store %arg11[%c0_67, %c0_68, %c0_69], %65 {strides = array<i32>} : memref<16x16x128xf32, #tpu.memory_space<vmem>>, vector<16x16x128xf32>,
    %c0_70 = arith.constant 0 : index
    %c0_71 = arith.constant 0 : index
    %c0_72 = arith.constant 0 : index
    %67 = tpu.strided_load %arg11[%c0_70, %c0_71, %c0_72] {strides = array<i32: 1, 2, 1>} : memref<16x16x128xf32, #tpu.memory_space<vmem>>, vector<16x8x128xf32>
    %c0_73 = arith.constant 0 : index
    %c1_74 = arith.constant 1 : index
    %c0_75 = arith.constant 0 : index
    %68 = tpu.strided_load %arg11[%c0_73, %c1_74, %c0_75] {strides = array<i32: 1, 2, 1>} : memref<16x16x128xf32, #tpu.memory_space<vmem>>, vector<16x8x128xf32>
    %69 = arith.maximumf %67, %68 : vector<16x8x128xf32>
    %70 = vector.shape_cast %69 : vector<16x8x128xf32> to vector<8x2x8x128xf32>
    %71 = vector.extract_strided_slice %70 {offsets = [0, 0, 0, 0], sizes = [8, 1, 8, 128], strides = [1, 1, 1, 1]} : vector<8x2x8x128xf32> to vector<8x1x8x128xf32>
    %72 = vector.shape_cast %71 : vector<8x1x8x128xf32> to vector<8x8x128xf32>
    %73 = vector.extract_strided_slice %70 {offsets = [0, 1, 0, 0], sizes = [8, 1, 8, 128], strides = [1, 1, 1, 1]} : vector<8x2x8x128xf32> to vector<8x1x8x128xf32>
    %74 = vector.shape_cast %73 : vector<8x1x8x128xf32> to vector<8x8x128xf32>
    %75 = arith.maximumf %72, %74 : vector<8x8x128xf32>
    %cst_76 = arith.constant 0.000000e+00 : f32
    %76 = vector.broadcast %cst_76 : f32 to vector<10x10x128xf32>
    %c0_77 = arith.constant 0 : index
    %c0_78 = arith.constant 0 : index
    %c0_79 = arith.constant 0 : index
    %77 = vector.load %arg12[%c0_77, %c0_78, %c0_79] : memref<10x10x128xf32, #tpu.memory_space<vmem>>, vector<10x10x128xf32>
    tpu.vector_store %arg12[%c0_77, %c0_78, %c0_79], %76 {strides = array<i32>} : memref<10x10x128xf32, #tpu.memory_space<vmem>>, vector<10x10x128xf32>,
    %c1_80 = arith.constant 1 : index
    %c1_81 = arith.constant 1 : index
    %c0_82 = arith.constant 0 : index
    %78 = vector.load %arg12[%c1_80, %c1_81, %c0_82] : memref<10x10x128xf32, #tpu.memory_space<vmem>>, vector<8x8x128xf32>
    tpu.vector_store %arg12[%c1_80, %c1_81, %c0_82], %75 {strides = array<i32>} : memref<10x10x128xf32, #tpu.memory_space<vmem>>, vector<8x8x128xf32>,
    %cst_83 = arith.constant 0.000000e+00 : f32
    %79 = vector.broadcast %cst_83 : f32 to vector<64x128xf32>
    %c0_84 = arith.constant 0 : index
    %c0_85 = arith.constant 0 : index
    %c0_86 = arith.constant 0 : index
    %80 = vector.load %arg12[%c0_84, %c0_85, %c0_86] : memref<10x10x128xf32, #tpu.memory_space<vmem>>, vector<8x8x128xf32>
    %81 = vector.shape_cast %80 : vector<8x8x128xf32> to vector<64x128xf32>
    %c0_87 = arith.constant 0 : index
    %c0_88 = arith.constant 0 : index
    %c0_89 = arith.constant 0 : index
    %82 = vector.load %arg5[%c0_87, %c0_88, %c0_89] : memref<9x128x128xf32, #tpu.memory_space<vmem>>, vector<1x128x128xf32>
    %83 = vector.shape_cast %82 : vector<1x128x128xf32> to vector<128x128xf32>
    %cst_90 = arith.constant dense<0.000000e+00> : vector<64x128xf32>
    %84 = tpu.matmul %81, %83, %cst_90 {dimension_numbers = #tpu.dot_dimension_numbers<[1], [0], [0], [1], [0, 0, 1, 1], [], []>} : vector<64x128xf32>, vector<128x128xf32>, vector<64x128xf32> -> vector<64x128xf32>
    %85 = arith.addf %79, %84 : vector<64x128xf32>
    %c0_91 = arith.constant 0 : index
    %c1_92 = arith.constant 1 : index
    %c0_93 = arith.constant 0 : index
    %86 = vector.load %arg12[%c0_91, %c1_92, %c0_93] : memref<10x10x128xf32, #tpu.memory_space<vmem>>, vector<8x8x128xf32>
    %87 = vector.shape_cast %86 : vector<8x8x128xf32> to vector<64x128xf32>
    %c1_94 = arith.constant 1 : index
    %c0_95 = arith.constant 0 : index
    %c0_96 = arith.constant 0 : index
    %88 = vector.load %arg5[%c1_94, %c0_95, %c0_96] : memref<9x128x128xf32, #tpu.memory_space<vmem>>, vector<1x128x128xf32>
    %89 = vector.shape_cast %88 : vector<1x128x128xf32> to vector<128x128xf32>
    %cst_97 = arith.constant dense<0.000000e+00> : vector<64x128xf32>
    %90 = tpu.matmul %87, %89, %cst_97 {dimension_numbers = #tpu.dot_dimension_numbers<[1], [0], [0], [1], [0, 0, 1, 1], [], []>} : vector<64x128xf32>, vector<128x128xf32>, vector<64x128xf32> -> vector<64x128xf32>
    %91 = arith.addf %85, %90 : vector<64x128xf32>
    %c0_98 = arith.constant 0 : index
    %c2_99 = arith.constant 2 : index
    %c0_100 = arith.constant 0 : index
    %92 = vector.load %arg12[%c0_98, %c2_99, %c0_100] : memref<10x10x128xf32, #tpu.memory_space<vmem>>, vector<8x8x128xf32>
    %93 = vector.shape_cast %92 : vector<8x8x128xf32> to vector<64x128xf32>
    %c2_101 = arith.constant 2 : index
    %c0_102 = arith.constant 0 : index
    %c0_103 = arith.constant 0 : index
    %94 = vector.load %arg5[%c2_101, %c0_102, %c0_103] : memref<9x128x128xf32, #tpu.memory_space<vmem>>, vector<1x128x128xf32>
    %95 = vector.shape_cast %94 : vector<1x128x128xf32> to vector<128x128xf32>
    %cst_104 = arith.constant dense<0.000000e+00> : vector<64x128xf32>
    %96 = tpu.matmul %93, %95, %cst_104 {dimension_numbers = #tpu.dot_dimension_numbers<[1], [0], [0], [1], [0, 0, 1, 1], [], []>} : vector<64x128xf32>, vector<128x128xf32>, vector<64x128xf32> -> vector<64x128xf32>
    %97 = arith.addf %91, %96 : vector<64x128xf32>
    %c1_105 = arith.constant 1 : index
    %c0_106 = arith.constant 0 : index
    %c0_107 = arith.constant 0 : index
    %98 = vector.load %arg12[%c1_105, %c0_106, %c0_107] : memref<10x10x128xf32, #tpu.memory_space<vmem>>, vector<8x8x128xf32>
    %99 = vector.shape_cast %98 : vector<8x8x128xf32> to vector<64x128xf32>
    %c3_108 = arith.constant 3 : index
    %c0_109 = arith.constant 0 : index
    %c0_110 = arith.constant 0 : index
    %100 = vector.load %arg5[%c3_108, %c0_109, %c0_110] : memref<9x128x128xf32, #tpu.memory_space<vmem>>, vector<1x128x128xf32>
    %101 = vector.shape_cast %100 : vector<1x128x128xf32> to vector<128x128xf32>
    %cst_111 = arith.constant dense<0.000000e+00> : vector<64x128xf32>
    %102 = tpu.matmul %99, %101, %cst_111 {dimension_numbers = #tpu.dot_dimension_numbers<[1], [0], [0], [1], [0, 0, 1, 1], [], []>} : vector<64x128xf32>, vector<128x128xf32>, vector<64x128xf32> -> vector<64x128xf32>
    %103 = arith.addf %97, %102 : vector<64x128xf32>
    %c1_112 = arith.constant 1 : index
    %c1_113 = arith.constant 1 : index
    %c0_114 = arith.constant 0 : index
    %104 = vector.load %arg12[%c1_112, %c1_113, %c0_114] : memref<10x10x128xf32, #tpu.memory_space<vmem>>, vector<8x8x128xf32>
    %105 = vector.shape_cast %104 : vector<8x8x128xf32> to vector<64x128xf32>
    %c4_115 = arith.constant 4 : index
    %c0_116 = arith.constant 0 : index
    %c0_117 = arith.constant 0 : index
    %106 = vector.load %arg5[%c4_115, %c0_116, %c0_117] : memref<9x128x128xf32, #tpu.memory_space<vmem>>, vector<1x128x128xf32>
    %107 = vector.shape_cast %106 : vector<1x128x128xf32> to vector<128x128xf32>
    %cst_118 = arith.constant dense<0.000000e+00> : vector<64x128xf32>
    %108 = tpu.matmul %105, %107, %cst_118 {dimension_numbers = #tpu.dot_dimension_numbers<[1], [0], [0], [1], [0, 0, 1, 1], [], []>} : vector<64x128xf32>, vector<128x128xf32>, vector<64x128xf32> -> vector<64x128xf32>
    %109 = arith.addf %103, %108 : vector<64x128xf32>
    %c1_119 = arith.constant 1 : index
    %c2_120 = arith.constant 2 : index
    %c0_121 = arith.constant 0 : index
    %110 = vector.load %arg12[%c1_119, %c2_120, %c0_121] : memref<10x10x128xf32, #tpu.memory_space<vmem>>, vector<8x8x128xf32>
    %111 = vector.shape_cast %110 : vector<8x8x128xf32> to vector<64x128xf32>
    %c5_122 = arith.constant 5 : index
    %c0_123 = arith.constant 0 : index
    %c0_124 = arith.constant 0 : index
    %112 = vector.load %arg5[%c5_122, %c0_123, %c0_124] : memref<9x128x128xf32, #tpu.memory_space<vmem>>, vector<1x128x128xf32>
    %113 = vector.shape_cast %112 : vector<1x128x128xf32> to vector<128x128xf32>
    %cst_125 = arith.constant dense<0.000000e+00> : vector<64x128xf32>
    %114 = tpu.matmul %111, %113, %cst_125 {dimension_numbers = #tpu.dot_dimension_numbers<[1], [0], [0], [1], [0, 0, 1, 1], [], []>} : vector<64x128xf32>, vector<128x128xf32>, vector<64x128xf32> -> vector<64x128xf32>
    %115 = arith.addf %109, %114 : vector<64x128xf32>
    %c2_126 = arith.constant 2 : index
    %c0_127 = arith.constant 0 : index
    %c0_128 = arith.constant 0 : index
    %116 = vector.load %arg12[%c2_126, %c0_127, %c0_128] : memref<10x10x128xf32, #tpu.memory_space<vmem>>, vector<8x8x128xf32>
    %117 = vector.shape_cast %116 : vector<8x8x128xf32> to vector<64x128xf32>
    %c6_129 = arith.constant 6 : index
    %c0_130 = arith.constant 0 : index
    %c0_131 = arith.constant 0 : index
    %118 = vector.load %arg5[%c6_129, %c0_130, %c0_131] : memref<9x128x128xf32, #tpu.memory_space<vmem>>, vector<1x128x128xf32>
    %119 = vector.shape_cast %118 : vector<1x128x128xf32> to vector<128x128xf32>
    %cst_132 = arith.constant dense<0.000000e+00> : vector<64x128xf32>
    %120 = tpu.matmul %117, %119, %cst_132 {dimension_numbers = #tpu.dot_dimension_numbers<[1], [0], [0], [1], [0, 0, 1, 1], [], []>} : vector<64x128xf32>, vector<128x128xf32>, vector<64x128xf32> -> vector<64x128xf32>
    %121 = arith.addf %115, %120 : vector<64x128xf32>
    %c2_133 = arith.constant 2 : index
    %c1_134 = arith.constant 1 : index
    %c0_135 = arith.constant 0 : index
    %122 = vector.load %arg12[%c2_133, %c1_134, %c0_135] : memref<10x10x128xf32, #tpu.memory_space<vmem>>, vector<8x8x128xf32>
    %123 = vector.shape_cast %122 : vector<8x8x128xf32> to vector<64x128xf32>
    %c7_136 = arith.constant 7 : index
    %c0_137 = arith.constant 0 : index
    %c0_138 = arith.constant 0 : index
    %124 = vector.load %arg5[%c7_136, %c0_137, %c0_138] : memref<9x128x128xf32, #tpu.memory_space<vmem>>, vector<1x128x128xf32>
    %125 = vector.shape_cast %124 : vector<1x128x128xf32> to vector<128x128xf32>
    %cst_139 = arith.constant dense<0.000000e+00> : vector<64x128xf32>
    %126 = tpu.matmul %123, %125, %cst_139 {dimension_numbers = #tpu.dot_dimension_numbers<[1], [0], [0], [1], [0, 0, 1, 1], [], []>} : vector<64x128xf32>, vector<128x128xf32>, vector<64x128xf32> -> vector<64x128xf32>
    %127 = arith.addf %121, %126 : vector<64x128xf32>
    %c2_140 = arith.constant 2 : index
    %c2_141 = arith.constant 2 : index
    %c0_142 = arith.constant 0 : index
    %128 = vector.load %arg12[%c2_140, %c2_141, %c0_142] : memref<10x10x128xf32, #tpu.memory_space<vmem>>, vector<8x8x128xf32>
    %129 = vector.shape_cast %128 : vector<8x8x128xf32> to vector<64x128xf32>
    %c8_143 = arith.constant 8 : index
    %c0_144 = arith.constant 0 : index
    %c0_145 = arith.constant 0 : index
    %130 = vector.load %arg5[%c8_143, %c0_144, %c0_145] : memref<9x128x128xf32, #tpu.memory_space<vmem>>, vector<1x128x128xf32>
    %131 = vector.shape_cast %130 : vector<1x128x128xf32> to vector<128x128xf32>
    %cst_146 = arith.constant dense<0.000000e+00> : vector<64x128xf32>
    %132 = tpu.matmul %129, %131, %cst_146 {dimension_numbers = #tpu.dot_dimension_numbers<[1], [0], [0], [1], [0, 0, 1, 1], [], []>} : vector<64x128xf32>, vector<128x128xf32>, vector<64x128xf32> -> vector<64x128xf32>
    %133 = arith.addf %127, %132 : vector<64x128xf32>
    %c0_147 = arith.constant 0 : index
    %c0_148 = arith.constant 0 : index
    %134 = vector.load %arg6[%c0_147, %c0_148] : memref<1x128xf32, #tpu.memory_space<vmem>>, vector<1x128xf32>
    %135 = vector.broadcast %134 : vector<1x128xf32> to vector<64x128xf32>
    %136 = arith.addf %133, %135 : vector<64x128xf32>
    %cst_149 = arith.constant 0.000000e+00 : f32
    %137 = vector.broadcast %cst_149 : f32 to vector<64x128xf32>
    %138 = arith.maximumf %136, %137 : vector<64x128xf32>
    %139 = vector.shape_cast %138 : vector<64x128xf32> to vector<8x8x128xf32>
    %c0_150 = arith.constant 0 : index
    %c0_151 = arith.constant 0 : index
    %c0_152 = arith.constant 0 : index
    %140 = vector.load %arg13[%c0_150, %c0_151, %c0_152] : memref<8x8x128xf32, #tpu.memory_space<vmem>>, vector<8x8x128xf32>
    tpu.vector_store %arg13[%c0_150, %c0_151, %c0_152], %139 {strides = array<i32>} : memref<8x8x128xf32, #tpu.memory_space<vmem>>, vector<8x8x128xf32>,
    %c0_153 = arith.constant 0 : index
    %c0_154 = arith.constant 0 : index
    %c0_155 = arith.constant 0 : index
    %141 = tpu.strided_load %arg13[%c0_153, %c0_154, %c0_155] {strides = array<i32: 1, 2, 1>} : memref<8x8x128xf32, #tpu.memory_space<vmem>>, vector<8x4x128xf32>
    %c0_156 = arith.constant 0 : index
    %c1_157 = arith.constant 1 : index
    %c0_158 = arith.constant 0 : index
    %142 = tpu.strided_load %arg13[%c0_156, %c1_157, %c0_158] {strides = array<i32: 1, 2, 1>} : memref<8x8x128xf32, #tpu.memory_space<vmem>>, vector<8x4x128xf32>
    %143 = arith.maximumf %141, %142 : vector<8x4x128xf32>
    %144 = vector.shape_cast %143 : vector<8x4x128xf32> to vector<4x2x4x128xf32>
    %145 = vector.extract_strided_slice %144 {offsets = [0, 0, 0, 0], sizes = [4, 1, 4, 128], strides = [1, 1, 1, 1]} : vector<4x2x4x128xf32> to vector<4x1x4x128xf32>
    %146 = vector.shape_cast %145 : vector<4x1x4x128xf32> to vector<4x4x128xf32>
    %147 = vector.extract_strided_slice %144 {offsets = [0, 1, 0, 0], sizes = [4, 1, 4, 128], strides = [1, 1, 1, 1]} : vector<4x2x4x128xf32> to vector<4x1x4x128xf32>
    %148 = vector.shape_cast %147 : vector<4x1x4x128xf32> to vector<4x4x128xf32>
    %149 = arith.maximumf %146, %148 : vector<4x4x128xf32>
    %c0_159 = arith.constant 0 : index
    %c0_160 = arith.constant 0 : index
    %c0_161 = arith.constant 0 : index
    %150 = vector.load %arg14[%c0_159, %c0_160, %c0_161] : memref<4x4x128xf32, #tpu.memory_space<vmem>>, vector<4x4x128xf32>
    tpu.vector_store %arg14[%c0_159, %c0_160, %c0_161], %149 {strides = array<i32>} : memref<4x4x128xf32, #tpu.memory_space<vmem>>, vector<4x4x128xf32>,
    %cst_162 = arith.constant 0.000000e+00 : f32
    %151 = vector.broadcast %cst_162 : f32 to vector<1x128xf32>
    %c0_163 = arith.constant 0 : index
    %c0_164 = arith.constant 0 : index
    %c0_165 = arith.constant 0 : index
    %152 = vector.load %arg14[%c0_163, %c0_164, %c0_165] : memref<4x4x128xf32, #tpu.memory_space<vmem>>, vector<1x1x128xf32>
    %153 = vector.shape_cast %152 : vector<1x1x128xf32> to vector<1x128xf32>
    %c0_166 = arith.constant 0 : index
    %c0_167 = arith.constant 0 : index
    %c0_168 = arith.constant 0 : index
    %154 = vector.load %arg7[%c0_166, %c0_167, %c0_168] : memref<16x128x128xf32, #tpu.memory_space<vmem>>, vector<1x128x128xf32>
    %155 = vector.shape_cast %154 : vector<1x128x128xf32> to vector<128x128xf32>
    %cst_169 = arith.constant dense<0.000000e+00> : vector<1x128xf32>
    %156 = tpu.matmul %153, %155, %cst_169 {dimension_numbers = #tpu.dot_dimension_numbers<[1], [0], [0], [1], [0, 0, 1, 1], [], []>} : vector<1x128xf32>, vector<128x128xf32>, vector<1x128xf32> -> vector<1x128xf32>
    %157 = arith.addf %151, %156 : vector<1x128xf32>
    %c0_170 = arith.constant 0 : index
    %c1_171 = arith.constant 1 : index
    %c0_172 = arith.constant 0 : index
    %158 = vector.load %arg14[%c0_170, %c1_171, %c0_172] : memref<4x4x128xf32, #tpu.memory_space<vmem>>, vector<1x1x128xf32>
    %159 = vector.shape_cast %158 : vector<1x1x128xf32> to vector<1x128xf32>
    %c1_173 = arith.constant 1 : index
    %c0_174 = arith.constant 0 : index
    %c0_175 = arith.constant 0 : index
    %160 = vector.load %arg7[%c1_173, %c0_174, %c0_175] : memref<16x128x128xf32, #tpu.memory_space<vmem>>, vector<1x128x128xf32>
    %161 = vector.shape_cast %160 : vector<1x128x128xf32> to vector<128x128xf32>
    %cst_176 = arith.constant dense<0.000000e+00> : vector<1x128xf32>
    %162 = tpu.matmul %159, %161, %cst_176 {dimension_numbers = #tpu.dot_dimension_numbers<[1], [0], [0], [1], [0, 0, 1, 1], [], []>} : vector<1x128xf32>, vector<128x128xf32>, vector<1x128xf32> -> vector<1x128xf32>
    %163 = arith.addf %157, %162 : vector<1x128xf32>
    %c0_177 = arith.constant 0 : index
    %c2_178 = arith.constant 2 : index
    %c0_179 = arith.constant 0 : index
    %164 = vector.load %arg14[%c0_177, %c2_178, %c0_179] : memref<4x4x128xf32, #tpu.memory_space<vmem>>, vector<1x1x128xf32>
    %165 = vector.shape_cast %164 : vector<1x1x128xf32> to vector<1x128xf32>
    %c2_180 = arith.constant 2 : index
    %c0_181 = arith.constant 0 : index
    %c0_182 = arith.constant 0 : index
    %166 = vector.load %arg7[%c2_180, %c0_181, %c0_182] : memref<16x128x128xf32, #tpu.memory_space<vmem>>, vector<1x128x128xf32>
    %167 = vector.shape_cast %166 : vector<1x128x128xf32> to vector<128x128xf32>
    %cst_183 = arith.constant dense<0.000000e+00> : vector<1x128xf32>
    %168 = tpu.matmul %165, %167, %cst_183 {dimension_numbers = #tpu.dot_dimension_numbers<[1], [0], [0], [1], [0, 0, 1, 1], [], []>} : vector<1x128xf32>, vector<128x128xf32>, vector<1x128xf32> -> vector<1x128xf32>
    %169 = arith.addf %163, %168 : vector<1x128xf32>
    %c0_184 = arith.constant 0 : index
    %c3_185 = arith.constant 3 : index
    %c0_186 = arith.constant 0 : index
    %170 = vector.load %arg14[%c0_184, %c3_185, %c0_186] : memref<4x4x128xf32, #tpu.memory_space<vmem>>, vector<1x1x128xf32>
    %171 = vector.shape_cast %170 : vector<1x1x128xf32> to vector<1x128xf32>
    %c3_187 = arith.constant 3 : index
    %c0_188 = arith.constant 0 : index
    %c0_189 = arith.constant 0 : index
    %172 = vector.load %arg7[%c3_187, %c0_188, %c0_189] : memref<16x128x128xf32, #tpu.memory_space<vmem>>, vector<1x128x128xf32>
    %173 = vector.shape_cast %172 : vector<1x128x128xf32> to vector<128x128xf32>
    %cst_190 = arith.constant dense<0.000000e+00> : vector<1x128xf32>
    %174 = tpu.matmul %171, %173, %cst_190 {dimension_numbers = #tpu.dot_dimension_numbers<[1], [0], [0], [1], [0, 0, 1, 1], [], []>} : vector<1x128xf32>, vector<128x128xf32>, vector<1x128xf32> -> vector<1x128xf32>
    %175 = arith.addf %169, %174 : vector<1x128xf32>
    %c1_191 = arith.constant 1 : index
    %c0_192 = arith.constant 0 : index
    %c0_193 = arith.constant 0 : index
    %176 = vector.load %arg14[%c1_191, %c0_192, %c0_193] : memref<4x4x128xf32, #tpu.memory_space<vmem>>, vector<1x1x128xf32>
    %177 = vector.shape_cast %176 : vector<1x1x128xf32> to vector<1x128xf32>
    %c4_194 = arith.constant 4 : index
    %c0_195 = arith.constant 0 : index
    %c0_196 = arith.constant 0 : index
    %178 = vector.load %arg7[%c4_194, %c0_195, %c0_196] : memref<16x128x128xf32, #tpu.memory_space<vmem>>, vector<1x128x128xf32>
    %179 = vector.shape_cast %178 : vector<1x128x128xf32> to vector<128x128xf32>
    %cst_197 = arith.constant dense<0.000000e+00> : vector<1x128xf32>
    %180 = tpu.matmul %177, %179, %cst_197 {dimension_numbers = #tpu.dot_dimension_numbers<[1], [0], [0], [1], [0, 0, 1, 1], [], []>} : vector<1x128xf32>, vector<128x128xf32>, vector<1x128xf32> -> vector<1x128xf32>
    %181 = arith.addf %175, %180 : vector<1x128xf32>
    %c1_198 = arith.constant 1 : index
    %c1_199 = arith.constant 1 : index
    %c0_200 = arith.constant 0 : index
    %182 = vector.load %arg14[%c1_198, %c1_199, %c0_200] : memref<4x4x128xf32, #tpu.memory_space<vmem>>, vector<1x1x128xf32>
    %183 = vector.shape_cast %182 : vector<1x1x128xf32> to vector<1x128xf32>
    %c5_201 = arith.constant 5 : index
    %c0_202 = arith.constant 0 : index
    %c0_203 = arith.constant 0 : index
    %184 = vector.load %arg7[%c5_201, %c0_202, %c0_203] : memref<16x128x128xf32, #tpu.memory_space<vmem>>, vector<1x128x128xf32>
    %185 = vector.shape_cast %184 : vector<1x128x128xf32> to vector<128x128xf32>
    %cst_204 = arith.constant dense<0.000000e+00> : vector<1x128xf32>
    %186 = tpu.matmul %183, %185, %cst_204 {dimension_numbers = #tpu.dot_dimension_numbers<[1], [0], [0], [1], [0, 0, 1, 1], [], []>} : vector<1x128xf32>, vector<128x128xf32>, vector<1x128xf32> -> vector<1x128xf32>
    %187 = arith.addf %181, %186 : vector<1x128xf32>
    %c1_205 = arith.constant 1 : index
    %c2_206 = arith.constant 2 : index
    %c0_207 = arith.constant 0 : index
    %188 = vector.load %arg14[%c1_205, %c2_206, %c0_207] : memref<4x4x128xf32, #tpu.memory_space<vmem>>, vector<1x1x128xf32>
    %189 = vector.shape_cast %188 : vector<1x1x128xf32> to vector<1x128xf32>
    %c6_208 = arith.constant 6 : index
    %c0_209 = arith.constant 0 : index
    %c0_210 = arith.constant 0 : index
    %190 = vector.load %arg7[%c6_208, %c0_209, %c0_210] : memref<16x128x128xf32, #tpu.memory_space<vmem>>, vector<1x128x128xf32>
    %191 = vector.shape_cast %190 : vector<1x128x128xf32> to vector<128x128xf32>
    %cst_211 = arith.constant dense<0.000000e+00> : vector<1x128xf32>
    %192 = tpu.matmul %189, %191, %cst_211 {dimension_numbers = #tpu.dot_dimension_numbers<[1], [0], [0], [1], [0, 0, 1, 1], [], []>} : vector<1x128xf32>, vector<128x128xf32>, vector<1x128xf32> -> vector<1x128xf32>
    %193 = arith.addf %187, %192 : vector<1x128xf32>
    %c1_212 = arith.constant 1 : index
    %c3_213 = arith.constant 3 : index
    %c0_214 = arith.constant 0 : index
    %194 = vector.load %arg14[%c1_212, %c3_213, %c0_214] : memref<4x4x128xf32, #tpu.memory_space<vmem>>, vector<1x1x128xf32>
    %195 = vector.shape_cast %194 : vector<1x1x128xf32> to vector<1x128xf32>
    %c7_215 = arith.constant 7 : index
    %c0_216 = arith.constant 0 : index
    %c0_217 = arith.constant 0 : index
    %196 = vector.load %arg7[%c7_215, %c0_216, %c0_217] : memref<16x128x128xf32, #tpu.memory_space<vmem>>, vector<1x128x128xf32>
    %197 = vector.shape_cast %196 : vector<1x128x128xf32> to vector<128x128xf32>
    %cst_218 = arith.constant dense<0.000000e+00> : vector<1x128xf32>
    %198 = tpu.matmul %195, %197, %cst_218 {dimension_numbers = #tpu.dot_dimension_numbers<[1], [0], [0], [1], [0, 0, 1, 1], [], []>} : vector<1x128xf32>, vector<128x128xf32>, vector<1x128xf32> -> vector<1x128xf32>
    %199 = arith.addf %193, %198 : vector<1x128xf32>
    %c2_219 = arith.constant 2 : index
    %c0_220 = arith.constant 0 : index
    %c0_221 = arith.constant 0 : index
    %200 = vector.load %arg14[%c2_219, %c0_220, %c0_221] : memref<4x4x128xf32, #tpu.memory_space<vmem>>, vector<1x1x128xf32>
    %201 = vector.shape_cast %200 : vector<1x1x128xf32> to vector<1x128xf32>
    %c8_222 = arith.constant 8 : index
    %c0_223 = arith.constant 0 : index
    %c0_224 = arith.constant 0 : index
    %202 = vector.load %arg7[%c8_222, %c0_223, %c0_224] : memref<16x128x128xf32, #tpu.memory_space<vmem>>, vector<1x128x128xf32>
    %203 = vector.shape_cast %202 : vector<1x128x128xf32> to vector<128x128xf32>
    %cst_225 = arith.constant dense<0.000000e+00> : vector<1x128xf32>
    %204 = tpu.matmul %201, %203, %cst_225 {dimension_numbers = #tpu.dot_dimension_numbers<[1], [0], [0], [1], [0, 0, 1, 1], [], []>} : vector<1x128xf32>, vector<128x128xf32>, vector<1x128xf32> -> vector<1x128xf32>
    %205 = arith.addf %199, %204 : vector<1x128xf32>
    %c2_226 = arith.constant 2 : index
    %c1_227 = arith.constant 1 : index
    %c0_228 = arith.constant 0 : index
    %206 = vector.load %arg14[%c2_226, %c1_227, %c0_228] : memref<4x4x128xf32, #tpu.memory_space<vmem>>, vector<1x1x128xf32>
    %207 = vector.shape_cast %206 : vector<1x1x128xf32> to vector<1x128xf32>
    %c9 = arith.constant 9 : index
    %c0_229 = arith.constant 0 : index
    %c0_230 = arith.constant 0 : index
    %208 = vector.load %arg7[%c9, %c0_229, %c0_230] : memref<16x128x128xf32, #tpu.memory_space<vmem>>, vector<1x128x128xf32>
    %209 = vector.shape_cast %208 : vector<1x128x128xf32> to vector<128x128xf32>
    %cst_231 = arith.constant dense<0.000000e+00> : vector<1x128xf32>
    %210 = tpu.matmul %207, %209, %cst_231 {dimension_numbers = #tpu.dot_dimension_numbers<[1], [0], [0], [1], [0, 0, 1, 1], [], []>} : vector<1x128xf32>, vector<128x128xf32>, vector<1x128xf32> -> vector<1x128xf32>
    %211 = arith.addf %205, %210 : vector<1x128xf32>
    %c2_232 = arith.constant 2 : index
    %c2_233 = arith.constant 2 : index
    %c0_234 = arith.constant 0 : index
    %212 = vector.load %arg14[%c2_232, %c2_233, %c0_234] : memref<4x4x128xf32, #tpu.memory_space<vmem>>, vector<1x1x128xf32>
    %213 = vector.shape_cast %212 : vector<1x1x128xf32> to vector<1x128xf32>
    %c10 = arith.constant 10 : index
    %c0_235 = arith.constant 0 : index
    %c0_236 = arith.constant 0 : index
    %214 = vector.load %arg7[%c10, %c0_235, %c0_236] : memref<16x128x128xf32, #tpu.memory_space<vmem>>, vector<1x128x128xf32>
    %215 = vector.shape_cast %214 : vector<1x128x128xf32> to vector<128x128xf32>
    %cst_237 = arith.constant dense<0.000000e+00> : vector<1x128xf32>
    %216 = tpu.matmul %213, %215, %cst_237 {dimension_numbers = #tpu.dot_dimension_numbers<[1], [0], [0], [1], [0, 0, 1, 1], [], []>} : vector<1x128xf32>, vector<128x128xf32>, vector<1x128xf32> -> vector<1x128xf32>
    %217 = arith.addf %211, %216 : vector<1x128xf32>
    %c2_238 = arith.constant 2 : index
    %c3_239 = arith.constant 3 : index
    %c0_240 = arith.constant 0 : index
    %218 = vector.load %arg14[%c2_238, %c3_239, %c0_240] : memref<4x4x128xf32, #tpu.memory_space<vmem>>, vector<1x1x128xf32>
    %219 = vector.shape_cast %218 : vector<1x1x128xf32> to vector<1x128xf32>
    %c11 = arith.constant 11 : index
    %c0_241 = arith.constant 0 : index
    %c0_242 = arith.constant 0 : index
    %220 = vector.load %arg7[%c11, %c0_241, %c0_242] : memref<16x128x128xf32, #tpu.memory_space<vmem>>, vector<1x128x128xf32>
    %221 = vector.shape_cast %220 : vector<1x128x128xf32> to vector<128x128xf32>
    %cst_243 = arith.constant dense<0.000000e+00> : vector<1x128xf32>
    %222 = tpu.matmul %219, %221, %cst_243 {dimension_numbers = #tpu.dot_dimension_numbers<[1], [0], [0], [1], [0, 0, 1, 1], [], []>} : vector<1x128xf32>, vector<128x128xf32>, vector<1x128xf32> -> vector<1x128xf32>
    %223 = arith.addf %217, %222 : vector<1x128xf32>
    %c3_244 = arith.constant 3 : index
    %c0_245 = arith.constant 0 : index
    %c0_246 = arith.constant 0 : index
    %224 = vector.load %arg14[%c3_244, %c0_245, %c0_246] : memref<4x4x128xf32, #tpu.memory_space<vmem>>, vector<1x1x128xf32>
    %225 = vector.shape_cast %224 : vector<1x1x128xf32> to vector<1x128xf32>
    %c12 = arith.constant 12 : index
    %c0_247 = arith.constant 0 : index
    %c0_248 = arith.constant 0 : index
    %226 = vector.load %arg7[%c12, %c0_247, %c0_248] : memref<16x128x128xf32, #tpu.memory_space<vmem>>, vector<1x128x128xf32>
    %227 = vector.shape_cast %226 : vector<1x128x128xf32> to vector<128x128xf32>
    %cst_249 = arith.constant dense<0.000000e+00> : vector<1x128xf32>
    %228 = tpu.matmul %225, %227, %cst_249 {dimension_numbers = #tpu.dot_dimension_numbers<[1], [0], [0], [1], [0, 0, 1, 1], [], []>} : vector<1x128xf32>, vector<128x128xf32>, vector<1x128xf32> -> vector<1x128xf32>
    %229 = arith.addf %223, %228 : vector<1x128xf32>
    %c3_250 = arith.constant 3 : index
    %c1_251 = arith.constant 1 : index
    %c0_252 = arith.constant 0 : index
    %230 = vector.load %arg14[%c3_250, %c1_251, %c0_252] : memref<4x4x128xf32, #tpu.memory_space<vmem>>, vector<1x1x128xf32>
    %231 = vector.shape_cast %230 : vector<1x1x128xf32> to vector<1x128xf32>
    %c13 = arith.constant 13 : index
    %c0_253 = arith.constant 0 : index
    %c0_254 = arith.constant 0 : index
    %232 = vector.load %arg7[%c13, %c0_253, %c0_254] : memref<16x128x128xf32, #tpu.memory_space<vmem>>, vector<1x128x128xf32>
    %233 = vector.shape_cast %232 : vector<1x128x128xf32> to vector<128x128xf32>
    %cst_255 = arith.constant dense<0.000000e+00> : vector<1x128xf32>
    %234 = tpu.matmul %231, %233, %cst_255 {dimension_numbers = #tpu.dot_dimension_numbers<[1], [0], [0], [1], [0, 0, 1, 1], [], []>} : vector<1x128xf32>, vector<128x128xf32>, vector<1x128xf32> -> vector<1x128xf32>
    %235 = arith.addf %229, %234 : vector<1x128xf32>
    %c3_256 = arith.constant 3 : index
    %c2_257 = arith.constant 2 : index
    %c0_258 = arith.constant 0 : index
    %236 = vector.load %arg14[%c3_256, %c2_257, %c0_258] : memref<4x4x128xf32, #tpu.memory_space<vmem>>, vector<1x1x128xf32>
    %237 = vector.shape_cast %236 : vector<1x1x128xf32> to vector<1x128xf32>
    %c14 = arith.constant 14 : index
    %c0_259 = arith.constant 0 : index
    %c0_260 = arith.constant 0 : index
    %238 = vector.load %arg7[%c14, %c0_259, %c0_260] : memref<16x128x128xf32, #tpu.memory_space<vmem>>, vector<1x128x128xf32>
    %239 = vector.shape_cast %238 : vector<1x128x128xf32> to vector<128x128xf32>
    %cst_261 = arith.constant dense<0.000000e+00> : vector<1x128xf32>
    %240 = tpu.matmul %237, %239, %cst_261 {dimension_numbers = #tpu.dot_dimension_numbers<[1], [0], [0], [1], [0, 0, 1, 1], [], []>} : vector<1x128xf32>, vector<128x128xf32>, vector<1x128xf32> -> vector<1x128xf32>
    %241 = arith.addf %235, %240 : vector<1x128xf32>
    %c3_262 = arith.constant 3 : index
    %c3_263 = arith.constant 3 : index
    %c0_264 = arith.constant 0 : index
    %242 = vector.load %arg14[%c3_262, %c3_263, %c0_264] : memref<4x4x128xf32, #tpu.memory_space<vmem>>, vector<1x1x128xf32>
    %243 = vector.shape_cast %242 : vector<1x1x128xf32> to vector<1x128xf32>
    %c15 = arith.constant 15 : index
    %c0_265 = arith.constant 0 : index
    %c0_266 = arith.constant 0 : index
    %244 = vector.load %arg7[%c15, %c0_265, %c0_266] : memref<16x128x128xf32, #tpu.memory_space<vmem>>, vector<1x128x128xf32>
    %245 = vector.shape_cast %244 : vector<1x128x128xf32> to vector<128x128xf32>
    %cst_267 = arith.constant dense<0.000000e+00> : vector<1x128xf32>
    %246 = tpu.matmul %243, %245, %cst_267 {dimension_numbers = #tpu.dot_dimension_numbers<[1], [0], [0], [1], [0, 0, 1, 1], [], []>} : vector<1x128xf32>, vector<128x128xf32>, vector<1x128xf32> -> vector<1x128xf32>
    %247 = arith.addf %241, %246 : vector<1x128xf32>
    %c0_268 = arith.constant 0 : index
    %c0_269 = arith.constant 0 : index
    %248 = vector.load %arg8[%c0_268, %c0_269] : memref<1x128xf32, #tpu.memory_space<vmem>>, vector<1x128xf32>
    %249 = arith.addf %247, %248 : vector<1x128xf32>
    %250 = vector.shape_cast %249 : vector<1x128xf32> to vector<1x1x128xf32>
    %c0_270 = arith.constant 0 : index
    %c0_271 = arith.constant 0 : index
    %c0_272 = arith.constant 0 : index
    %251 = vector.load %arg9[%c0_270, %c0_271, %c0_272] : memref<1x1x128xf32, #tpu.memory_space<vmem>>, vector<1x1x128xf32>
    tpu.vector_store %arg9[%c0_270, %c0_271, %c0_272], %250 {strides = array<i32>} : memref<1x1x128xf32, #tpu.memory_space<vmem>>, vector<1x1x128xf32>,
    return
  }
  func.func @transform_0(%arg0: i32) -> (i32, i32, i32, i32) {
    %c0_i32 = arith.constant 0 : i32
    %c0_i32_0 = arith.constant 0 : i32
    %c0_i32_1 = arith.constant 0 : i32
    %c0_i32_2 = arith.constant 0 : i32
    return %arg0, %c0_i32, %c0_i32_0, %c0_i32_1 : i32, i32, i32, i32
  }
  func.func @transform_1(%arg0: i32) -> (i32, i32, i32) {
    %c0_i32 = arith.constant 0 : i32
    %c0_i32_0 = arith.constant 0 : i32
    %c0_i32_1 = arith.constant 0 : i32
    %c0_i32_2 = arith.constant 0 : i32
    return %c0_i32, %c0_i32_0, %c0_i32_1 : i32, i32, i32
  }
  func.func @transform_2(%arg0: i32) -> (i32, i32, i32) {
    %c0_i32 = arith.constant 0 : i32
    %c0_i32_0 = arith.constant 0 : i32
    %c0_i32_1 = arith.constant 0 : i32
    %c0_i32_2 = arith.constant 0 : i32
    return %c0_i32, %c0_i32_0, %c0_i32_1 : i32, i32, i32
  }
  func.func @transform_3(%arg0: i32) -> (i32, i32) {
    %c0_i32 = arith.constant 0 : i32
    %c0_i32_0 = arith.constant 0 : i32
    %c0_i32_1 = arith.constant 0 : i32
    return %c0_i32, %c0_i32_0 : i32, i32
  }
  func.func @transform_4(%arg0: i32) -> (i32, i32, i32) {
    %c0_i32 = arith.constant 0 : i32
    %c0_i32_0 = arith.constant 0 : i32
    %c0_i32_1 = arith.constant 0 : i32
    %c0_i32_2 = arith.constant 0 : i32
    return %c0_i32, %c0_i32_0, %c0_i32_1 : i32, i32, i32
  }
  func.func @transform_5(%arg0: i32) -> (i32, i32) {
    %c0_i32 = arith.constant 0 : i32
    %c0_i32_0 = arith.constant 0 : i32
    %c0_i32_1 = arith.constant 0 : i32
    return %c0_i32, %c0_i32_0 : i32, i32
  }
  func.func @transform_6(%arg0: i32) -> (i32, i32, i32) {
    %c0_i32 = arith.constant 0 : i32
    %c0_i32_0 = arith.constant 0 : i32
    %c0_i32_1 = arith.constant 0 : i32
    %c0_i32_2 = arith.constant 0 : i32
    return %c0_i32, %c0_i32_0, %c0_i32_1 : i32, i32, i32
  }
  func.func @transform_7(%arg0: i32) -> (i32, i32) {
    %c0_i32 = arith.constant 0 : i32
    %c0_i32_0 = arith.constant 0 : i32
    %c0_i32_1 = arith.constant 0 : i32
    return %c0_i32, %c0_i32_0 : i32, i32
  }
  func.func @transform_8(%arg0: i32) -> (i32, i32, i32) {
    %c0_i32 = arith.constant 0 : i32
    %c0_i32_0 = arith.constant 0 : i32
    %c0_i32_1 = arith.constant 0 : i32
    return %arg0, %c0_i32, %c0_i32_0 : i32, i32, i32
  }
}

</mosaic_0001>

<bundles_post_ra>
// kernel: forward.1
= control target key start
LH: loop header
LB: loop body
LE: loop exit
PB: predicated region body
PF: predicated region fallthrough
CT: control target
= control target key end

     0   :  { %13 = vsyncpa [#allocation8], 0  ;;  %s7354_s0 = inlined_call_operand.vmem [shape: f32[2,18,18,128], index: 0, kind: input, shape index: {}]   ;;  %s7355_s1 = inlined_call_operand.vmem [shape: f32[18,18,128], index: 1, kind: input, shape index: {}]   ;;  %s7356_s2 = inlined_call_operand.vmem [shape: f32[9,128,128], index: 2, kind: input, shape index: {}]   ;;  %s7357_s3 = inlined_call_operand.vmem [shape: f32[1,128], index: 3, kind: input, shape index: {}]   ;;  %s7358_s4 = inlined_call_operand.vmem [shape: f32[9,128,128], index: 4, kind: input, shape index: {}]   ;;  %s7359_s5 = inlined_call_operand.vmem [shape: f32[1,128], index: 5, kind: input, shape index: {}]   ;;  %s7360_s6 = inlined_call_operand.vmem [shape: f32[16,128,128], index: 6, kind: input, shape index: {}]   ;;  %s7361_s7 = inlined_call_operand.vmem [shape: f32[1,128], index: 7, kind: input, shape index: {}]   ;;  %s7362_s8 = inlined_call_operand.hbm [shape: f32[2,1,128], index: 8, kind: output, shape index: {}]  }
   0x1   :  { %15 = vsyncpa [#allocation8 + $0x1], 0  ;;  %s4502_s27 = smov 0   ;;  %s4504_s28 = smov 0  }
   0x2   :  { %s4506_s29 = smov 0   ;;  %s4508_s30 = smov 0  }
   0x3 LB: > { %s4523_s9 = sadd.s32 4294967295, %s4454_s30   ;;  %s3838_s10 = sadd.s32 4294967294, %s4454_s30   ;;  %s4454_s30 = sphi %s4508_s30, %s7414_s30   ;;  %s4450_s29 = sphi %s4506_s29, %s7413_s29   ;;  %s4446_s28 = sphi %s4504_s28, %s7412_s28   ;;  %s4442_s27 = sphi %s4502_s27, %s7411_s27  }
   0x4   : > { %s4527_s11 = sadd.s32 1, %s4454_s30   ;;  %s201_s12 = sadd.s32 1, %s4450_s29 }
   0x5   : > { %s198_s13 = ssub.s32 %s4454_s30, %s4527_s11  ;;  %p211_p0 = scmp.ne.s32.totalorder %s4450_s29, %s4446_s28 }
   0x6   : > { %p199_p1 = scmp.eq.s32.totalorder %s198_s13, 0  ;;  %p212_p2 = scmp.eq.s32.totalorder %s4523_s9, 1 }
   0x7   : > { %p217_p3 = scmp.ne.s32.totalorder %s4446_s28, %s4442_s27  ;;  %p218_p4 = scmp.eq.s32.totalorder %s3838_s10, 1 }
   0x8   : > { %s4538_s14 = scalar_select %p199_p1, %s4450_s29, %s201_s12  }
   0x9   : > { %p4540_p5 = por %p212_p2, %p211_p0  ;;  %p4544_p6 = por %p218_p4, %p217_p3 }
   0xa   : > { %p3841_p7 = scmp.ge.s32.totalorder %s4454_s30, 1  ;;  %p265_p8 = scmp.lt.s32.totalorder %s4454_s30, 3 }
   0xc   : > { %p266_p9 = pnand %p3841_p7, %p265_p8 }
   0xe   : > { %269 = sbr.rel (%p266_p9) target bundleno = 1405 (0x57d), region = 52 }
  0x13   : > { %v3858_v0 = vld [vmem:[%s7356_s2 + $0xf8] sm:$0xff]  ;;  %v3857_v3 = vld [vmem:[%s7356_s2 + $0xf0] sm:$0xff]  ;;  %v3856_v7 = vld [vmem:[%s7356_s2 + $0xe8] sm:$0xff]  ;;  %p298_p10 = scmp.lt.s32.totalorder %s4523_s9, 1  ;;  %s296_s13 = sand.u32 1, %s4446_s28  }
  0x14   : > { %v566_v1 = vld [vmem:[%s7356_s2 + $0x78] sm:$0xff]  ;;  %616 = vmatpush.msra.mxu0 %v3858_v0  ;;  %v565_v4 = vld [vmem:[%s7356_s2 + $0x70] sm:$0xff]  ;;  %v564_v8 = vld [vmem:[%s7356_s2 + $0x68] sm:$0xff]  ;;  %s3779_s19 = scalar_lea.hbm %s7362_s8, %s4523_s9  ;;  %s297_s23 = scalar_lea.vmem [#allocation7], %s296_s13 }
  0x15   : > { %v3874_v2 = vld [vmem:[%s7356_s2 + $0x178] sm:$0xff]  ;;  %729 = vmatpush.msra.mxu1 %v566_v1  ;;  %v3873_v5 = vld [vmem:[%s7356_s2 + $0x170] sm:$0xff]  ;;  %v3872_v9 = vld [vmem:[%s7356_s2 + $0x168] sm:$0xff]  ;;  %s4629_s12 = scalar_select %p298_p10, %s4523_s9, 1 }
  0x16   : > { %891 = vmatpush.msra.mxu2 %v3874_v2  ;;  %v3890_v6 = vld [vmem:[%s7356_s2 + $0x1f8] sm:$0xff]  ;;  %617 = vmatpush.msra.mxu0 %v3857_v3  ;;  %v3889_v10 = vld [vmem:[%s7356_s2 + $0x1f0] sm:$0xff]  ;;  %v3855_v11 = vld [vmem:[%s7356_s2 + $0xe0] sm:$0xff]  ;;  %s3781_s24 = sshll.u32 %s297_s23, 4  ;;  %s3783_s25 = sshll.u32 %s3779_s19, 4  ;;  %s3782_s24 = int_to_ptr.vmem [resolvable:$true] %s3781_s24  ;;  %s3784_s25 = int_to_ptr.hbm [resolvable:$true] %s3783_s25 }
  0x17   : > { %730 = vmatpush.msra.mxu1 %v565_v4  ;;  %1086 = vmatpush.msra.mxu3 %v3890_v6  ;;  %v563_v12 = vld [vmem:[%s7356_s2 + $0x60] sm:$0xff]  ;;  %v3888_v14 = vld [vmem:[%s7356_s2 + $0x1e8] sm:$0xff]  ;;  %v3854_v15 = vld [vmem:[%s7356_s2 + $0xd8] sm:$0xff]  ;;  %s4341_s20 = smul.u32 432, %s4629_s12  ;;  %s4412_s12 = scalar_lea.hbm %s7362_s8, 2 }
  0x18   : > { %892 = vmatpush.msra.mxu2 %v3873_v5  ;;  %618 = vmatpush.msra.mxu0 %v3856_v7  ;;  %v3871_v13 = vld [vmem:[%s7356_s2 + $0x160] sm:$0xff]  ;;  %v562_v16 = vld [vmem:[%s7356_s2 + $0x58] sm:$0xff]  ;;  %v3853_v19 = vld [vmem:[%s7356_s2 + $0xd0] sm:$0xff] }
  0x19   : > { %731 = vmatpush.msra.mxu1 %v564_v8  ;;  %1087 = vmatpush.msra.mxu3 %v3889_v10  ;;  %v3870_v17 = vld [vmem:[%s7356_s2 + $0x158] sm:$0xff]  ;;  %v3887_v18 = vld [vmem:[%s7356_s2 + $0x1e0] sm:$0xff]  ;;  %v561_v20 = vld [vmem:[%s7356_s2 + $0x50] sm:$0xff]  ;;  %s4689_s18 = scalar_lea.vmem %s7354_s0, %s4341_s20  ;;  %s4406_s20 = sshra.s32 %s3784_s25, 4  ;;  %s4407_s20 = int_to_ptr.hbm [resolvable:$true] %s4406_s20 }
  0x1a   : > { %893 = vmatpush.msra.mxu2 %v3872_v9  ;;  %619 = vmatpush.msra.mxu0 %v3855_v11  ;;  %v3869_v21 = vld [vmem:[%s7356_s2 + $0x150] sm:$0xff]  ;;  %v3886_v22 = vld [vmem:[%s7356_s2 + $0x1d8] sm:$0xff]  ;;  %v3852_v23 = vld [vmem:[%s7356_s2 + $0xc8] sm:$0xff]  ;;  %s4408_s9 = scalar_lea.hbm %s4407_s20, 1  ;;  %p4413_p0 = scmp.lt.s32.totalorder %s4407_s20, %s7362_s8 }
  0x1b   : > { %732 = vmatpush.msra.mxu1 %v563_v12  ;;  %1088 = vmatpush.msra.mxu3 %v3888_v14  ;;  %v560_v24 = vld [vmem:[%s7356_s2 + $0x48] sm:$0xff]  ;;  %v3885_v26 = vld [vmem:[%s7356_s2 + $0x1d0] sm:$0xff]  ;;  %v3851_v27 = vld [vmem:[%s7356_s2 + $0xc0] sm:$0xff]  ;;  %p4409_p11 = scmp.ne.s32.totalorder %s4407_s20, %s4408_s9  ;;  %p4414_p1 = scmp.lt.s32.totalorder %s4412_s12, %s4408_s9 }
  0x1c   : > { %894 = vmatpush.msra.mxu2 %v3871_v13  ;;  %620 = vmatpush.msra.mxu0 %v3854_v15  ;;  %v3868_v25 = vld [vmem:[%s7356_s2 + $0x148] sm:$0xff]  ;;  %v559_v28 = vld [vmem:[%s7356_s2 + $0x40] sm:$0xff]  ;;  %v3850_v31 = vld [vmem:[%s7356_s2 + $0xb8] sm:$0xff] }
  0x1d   : > { %733 = vmatpush.msra.mxu1 %v562_v16  ;;  %1089 = vmatpush.msra.mxu3 %v3887_v18  ;;  %v3867_v29 = vld [vmem:[%s7356_s2 + $0x140] sm:$0xff]  ;;  %v3884_v30 = vld [vmem:[%s7356_s2 + $0x1c8] sm:$0xff]  ;;  %v558_v32 = vld [vmem:[%s7356_s2 + $0x38] sm:$0xff]  ;;  %p4410_p12 = pnand %p4409_p11, %p4540_p5  ;;  %p4415_p2 = por %p4414_p1, %p4413_p0 }
  0x1e   : > { %895 = vmatpush.msra.mxu2 %v3870_v17  ;;  %621 = vmatpush.msra.mxu0 %v3853_v19  ;;  %v3866_v33 = vld [vmem:[%s7356_s2 + $0x138] sm:$0xff]  ;;  %v3883_v34 = vld [vmem:[%s7356_s2 + $0x1c0] sm:$0xff]  ;;  %v3849_v35 = vld [vmem:[%s7356_s2 + $0xb0] sm:$0xff] }
  0x1f   : > { %734 = vmatpush.msra.mxu1 %v561_v20  ;;  %1090 = vmatpush.msra.mxu3 %v3886_v22  ;;  %v557_v36 = vld [vmem:[%s7356_s2 + $0x30] sm:$0xff]  ;;  %v3882_v38 = vld [vmem:[%s7356_s2 + $0x1b8] sm:$0xff]  ;;  %v3848_v39 = vld [vmem:[%s7356_s2 + $0xa8] sm:$0xff]  ;;  %p4411_p13 = pneg %p4410_p12 }
  0x20   : > { %896 = vmatpush.msra.mxu2 %v3869_v21  ;;  %622 = vmatpush.msra.mxu0 %v3852_v23  ;;  %v3865_v37 = vld [vmem:[%s7356_s2 + $0x130] sm:$0xff]  ;;  %v556_v40 = vld [vmem:[%s7356_s2 + $0x28] sm:$0xff]  ;;  %v3847_v43 = vld [vmem:[%s7356_s2 + $0xa0] sm:$0xff] }
  0x21   : > { %735 = vmatpush.msra.mxu1 %v560_v24  ;;  %1091 = vmatpush.msra.mxu3 %v3885_v26  ;;  %v3864_v41 = vld [vmem:[%s7356_s2 + $0x128] sm:$0xff]  ;;  %v3881_v42 = vld [vmem:[%s7356_s2 + $0x1b0] sm:$0xff]  ;;  %v555_v44 = vld [vmem:[%s7356_s2 + $0x20] sm:$0xff]  ;;  %p4416_p3 = pnand %p4415_p2, %p4411_p13 }
  0x22   : > { %897 = vmatpush.msra.mxu2 %v3868_v25  ;;  %623 = vmatpush.msra.mxu0 %v3851_v27  ;;  %v3863_v45 = vld [vmem:[%s7356_s2 + $0x120] sm:$0xff]  ;;  %v3880_v46 = vld [vmem:[%s7356_s2 + $0x1a8] sm:$0xff]  ;;  %v3846_v47 = vld [vmem:[%s7356_s2 + $0x98] sm:$0xff] }
  0x23   : > { %736 = vmatpush.msra.mxu1 %v559_v28  ;;  %1092 = vmatpush.msra.mxu3 %v3884_v30  ;;  %v554_v48 = vld [vmem:[%s7356_s2 + $0x18] sm:$0xff]  ;;  %v3879_v50 = vld [vmem:[%s7356_s2 + $0x1a0] sm:$0xff]  ;;  %v304_v52 = vld [vmem:[%s4689_s18 + $0x8] sm:$0xff] }
  0x24   : > { %898 = vmatpush.msra.mxu2 %v3867_v29  ;;  %624 = vmatpush.msra.mxu0 %v3850_v31  ;;  %v3862_v49 = vld [vmem:[%s7356_s2 + $0x118] sm:$0xff]  ;;  %v303_v51 = vld [vmem:[%s4689_s18] sm:$0xff]  ;;  %v3845_v54 = vld [vmem:[%s7356_s2 + $0x90] sm:$0xff] }
  0x25   : > { %737 = vmatpush.msra.mxu1 %v558_v32  ;;  %1093 = vmatpush.msra.mxu3 %v3883_v34  ;;  %v357_v53 = vld [vmem:[%s7355_s1] sm:$0xff]  ;;  %v553_v55 = vld [vmem:[%s7356_s2 + $0x10] sm:$0xff]  ;;  %v358_v56 = vld [vmem:[%s7355_s1 + $0x8] sm:$0xff] }
  0x26   : > { %899 = vmatpush.msra.mxu2 %v3866_v33  ;;  %625 = vmatpush.msra.mxu0 %v3849_v35  ;;  %v4729_v57 = vmul.f32 %v357_v53, %v303_v51  ;;  %v306_v58 = vld [vmem:[%s4689_s18 + $0x18] sm:$0xff]  ;;  %v3861_v59 = vld [vmem:[%s7356_s2 + $0x110] sm:$0xff]  ;;  %v4738_v61 = vmul.f32 %v358_v56, %v304_v52  ;;  %v3844_v1 = vld [vmem:[%s7356_s2 + $0x88] sm:$0xff] }
  0x27   : > { %738 = vmatpush.msra.mxu1 %v557_v36  ;;  %1094 = vmatpush.msra.mxu3 %v3882_v38  ;;  %v3878_v60 = vld [vmem:[%s7356_s2 + $0x198] sm:$0xff]  ;;  %v305_v63 = vld [vmem:[%s4689_s18 + $0x10] sm:$0x3]  ;;  %v552_v2 = vld [vmem:[%s7356_s2 + $0x8] sm:$0xff] }
  0x28   : > { %900 = vmatpush.msra.mxu2 %v3865_v37  ;;  %626 = vmatpush.msra.mxu0 %v3848_v39  ;;  %v360_v62 = vld [vmem:[%s7355_s1 + $0x18] sm:$0xff]  ;;  %v359_v0 = vld [vmem:[%s7355_s1 + $0x10] sm:$0x3]  ;;  %465 = vst [vmem:[#allocation2] sm:$0xff] %v4729_v57  ;;  %v307_v5 = vld [vmem:[%s4689_s18 + $0x20] sm:$0xff] }
  0x29   : > { %739 = vmatpush.msra.mxu1 %v556_v40  ;;  %1095 = vmatpush.msra.mxu3 %v3881_v42  ;;  %v4754_v3 = vmul.f32 %v360_v62, %v306_v58  ;;  %v413_v4 = vmul.f32 %v359_v0, %v305_v63  ;;  %v361_v6 = vld [vmem:[%s7355_s1 + $0x20] sm:$0xff]  ;;  %v309_v7 = vld [vmem:[%s4689_s18 + $0x30] sm:$0xff]  ;;  %466 = vst [vmem:[#allocation2 + $0x8] sm:$0xff] %v4738_v61  ;;  %v308_v10 = vld [vmem:[%s4689_s18 + $0x28] sm:$0x3] }
  0x2a   : > { %901 = vmatpush.msra.mxu2 %v3864_v41  ;;  %627 = vmatpush.msra.mxu0 %v3847_v43  ;;  %v4762_v8 = vmul.f32 %v361_v6, %v307_v5  ;;  %v363_v9 = vld [vmem:[%s7355_s1 + $0x30] sm:$0xff]  ;;  %v362_v11 = vld [vmem:[%s7355_s1 + $0x28] sm:$0x3]  ;;  %v310_v13 = vld [vmem:[%s4689_s18 + $0x38] sm:$0xff] }
  0x2b   : > { %740 = vmatpush.msra.mxu1 %v555_v44  ;;  %1096 = vmatpush.msra.mxu3 %v3880_v46  ;;  %468 = vst [vmem:[#allocation2 + $0x18] sm:$0xff] %v4754_v3  ;;  %v416_v12 = vmul.f32 %v362_v11, %v308_v10  ;;  %v364_v14 = vld [vmem:[%s7355_s1 + $0x38] sm:$0xff]  ;;  %v3860_v15 = vld [vmem:[%s7356_s2 + $0x108] sm:$0xff]  ;;  %v3877_v16 = vld [vmem:[%s7356_s2 + $0x190] sm:$0xff]  ;;  %v4782_v17 = vmul.f32 %v363_v9, %v309_v7 }
  0x2c   : > { %902 = vmatpush.msra.mxu2 %v3863_v45  ;;  %628 = vmatpush.msra.mxu0 %v3846_v47  ;;  %467 = vst [vmem:[#allocation2 + $0x10] sm:$0x3] %v413_v4  ;;  %v4784_v18 = vmul.f32 %v364_v14, %v310_v13  ;;  %v3843_v19 = vld [vmem:[%s7356_s2 + $0x80] sm:$0xff]  ;;  %v3876_v22 = vld [vmem:[%s7356_s2 + $0x188] sm:$0xff]  ;;  %v3906_v28 = vld [vmem:[%s7356_s2 + $0x278] sm:$0xff] }
  0x2d   : > { %741 = vmatpush.msra.mxu1 %v554_v48  ;;  %1097 = vmatpush.msra.mxu3 %v3879_v50  ;;  %v551_v20 = vld [vmem:[%s7356_s2] sm:$0xff]  ;;  %469 = vst [vmem:[#allocation2 + $0x20] sm:$0xff] %v4762_v8  ;;  %v312_v30 = vld [vmem:[%s4689_s18 + $0x48] sm:$0xff]  ;;  %v313_v35 = vld [vmem:[%s4689_s18 + $0x50] sm:$0xff] }
  0x2e   : > { %903 = vmatpush.msra.mxu2 %v3862_v49  ;;  %629 = vmatpush.msra.mxu0 %v3845_v54  ;;  %v3859_v21 = vld [vmem:[%s7356_s2 + $0x100] sm:$0xff]  ;;  %471 = vst [vmem:[#allocation2 + $0x30] sm:$0xff] %v4782_v17  ;;  %v366_v31 = vld [vmem:[%s7355_s1 + $0x48] sm:$0xff]  ;;  %v367_v36 = vld [vmem:[%s7355_s1 + $0x50] sm:$0xff] }
  0x2f   : > { %742 = vmatpush.msra.mxu1 %v553_v55  ;;  %1098 = vmatpush.msra.mxu3 %v3878_v60  ;;  %470 = vst [vmem:[#allocation2 + $0x28] sm:$0x3] %v416_v12  ;;  %v3875_v23 = vld [vmem:[%s7356_s2 + $0x180] sm:$0xff]  ;;  %v4816_v32 = vmul.f32 %v366_v31, %v312_v30  ;;  %v4824_v37 = vmul.f32 %v367_v36, %v313_v35  ;;  %v3905_v38 = vld [vmem:[%s7356_s2 + $0x270] sm:$0xff]  ;;  %v314_v41 = vld [vmem:[%s4689_s18 + $0x58] sm:$0x3] }
  0x30   : > { %904 = vmatpush.msra.mxu2 %v3861_v59  ;;  %630 = vmatpush.msra.mxu0 %v3844_v1  ;;  %472 = vst [vmem:[#allocation2 + $0x38] sm:$0xff] %v4784_v18  ;;  %v311_v24 = vld [vmem:[%s4689_s18 + $0x40] sm:$0x3]  ;;  %v842_v27 = vld [vmem:[#allocation2 + $0x2] sm:$0xff]  ;;  %v368_v42 = vld [vmem:[%s7355_s1 + $0x58] sm:$0x3] }
  0x31   : > { %743 = vmatpush.msra.mxu1 %v552_v2  ;;  %1099 = vmatpush.msra.mxu3 %v3877_v16  ;;  %v365_v25 = vld [vmem:[%s7355_s1 + $0x40] sm:$0x3]  ;;  %474 = vst [vmem:[#allocation2 + $0x48] sm:$0xff] %v4816_v32  ;;  %v422_v43 = vmul.f32 %v368_v42, %v314_v41  ;;  %v316_v49 = vld [vmem:[%s4689_s18 + $0x68] sm:$0xff]  ;;  %v317_v55 = vld [vmem:[%s4689_s18 + $0x70] sm:$0x3] }
  0x32   : > { %905 = vmatpush.msra.mxu2 %v3860_v15  ;;  %631 = vmatpush.msra.mxu0 %v3843_v19  ;;  %v567_v26 = vld [vmem:[#allocation2 + $0x1] sm:$0xff]  ;;  %v419_v29 = vmul.f32 %v365_v25, %v311_v24  ;;  %475 = vst [vmem:[#allocation2 + $0x50] sm:$0xff] %v4824_v37  ;;  %v371_v56 = vld [vmem:[%s7355_s1 + $0x70] sm:$0x3]  ;;  %v318_v58 = vld [vmem:[%s4689_s18 + $0x78] sm:$0xff] }
  0x33   : > { %744 = vmatpush.msra.mxu1 %v551_v20  ;;  %1100 = vmatpush.msra.mxu3 %v3876_v22  ;;  %v568_v33 = vld [vmem:[#allocation2 + $0x9] sm:$0xff]  ;;  %v315_v44 = vld [vmem:[%s4689_s18 + $0x60] sm:$0xff]  ;;  %476 = vst [vmem:[#allocation2 + $0x58] sm:$0x3] %v422_v43  ;;  %v372_v59 = vld [vmem:[%s7355_s1 + $0x78] sm:$0xff] }
  0x34   : > { %906 = vmatpush.msra.mxu2 %v3859_v21  ;;  %632 = vmatmul.f32.vlgmr.msra.gmra.mxu0 %v567_v26  ;;  %473 = vst [vmem:[#allocation2 + $0x40] sm:$0x3] %v419_v29  ;;  %v843_v34 = vld [vmem:[#allocation2 + $0xa] sm:$0xff]  ;;  %v569_v39 = vld [vmem:[#allocation2 + $0x19] sm:$0xff]  ;;  %v4867_v60 = vmul.f32 %v372_v59, %v318_v58  ;;  %v320_v5 = vld [vmem:[%s4689_s18 + $0x88] sm:$0x3] }
  0x35   : > { %745 = vmatmul.f32.vlgmr.msra.gmra.mxu1 %v4729_v57  ;;  %907 = vmatmul.f32.vlgmr.msra.gmra.mxu2 %v842_v27  ;;  %v844_v40 = vld [vmem:[#allocation2 + $0x1a] sm:$0xff]  ;;  %v370_v50 = vld [vmem:[%s7355_s1 + $0x68] sm:$0xff]  ;;  %v425_v57 = vmul.f32 %v371_v56, %v317_v55  ;;  %v375_v9 = vld [vmem:[%s7355_s1 + $0x90] sm:$0xff] }
  0x36   : > { %1101 = vmatpush.msra.mxu3 %v3875_v23  ;;  %1280 = vmatpush.msrb.mxu0 %v3906_v28  ;;  %v369_v45 = vld [vmem:[%s7355_s1 + $0x60] sm:$0xff]  ;;  %v4849_v51 = vmul.f32 %v370_v50, %v316_v49  ;;  %v3904_v52 = vld [vmem:[%s7356_s2 + $0x268] sm:$0xff]  ;;  %480 = vst [vmem:[#allocation2 + $0x78] sm:$0xff] %v4867_v60  ;;  %v322_v13 = vld [vmem:[%s4689_s18 + $0x98] sm:$0xff] }
  0x37   : > { %1102 = vmatmul.f32.vlgmr.msra.gmra.mxu3 %v4754_v3  ;;  %v4842_v46 = vmul.f32 %v369_v45, %v315_v44  ;;  %v570_v47 = vld [vmem:[#allocation2 + $0x21] sm:$0xff]  ;;  %v571_v53 = vld [vmem:[#allocation2 + $0x31] sm:$0xff]  ;;  %479 = vst [vmem:[#allocation2 + $0x70] sm:$0x3] %v425_v57 }
  0x38   : > { %1281 = vmatpush.msrb.mxu0 %v3905_v38  ;;  %v845_v48 = vld [vmem:[#allocation2 + $0x22] sm:$0xff]  ;;  %478 = vst [vmem:[#allocation2 + $0x68] sm:$0xff] %v4849_v51  ;;  %v846_v54 = vld [vmem:[#allocation2 + $0x32] sm:$0xff]  ;;  %v323_v19 = vld [vmem:[%s4689_s18 + $0xa0] sm:$0x3] }
  0x39   : > { %477 = vst [vmem:[#allocation2 + $0x60] sm:$0xff] %v4842_v46  ;;  %v319_v63 = vld [vmem:[%s4689_s18 + $0x80] sm:$0xff]  ;;  %v848_v4 = vld [vmem:[#allocation2 + $0x4a] sm:$0xff]  ;;  %v374_v6 = vld [vmem:[%s7355_s1 + $0x88] sm:$0x3] }
  0x3a   : > { %1282 = vmatpush.msrb.mxu0 %v3904_v52  ;;  %v373_v0 = vld [vmem:[%s7355_s1 + $0x80] sm:$0xff]  ;;  %v428_v7 = vmul.f32 %v374_v6, %v320_v5  ;;  %v574_v11 = vld [vmem:[#allocation2 + $0x51] sm:$0xff]  ;;  %v324_v22 = vld [vmem:[%s4689_s18 + $0xa8] sm:$0xff] }
  0x3b   : > { %v847_v62 = vld [vmem:[#allocation2 + $0x3a] sm:$0xff]  ;;  %v4874_v1 = vmul.f32 %v373_v0, %v319_v63  ;;  %v849_v12 = vld [vmem:[#allocation2 + $0x52] sm:$0xff]  ;;  %v378_v23 = vld [vmem:[%s7355_s1 + $0xa8] sm:$0xff] }
  0x3c   : > { %635 = vmatmul.f32.gmra.mxu0 %v568_v33  ;;  %v3903_v2 = vld [vmem:[%s7356_s2 + $0x260] sm:$0xff]  ;;  %482 = vst [vmem:[#allocation2 + $0x88] sm:$0x3] %v428_v7  ;;  %v376_v14 = vld [vmem:[%s7355_s1 + $0x98] sm:$0xff]  ;;  %v4917_v24 = vmul.f32 %v378_v23, %v324_v22  ;;  %v325_v27 = vld [vmem:[%s4689_s18 + $0xb0] sm:$0xff] }
  0x3d   : > { %748 = vmatmul.f32.gmra.mxu1 %v4738_v61  ;;  %910 = vmatmul.f32.gmra.mxu2 %v843_v34  ;;  %v572_v61 = vld [vmem:[#allocation2 + $0x39] sm:$0xff]  ;;  %481 = vst [vmem:[#allocation2 + $0x80] sm:$0xff] %v4874_v1  ;;  %v4899_v15 = vmul.f32 %v376_v14, %v322_v13  ;;  %v379_v28 = vld [vmem:[%s7355_s1 + $0xb0] sm:$0xff]  ;;  %v328_v41 = vld [vmem:[%s4689_s18 + $0xc8] sm:$0xff] }
  0x3e   : > { %1283 = vmatpush.msrb.mxu0 %v3903_v2  ;;  %v3902_v16 = vld [vmem:[%s7356_s2 + $0x258] sm:$0xff]  ;;  %v377_v20 = vld [vmem:[%s7355_s1 + $0xa0] sm:$0x3]  ;;  %486 = vst [vmem:[#allocation2 + $0xa8] sm:$0xff] %v4917_v24  ;;  %v4924_v29 = vmul.f32 %v379_v28, %v325_v27  ;;  %v3901_v30 = vld [vmem:[%s7356_s2 + $0x250] sm:$0xff] }
  0x3f   : > { %1105 = vmatmul.f32.gmra.mxu3 %v4762_v8  ;;  %484 = vst [vmem:[#allocation2 + $0x98] sm:$0xff] %v4899_v15  ;;  %v431_v21 = vmul.f32 %v377_v20, %v323_v19  ;;  %v576_v25 = vld [vmem:[#allocation2 + $0x69] sm:$0xff]  ;;  %v326_v33 = vld [vmem:[%s4689_s18 + $0xb8] sm:$0x3]  ;;  %v327_v36 = vld [vmem:[%s4689_s18 + $0xc0] sm:$0xff] }
  0x40   : > { %1284 = vmatpush.msrb.mxu0 %v3902_v16  ;;  %v851_v26 = vld [vmem:[#allocation2 + $0x6a] sm:$0xff]  ;;  %487 = vst [vmem:[#allocation2 + $0xb0] sm:$0xff] %v4924_v29  ;;  %v380_v34 = vld [vmem:[%s7355_s1 + $0xb8] sm:$0x3]  ;;  %v331_v55 = vld [vmem:[%s4689_s18 + $0xe0] sm:$0xff] }
  0x41   : > { %485 = vst [vmem:[#allocation2 + $0xa0] sm:$0x3] %v431_v21  ;;  %v434_v35 = vmul.f32 %v380_v34, %v326_v33  ;;  %v382_v42 = vld [vmem:[%s7355_s1 + $0xc8] sm:$0xff]  ;;  %v330_v50 = vld [vmem:[%s4689_s18 + $0xd8] sm:$0xff]  ;;  %v385_v56 = vld [vmem:[%s7355_s1 + $0xe0] sm:$0xff] }
  0x42   : > { %1285 = vmatpush.msrb.mxu0 %v3901_v30  ;;  %v4949_v43 = vmul.f32 %v382_v42, %v328_v41  ;;  %v4974_v57 = vmul.f32 %v385_v56, %v331_v55  ;;  %v333_v0 = vld [vmem:[%s4689_s18 + $0xf0] sm:$0xff]  ;;  %v334_v5 = vld [vmem:[%s4689_s18 + $0xf8] sm:$0xff]  ;;  %v389_v13 = vld [vmem:[%s7355_s1 + $0x100] sm:$0x3] }
  0x43   : > { %488 = vst [vmem:[#allocation2 + $0xb8] sm:$0x3] %v434_v35  ;;  %v388_v6 = vld [vmem:[%s7355_s1 + $0xf8] sm:$0xff]  ;;  %v336_v16 = vld [vmem:[%s4689_s18 + $0x108] sm:$0xff]  ;;  %v337_v27 = vld [vmem:[%s4689_s18 + $0x110] sm:$0xff] }
  0x44   : > { %638 = vmatmul.f32.gmra.mxu0 %v569_v39  ;;  %v577_v31 = vld [vmem:[#allocation2 + $0x79] sm:$0xff]  ;;  %v578_v39 = vld [vmem:[#allocation2 + $0x81] sm:$0xff]  ;;  %490 = vst [vmem:[#allocation2 + $0xc8] sm:$0xff] %v4949_v43  ;;  %v4999_v7 = vmul.f32 %v388_v6, %v334_v5  ;;  %v391_v28 = vld [vmem:[%s7355_s1 + $0x110] sm:$0xff] }
  0x45   : > { %751 = vmatmul.f32.gmra.mxu1 %v4754_v3  ;;  %913 = vmatmul.f32.gmra.mxu2 %v844_v40  ;;  %v573_v3 = vld [vmem:[#allocation2 + $0x49] sm:$0xff]  ;;  %493 = vst [vmem:[#allocation2 + $0xe0] sm:$0xff] %v4974_v57  ;;  %v3898_v14 = vld [vmem:[%s7356_s2 + $0x238] sm:$0xff]  ;;  %v5026_v30 = vmul.f32 %v391_v28, %v337_v27 }
  0x46   : > { %v853_v40 = vld [vmem:[#allocation2 + $0x82] sm:$0xff]  ;;  %496 = vst [vmem:[#allocation2 + $0xf8] sm:$0xff] %v4999_v7  ;;  %v3897_v42 = vld [vmem:[%s7356_s2 + $0x230] sm:$0xff] }
  0x47   : > { %1108 = vmatmul.f32.gmra.mxu3 %v4782_v17  ;;  %v581_v58 = vld [vmem:[#allocation2 + $0xa9] sm:$0xff]  ;;  %499 = vst [vmem:[#allocation2 + $0x110] sm:$0xff] %v5026_v30 }
  0x48   : > { %v856_v59 = vld [vmem:[#allocation2 + $0xaa] sm:$0xff] }
  0x49   : > { %v340_v55 = vld [vmem:[%s4689_s18 + $0x128] sm:$0xff]  ;;  %v341_v5 = vld [vmem:[%s4689_s18 + $0x130] sm:$0x3] }
  0x4a   : > { %v394_v56 = vld [vmem:[%s7355_s1 + $0x128] sm:$0xff]  ;;  %v395_v6 = vld [vmem:[%s7355_s1 + $0x130] sm:$0x3] }
  0x4c   : > { %641 = vmatmul.f32.gmra.mxu0 %v570_v47  ;;  %v329_v47 = vld [vmem:[%s4689_s18 + $0xd0] sm:$0x3] }
  0x4d   : > { %754 = vmatmul.f32.gmra.mxu1 %v4762_v8  ;;  %916 = vmatmul.f32.gmra.mxu2 %v845_v48  ;;  %v321_v8 = vld [vmem:[%s4689_s18 + $0x90] sm:$0xff] }
  0x4e   : > { %v4892_v10 = vmul.f32 %v375_v9, %v321_v8  ;;  %v383_v48 = vld [vmem:[%s7355_s1 + $0xd0] sm:$0x3] }
  0x4f   : > { %1111 = vmatmul.f32.gmra.mxu3 %v4784_v18  ;;  %v437_v49 = vmul.f32 %v383_v48, %v329_v47 }
  0x50   : > { %483 = vst [vmem:[#allocation2 + $0x90] sm:$0xff] %v4892_v10 }
  0x51   : > { %491 = vst [vmem:[#allocation2 + $0xd0] sm:$0x3] %v437_v49 }
  0x54   : > { %644 = vmatmul.f32.gmra.mxu0 %v571_v53  ;;  %v580_v53 = vld [vmem:[#allocation2 + $0x99] sm:$0xff] }
  0x55   : > { %757 = vmatmul.f32.gmra.mxu1 %v4782_v17  ;;  %919 = vmatmul.f32.gmra.mxu2 %v846_v54  ;;  %v575_v17 = vld [vmem:[#allocation2 + $0x61] sm:$0xff] }
  0x56   : > { %v855_v54 = vld [vmem:[#allocation2 + $0x9a] sm:$0xff] }
  0x57   : > { %1114 = vmatmul.f32.gmra.mxu3 %v4816_v32  ;;  %v579_v44 = vld [vmem:[#allocation2 + $0x91] sm:$0xff] }
  0x58   : > { %v854_v45 = vld [vmem:[#allocation2 + $0x92] sm:$0xff] }
  0x5c   : > { %647 = vmatmul.f32.gmra.mxu0 %v572_v61  ;;  %v386_v61 = vld [vmem:[%s7355_s1 + $0xe8] sm:$0x3] }
  0x5d   : > { %760 = vmatmul.f32.gmra.mxu1 %v4784_v18  ;;  %922 = vmatmul.f32.gmra.mxu2 %v847_v62  ;;  %v850_v18 = vld [vmem:[#allocation2 + $0x62] sm:$0xff] }
  0x5e   : > { %v3899_v62 = vld [vmem:[%s7356_s2 + $0x240] sm:$0xff] }
  0x5f   : > { %1117 = vmatmul.f32.gmra.mxu3 %v4824_v37 }
  0x64   : > { %650 = vmatmul.f32.gmra.mxu0 %v573_v3  ;;  %v582_v3 = vld [vmem:[#allocation2 + $0xb1] sm:$0xff] }
  0x65   : > { %763 = vmatmul.f32.gmra.mxu1 %v4816_v32  ;;  %925 = vmatmul.f32.gmra.mxu2 %v848_v4  ;;  %v852_v32 = vld [vmem:[#allocation2 + $0x7a] sm:$0xff]  ;;  %v857_v4 = vld [vmem:[#allocation2 + $0xb2] sm:$0xff] }
  0x67   : > { %1120 = vmatmul.f32.gmra.mxu3 %v4842_v46 }
  0x6c   : > { %653 = vmatmul.f32.gmra.mxu0 %v574_v11 }
  0x6d   : > { %766 = vmatmul.f32.gmra.mxu1 %v4824_v37  ;;  %928 = vmatmul.f32.gmra.mxu2 %v849_v12  ;;  %v381_v37 = vld [vmem:[%s7355_s1 + $0xc0] sm:$0xff] }
  0x6e   : > { %v4942_v38 = vmul.f32 %v381_v37, %v327_v36  ;;  %v335_v12 = vld [vmem:[%s4689_s18 + $0x100] sm:$0x3] }
  0x6f   : > { %1123 = vmatmul.f32.gmra.mxu3 %v4849_v51 }
  0x70   : > { %489 = vst [vmem:[#allocation2 + $0xc0] sm:$0xff] %v4942_v38 }
  0x74   : > { %656 = vmatmul.f32.gmra.mxu0 %v575_v17  ;;  %v390_v17 = vld [vmem:[%s7355_s1 + $0x108] sm:$0xff] }
  0x75   : > { %769 = vmatmul.f32.gmra.mxu1 %v4842_v46  ;;  %931 = vmatmul.f32.gmra.mxu2 %v850_v18  ;;  %v3900_v46 = vld [vmem:[%s7356_s2 + $0x248] sm:$0xff]  ;;  %v5017_v18 = vmul.f32 %v390_v17, %v336_v16 }
  0x76   : > { %1286 = vmatpush.msrb.mxu0 %v3900_v46 }
  0x77   : > { %1126 = vmatmul.f32.gmra.mxu3 %v4867_v60  ;;  %v858_v11 = vld [vmem:[#allocation2 + $0xc2] sm:$0xff]  ;;  %498 = vst [vmem:[#allocation2 + $0x108] sm:$0xff] %v5017_v18 }
  0x78   : > { %1287 = vmatpush.msrb.mxu0 %v3899_v62 }
  0x7a   : > { %1288 = vmatpush.msrb.mxu0 %v3898_v14 }
  0x7c   : > { %659 = vmatmul.f32.gmra.mxu0 %v576_v25 }
  0x7d   : > { %772 = vmatmul.f32.gmra.mxu1 %v4849_v51  ;;  %934 = vmatmul.f32.gmra.mxu2 %v851_v26  ;;  %v384_v51 = vld [vmem:[%s7355_s1 + $0xd8] sm:$0xff]  ;;  %v859_v26 = vld [vmem:[#allocation2 + $0xca] sm:$0xff] }
  0x7e   : > { %v4967_v52 = vmul.f32 %v384_v51, %v330_v50  ;;  %1289 = vmatpush.msrb.mxu0 %v3897_v42 }
  0x7f   : > { %1129 = vmatmul.f32.gmra.mxu3 %v4874_v1 }
  0x80   : > { %492 = vst [vmem:[#allocation2 + $0xd8] sm:$0xff] %v4967_v52 }
  0x84   : > { %662 = vmatmul.f32.gmra.mxu0 %v577_v31 }
  0x85   : > { %775 = vmatmul.f32.gmra.mxu1 %v4867_v60  ;;  %937 = vmatmul.f32.gmra.mxu2 %v852_v32  ;;  %v332_v60 = vld [vmem:[%s4689_s18 + $0xe8] sm:$0x3] }
  0x86   : > { %v440_v63 = vmul.f32 %v386_v61, %v332_v60 }
  0x87   : > { %1132 = vmatmul.f32.gmra.mxu3 %v4892_v10  ;;  %v585_v36 = vld [vmem:[#allocation2 + $0xd9] sm:$0xff] }
  0x88   : > { %494 = vst [vmem:[#allocation2 + $0xe8] sm:$0x3] %v440_v63 }
  0x8c   : > { %665 = vmatmul.f32.gmra.mxu0 %v578_v39  ;;  %v338_v39 = vld [vmem:[%s4689_s18 + $0x118] sm:$0x3] }
  0x8d   : > { %778 = vmatmul.f32.gmra.mxu1 %v4874_v1  ;;  %940 = vmatmul.f32.gmra.mxu2 %v853_v40  ;;  %v387_v1 = vld [vmem:[%s7355_s1 + $0xf0] sm:$0xff]  ;;  %v392_v40 = vld [vmem:[%s7355_s1 + $0x118] sm:$0x3] }
  0x8e   : > { %v4992_v2 = vmul.f32 %v387_v1, %v333_v0 }
  0x8f   : > { %1135 = vmatmul.f32.gmra.mxu3 %v4899_v15 }
  0x90   : > { %495 = vst [vmem:[#allocation2 + $0xf0] sm:$0xff] %v4992_v2 }
  0x94   : > { %668 = vmatmul.f32.gmra.mxu0 %v579_v44  ;;  %v339_v44 = vld [vmem:[%s4689_s18 + $0x120] sm:$0xff] }
  0x95   : > { %781 = vmatmul.f32.gmra.mxu1 %v4892_v10  ;;  %943 = vmatmul.f32.gmra.mxu2 %v854_v45  ;;  %v583_v10 = vld [vmem:[#allocation2 + $0xc1] sm:$0xff] }
  0x96   : > { %v393_v45 = vld [vmem:[%s7355_s1 + $0x120] sm:$0xff] }
  0x97   : > { %1138 = vmatmul.f32.gmra.mxu3 %v4917_v24  ;;  %v5046_v46 = vmul.f32 %v393_v45, %v339_v44  ;;  %v587_v1 = vld [vmem:[#allocation2 + $0xf1] sm:$0xff] }
  0x99   : > { %501 = vst [vmem:[#allocation2 + $0x120] sm:$0xff] %v5046_v46 }
  0x9c   : > { %671 = vmatmul.f32.gmra.mxu0 %v580_v53 }
  0x9d   : > { %784 = vmatmul.f32.gmra.mxu1 %v4899_v15  ;;  %946 = vmatmul.f32.gmra.mxu2 %v855_v54  ;;  %v443_v15 = vmul.f32 %v389_v13, %v335_v12  ;;  %v861_v54 = vld [vmem:[#allocation2 + $0xe2] sm:$0xff] }
  0x9f   : > { %1141 = vmatmul.f32.gmra.mxu3 %v4924_v29  ;;  %497 = vst [vmem:[#allocation2 + $0x100] sm:$0x3] %v443_v15 }
  0xa4   : > { %674 = vmatmul.f32.gmra.mxu0 %v581_v58 }
  0xa5   : > { %787 = vmatmul.f32.gmra.mxu1 %v4917_v24  ;;  %949 = vmatmul.f32.gmra.mxu2 %v856_v59  ;;  %v584_v24 = vld [vmem:[#allocation2 + $0xc9] sm:$0xff]  ;;  %v5055_v59 = vmul.f32 %v394_v56, %v340_v55 }
  0xa6   : > { %v588_v17 = vld [vmem:[#allocation2 + $0xf9] sm:$0xff] }
  0xa7   : > { %1144 = vmatmul.f32.gmra.mxu3 %v4942_v38  ;;  %502 = vst [vmem:[#allocation2 + $0x128] sm:$0xff] %v5055_v59 }
  0xac   : > { %677 = vmatmul.f32.gmra.mxu0 %v582_v3 }
  0xad   : > { %790 = vmatmul.f32.gmra.mxu1 %v4924_v29  ;;  %952 = vmatmul.f32.gmra.mxu2 %v857_v4  ;;  %v862_v4 = vld [vmem:[#allocation2 + $0xf2] sm:$0xff] }
  0xaf   : > { %1147 = vmatmul.f32.gmra.mxu3 %v4949_v43 }
  0xb1   : > { %v633_v8 = vpop.f32.mrf.mxu0 }
  0xb2   : > { %v746_v9 = vpop.f32.mrf.mxu1 }
  0xb3   : > { %v747_v19 = vadd.f32 %v746_v9, %v633_v8  ;;  %v3896_v8 = vld [vmem:[%s7356_s2 + $0x228] sm:$0xff]  ;;  %v449_v9 = vmul.f32 %v395_v6, %v341_v5  ;;  %v3894_v5 = vld [vmem:[%s7356_s2 + $0x218] sm:$0xff] }
  0xb4   : > { %680 = vmatmul.f32.gmra.mxu0 %v583_v10  ;;  %v342_v10 = vld [vmem:[%s4689_s18 + $0x138] sm:$0xff] }
  0xb5   : > { %793 = vmatmul.f32.gmra.mxu1 %v4942_v38  ;;  %955 = vmatmul.f32.gmra.mxu2 %v858_v11  ;;  %v860_v38 = vld [vmem:[#allocation2 + $0xda] sm:$0xff]  ;;  %503 = vst [vmem:[#allocation2 + $0x130] sm:$0x3] %v449_v9 }
  0xb6   : > { %1290 = vmatpush.msrb.mxu0 %v3896_v8  ;;  %v396_v11 = vld [vmem:[%s7355_s1 + $0x138] sm:$0xff]  ;;  %v348_v8 = vld [vmem:[%s4689_s18 + $0x168] sm:$0xff] }
  0xb7   : > { %1150 = vmatmul.f32.gmra.mxu3 %v4967_v52  ;;  %v5075_v12 = vmul.f32 %v396_v11, %v342_v10  ;;  %v3938_v9 = vld [vmem:[%s7356_s2 + $0x378] sm:$0xff]  ;;  %v402_v10 = vld [vmem:[%s7355_s1 + $0x168] sm:$0xff] }
  0xb8   : > { %v908_v20 = vpop.f32.mrf.mxu2  ;;  %1669 = vmatpush.msrb.mxu2 %v3938_v9  ;;  %v5136_v11 = vmul.f32 %v402_v10, %v348_v8  ;;  %v3930_v9 = vld [vmem:[%s7356_s2 + $0x338] sm:$0xff]  ;;  %v3947_v10 = vld [vmem:[%s7356_s2 + $0x3c0] sm:$0xff] }
  0xb9   : > { %v1004_v21 = vadd.f32 %v908_v20, %v747_v19  ;;  %v636_v22 = vpop.f32.mrf.mxu0  ;;  %504 = vst [vmem:[#allocation2 + $0x138] sm:$0xff] %v5075_v12  ;;  %v863_v20 = vld [vmem:[#allocation2 + $0xfa] sm:$0xff] }
  0xba   : > { %v749_v23 = vpop.f32.mrf.mxu1  ;;  %v1103_v25 = vpop.f32.mrf.mxu3  ;;  %510 = vst [vmem:[#allocation2 + $0x168] sm:$0xff] %v5136_v11 }
  0xbb   : > { %v5024_v29 = vadd.f32 %v1103_v25, %v1004_v21  ;;  %v750_v31 = vadd.f32 %v749_v23, %v636_v22  ;;  %v343_v21 = vld [vmem:[%s4689_s18 + $0x140] sm:$0xff] }
  0xbc   : > { %683 = vmatmul.f32.gmra.mxu0 %v584_v24  ;;  %v397_v22 = vld [vmem:[%s7355_s1 + $0x140] sm:$0xff] }
  0xbd   : > { %796 = vmatmul.f32.gmra.mxu1 %v4949_v43  ;;  %958 = vmatmul.f32.gmra.mxu2 %v859_v26  ;;  %v446_v43 = vmul.f32 %v392_v40, %v338_v39  ;;  %v5084_v24 = vmul.f32 %v397_v22, %v343_v21  ;;  %v345_v39 = vld [vmem:[%s4689_s18 + $0x150] sm:$0xff]  ;;  %v3936_v22 = vld [vmem:[%s7356_s2 + $0x368] sm:$0xff] }
  0xbe   : > { %v399_v40 = vld [vmem:[%s7355_s1 + $0x150] sm:$0xff] }
  0xbf   : > { %1153 = vmatmul.f32.gmra.mxu3 %v4974_v57  ;;  %500 = vst [vmem:[#allocation2 + $0x118] sm:$0x3] %v446_v43  ;;  %v5104_v42 = vmul.f32 %v399_v40, %v345_v39  ;;  %v3921_v21 = vld [vmem:[%s7356_s2 + $0x2f0] sm:$0xff]  ;;  %v3918_v40 = vld [vmem:[%s7356_s2 + $0x2d8] sm:$0xff] }
  0xc0   : > { %v911_v32 = vpop.f32.mrf.mxu2  ;;  %505 = vst [vmem:[#allocation2 + $0x140] sm:$0xff] %v5084_v24 }
  0xc1   : > { %v1005_v33 = vadd.f32 %v911_v32, %v750_v31  ;;  %v639_v34 = vpop.f32.mrf.mxu0  ;;  %v589_v32 = vld [vmem:[#allocation2 + $0x109] sm:$0xff]  ;;  %507 = vst [vmem:[#allocation2 + $0x150] sm:$0xff] %v5104_v42 }
  0xc2   : > { %v752_v35 = vpop.f32.mrf.mxu1  ;;  %v1106_v37 = vpop.f32.mrf.mxu3 }
  0xc3   : > { %v5035_v41 = vadd.f32 %v1106_v37, %v1005_v33  ;;  %v753_v47 = vadd.f32 %v752_v35, %v639_v34  ;;  %v864_v34 = vld [vmem:[#allocation2 + $0x10a] sm:$0xff]  ;;  %v344_v35 = vld [vmem:[%s4689_s18 + $0x148] sm:$0x3]  ;;  %v3895_v37 = vld [vmem:[%s7356_s2 + $0x220] sm:$0xff] }
  0xc4   : > { %686 = vmatmul.f32.gmra.mxu0 %v585_v36  ;;  %v398_v36 = vld [vmem:[%s7355_s1 + $0x148] sm:$0x3] }
  0xc5   : > { %799 = vmatmul.f32.gmra.mxu1 %v4967_v52  ;;  %961 = vmatmul.f32.gmra.mxu2 %v860_v38  ;;  %v586_v52 = vld [vmem:[#allocation2 + $0xe1] sm:$0xff]  ;;  %v452_v38 = vmul.f32 %v398_v36, %v344_v35 }
  0xc6   : > { %1291 = vmatpush.msrb.mxu0 %v3895_v37  ;;  %v3952_v36 = vld [vmem:[%s7356_s2 + $0x3e8] sm:$0xff]  ;;  %v3919_v37 = vld [vmem:[%s7356_s2 + $0x2e0] sm:$0xff] }
  0xc7   : > { %1156 = vmatmul.f32.gmra.mxu3 %v4992_v2  ;;  %506 = vst [vmem:[#allocation2 + $0x148] sm:$0x3] %v452_v38  ;;  %v3934_v38 = vld [vmem:[%s7356_s2 + $0x358] sm:$0xff] }
  0xc8   : > { %v914_v48 = vpop.f32.mrf.mxu2  ;;  %1292 = vmatpush.msrb.mxu0 %v3894_v5  ;;  %v351_v5 = vld [vmem:[%s4689_s18 + $0x180] sm:$0xff] }
  0xc9   : > { %v1006_v49 = vadd.f32 %v914_v48, %v753_v47  ;;  %v642_v50 = vpop.f32.mrf.mxu0  ;;  %v590_v48 = vld [vmem:[#allocation2 + $0x111] sm:$0xff] }
  0xca   : > { %v755_v51 = vpop.f32.mrf.mxu1  ;;  %v1109_v53 = vpop.f32.mrf.mxu3 }
  0xcb   : > { %v5053_v58 = vadd.f32 %v1109_v53, %v1006_v49  ;;  %v756_v60 = vadd.f32 %v755_v51, %v642_v50  ;;  %v865_v50 = vld [vmem:[#allocation2 + $0x112] sm:$0xff] }
  0xcc   : > { %689 = vmatmul.f32.gmra.mxu0 %v586_v52  ;;  %v346_v51 = vld [vmem:[%s4689_s18 + $0x158] sm:$0xff] }
  0xcd   : > { %802 = vmatmul.f32.gmra.mxu1 %v4974_v57  ;;  %964 = vmatmul.f32.gmra.mxu2 %v861_v54  ;;  %v400_v52 = vld [vmem:[%s7355_s1 + $0x158] sm:$0xff] }
  0xce   : > { %v5113_v54 = vmul.f32 %v400_v52, %v346_v51  ;;  %v3917_v51 = vld [vmem:[%s7356_s2 + $0x2d0] sm:$0xff] }
  0xcf   : > { %1159 = vmatmul.f32.gmra.mxu3 %v4999_v7 }
  0xd0   : > { %v917_v61 = vpop.f32.mrf.mxu2  ;;  %508 = vst [vmem:[#allocation2 + $0x158] sm:$0xff] %v5113_v54 }
  0xd1   : > { %v1007_v62 = vadd.f32 %v917_v61, %v756_v60  ;;  %v645_v63 = vpop.f32.mrf.mxu0 }
  0xd2   : > { %v758_v0 = vpop.f32.mrf.mxu1  ;;  %v1112_v3 = vpop.f32.mrf.mxu3 }
  0xd3   : > { %v5064_v57 = vadd.f32 %v1112_v3, %v1007_v62  ;;  %v759_v13 = vadd.f32 %v758_v0, %v645_v63  ;;  %v591_v63 = vld [vmem:[#allocation2 + $0x121] sm:$0xff] }
  0xd4   : > { %692 = vmatmul.f32.gmra.mxu0 %v587_v1  ;;  %v866_v1 = vld [vmem:[#allocation2 + $0x122] sm:$0xff]  ;;  %v347_v3 = vld [vmem:[%s4689_s18 + $0x160] sm:$0x3] }
  0xd5   : > { %805 = vmatmul.f32.gmra.mxu1 %v4992_v2  ;;  %967 = vmatmul.f32.gmra.mxu2 %v862_v4  ;;  %v401_v4 = vld [vmem:[%s7355_s1 + $0x160] sm:$0x3] }
  0xd6   : > { %v455_v6 = vmul.f32 %v401_v4, %v347_v3  ;;  %v3931_v3 = vld [vmem:[%s7356_s2 + $0x340] sm:$0xff]  ;;  %v3948_v4 = vld [vmem:[%s7356_s2 + $0x3c8] sm:$0xff] }
  0xd7   : > { %1162 = vmatmul.f32.gmra.mxu3 %v5017_v18 }
  0xd8   : > { %v920_v14 = vpop.f32.mrf.mxu2  ;;  %509 = vst [vmem:[#allocation2 + $0x160] sm:$0x3] %v455_v6  ;;  %v405_v6 = vld [vmem:[%s7355_s1 + $0x180] sm:$0xff] }
  0xd9   : > { %v1008_v15 = vadd.f32 %v920_v14, %v759_v13  ;;  %v648_v16 = vpop.f32.mrf.mxu0  ;;  %v3937_v14 = vld [vmem:[%s7356_s2 + $0x370] sm:$0xff] }
  0xda   : > { %v761_v2 = vpop.f32.mrf.mxu1  ;;  %v1115_v19 = vpop.f32.mrf.mxu3  ;;  %1670 = vmatpush.msrb.mxu2 %v3937_v14  ;;  %v3914_v14 = vld [vmem:[%s7356_s2 + $0x2b8] sm:$0xff] }
  0xdb   : > { %v5082_v23 = vadd.f32 %v1115_v19, %v1008_v15  ;;  %v762_v25 = vadd.f32 %v761_v2, %v648_v16  ;;  %v3954_v15 = vld [vmem:[%s7356_s2 + $0x3f8] sm:$0xff]  ;;  %v592_v2 = vld [vmem:[#allocation2 + $0x129] sm:$0xff] }
  0xdc   : > { %695 = vmatmul.f32.gmra.mxu0 %v588_v17  ;;  %1863 = vmatpush.msrb.mxu3 %v3954_v15 }
  0xdd   : > { %808 = vmatmul.f32.gmra.mxu1 %v4999_v7  ;;  %970 = vmatmul.f32.gmra.mxu2 %v863_v20 }
  0xde   : > { %1671 = vmatpush.msrb.mxu2 %v3936_v22 }
  0xdf   : > { %1165 = vmatmul.f32.gmra.mxu3 %v5026_v30 }
  0xe0   : > { %v923_v26 = vpop.f32.mrf.mxu2 }
  0xe1   : > { %v1009_v27 = vadd.f32 %v923_v26, %v762_v25  ;;  %v651_v28 = vpop.f32.mrf.mxu0  ;;  %v3953_v25 = vld [vmem:[%s7356_s2 + $0x3f0] sm:$0xff] }
  0xe2   : > { %v764_v31 = vpop.f32.mrf.mxu1  ;;  %v1118_v33 = vpop.f32.mrf.mxu3  ;;  %1864 = vmatpush.msrb.mxu3 %v3953_v25  ;;  %v3929_v25 = vld [vmem:[%s7356_s2 + $0x330] sm:$0xff] }
  0xe3   : > { %v5093_v7 = vadd.f32 %v1118_v33, %v1009_v27  ;;  %v765_v43 = vadd.f32 %v764_v31, %v651_v28  ;;  %v867_v27 = vld [vmem:[#allocation2 + $0x12a] sm:$0xff] }
  0xe4   : > { %698 = vmatmul.f32.gmra.mxu0 %v589_v32  ;;  %v349_v28 = vld [vmem:[%s4689_s18 + $0x170] sm:$0xff]  ;;  %v3920_v33 = vld [vmem:[%s7356_s2 + $0x2e8] sm:$0xff]  ;;  %1865 = vmatpush.msrb.mxu3 %v3952_v36 }
  0xe5   : > { %811 = vmatmul.f32.gmra.mxu1 %v5017_v18  ;;  %973 = vmatmul.f32.gmra.mxu2 %v864_v34  ;;  %v403_v31 = vld [vmem:[%s7355_s1 + $0x170] sm:$0xff]  ;;  %v3935_v34 = vld [vmem:[%s7356_s2 + $0x360] sm:$0xff] }
  0xe6   : > { %v5169_v35 = vmul.f32 %v403_v31, %v349_v28  ;;  %1672 = vmatpush.msrb.mxu2 %v3935_v34  ;;  %v352_v28 = vld [vmem:[%s4689_s18 + $0x188] sm:$0xff] }
  0xe7   : > { %1168 = vmatmul.f32.gmra.mxu3 %v5046_v46  ;;  %v3928_v31 = vld [vmem:[%s7356_s2 + $0x328] sm:$0xff] }
  0xe8   : > { %v926_v44 = vpop.f32.mrf.mxu2  ;;  %511 = vst [vmem:[#allocation2 + $0x170] sm:$0xff] %v5169_v35  ;;  %1673 = vmatpush.msrb.mxu2 %v3934_v38  ;;  %v406_v34 = vld [vmem:[%s7355_s1 + $0x188] sm:$0xff] }
  0xe9   : > { %v1010_v45 = vadd.f32 %v926_v44, %v765_v43  ;;  %v654_v47 = vpop.f32.mrf.mxu0  ;;  %v3933_v43 = vld [vmem:[%s7356_s2 + $0x350] sm:$0xff]  ;;  %v5275_v38 = vmul.f32 %v406_v34, %v352_v28 }
  0xea   : > { %v767_v18 = vpop.f32.mrf.mxu1  ;;  %v1121_v49 = vpop.f32.mrf.mxu3  ;;  %1674 = vmatpush.msrb.mxu2 %v3933_v43 }
  0xeb   : > { %v5111_v53 = vadd.f32 %v1121_v49, %v1010_v45  ;;  %v768_v55 = vadd.f32 %v767_v18, %v654_v47  ;;  %v3950_v45 = vld [vmem:[%s7356_s2 + $0x3d8] sm:$0xff]  ;;  %514 = vst [vmem:[#allocation2 + $0x188] sm:$0xff] %v5275_v38 }
  0xec   : > { %701 = vmatmul.f32.gmra.mxu0 %v590_v48  ;;  %v593_v49 = vld [vmem:[#allocation2 + $0x139] sm:$0xff] }
  0xed   : > { %814 = vmatmul.f32.gmra.mxu1 %v5026_v30  ;;  %976 = vmatmul.f32.gmra.mxu2 %v865_v50  ;;  %v868_v50 = vld [vmem:[#allocation2 + $0x13a] sm:$0xff] }
  0xef   : > { %1171 = vmatmul.f32.gmra.mxu3 %v5055_v59 }
  0xf0   : > { %v929_v56 = vpop.f32.mrf.mxu2 }
  0xf1   : > { %v1011_v60 = vadd.f32 %v929_v56, %v768_v55  ;;  %v657_v61 = vpop.f32.mrf.mxu0  ;;  %v3949_v55 = vld [vmem:[%s7356_s2 + $0x3d0] sm:$0xff]  ;;  %v350_v56 = vld [vmem:[%s4689_s18 + $0x178] sm:$0x3] }
  0xf2   : > { %v770_v62 = vpop.f32.mrf.mxu1  ;;  %v1124_v0 = vpop.f32.mrf.mxu3 }
  0xf3   : > { %v5122_v30 = vadd.f32 %v1124_v0, %v1011_v60  ;;  %v771_v13 = vadd.f32 %v770_v62, %v657_v61  ;;  %v404_v60 = vld [vmem:[%s7355_s1 + $0x178] sm:$0x3]  ;;  %v3932_v62 = vld [vmem:[%s7356_s2 + $0x348] sm:$0xff]  ;;  %v3893_v0 = vld [vmem:[%s7356_s2 + $0x210] sm:$0xff] }
  0xf4   : > { %704 = vmatmul.f32.gmra.mxu0 %v591_v63  ;;  %v458_v63 = vmul.f32 %v404_v60, %v350_v56  ;;  %1675 = vmatpush.msrb.mxu2 %v3932_v62  ;;  %v3909_v56 = vld [vmem:[%s7356_s2 + $0x290] sm:$0xff]  ;;  %v3891_v62 = vld [vmem:[%s7356_s2 + $0x200] sm:$0xff] }
  0xf5   : > { %817 = vmatmul.f32.gmra.mxu1 %v5046_v46  ;;  %979 = vmatmul.f32.gmra.mxu2 %v866_v1  ;;  %v3922_v46 = vld [vmem:[%s7356_s2 + $0x2f8] sm:$0xff]  ;;  %v3916_v1 = vld [vmem:[%s7356_s2 + $0x2c8] sm:$0xff]  ;;  %v3925_v60 = vld [vmem:[%s7356_s2 + $0x310] sm:$0xff] }
  0xf6   : > { %1474 = vmatpush.msrb.mxu1 %v3922_v46  ;;  %512 = vst [vmem:[#allocation2 + $0x178] sm:$0x3] %v458_v63  ;;  %1293 = vmatpush.msrb.mxu0 %v3893_v0  ;;  %v3908_v63 = vld [vmem:[%s7356_s2 + $0x288] sm:$0xff] }
  0xf7   : > { %1174 = vmatmul.f32.gmra.mxu3 %v5075_v12  ;;  %1676 = vmatpush.msrb.mxu2 %v3931_v3 }
  0xf8   : > { %v932_v16 = vpop.f32.mrf.mxu2  ;;  %1475 = vmatpush.msrb.mxu1 %v3921_v21  ;;  %v3946_v21 = vld [vmem:[%s7356_s2 + $0x3b8] sm:$0xff] }
  0xf9   : > { %v1012_v17 = vadd.f32 %v932_v16, %v771_v13  ;;  %v660_v19 = vpop.f32.mrf.mxu0  ;;  %v5237_v13 = vmul.f32 %v405_v6, %v351_v5  ;;  %1677 = vmatpush.msrb.mxu2 %v3930_v9  ;;  %v596_v9 = vld [vmem:[#allocation2 + $0x159] sm:$0xff] }
  0xfa   : > { %v773_v20 = vpop.f32.mrf.mxu1  ;;  %v1127_v26 = vpop.f32.mrf.mxu3  ;;  %1476 = vmatpush.msrb.mxu1 %v3920_v33  ;;  %v3944_v33 = vld [vmem:[%s7356_s2 + $0x3a8] sm:$0xff] }
  0xfb   : > { %v5161_v32 = vadd.f32 %v1127_v26, %v1012_v17  ;;  %v774_v39 = vadd.f32 %v773_v20, %v660_v19  ;;  %v594_v17 = vld [vmem:[#allocation2 + $0x141] sm:$0xff]  ;;  %513 = vst [vmem:[#allocation2 + $0x180] sm:$0xff] %v5237_v13  ;;  %v3913_v26 = vld [vmem:[%s7356_s2 + $0x2b0] sm:$0xff]  ;;  %1678 = vmatpush.msrb.mxu2 %v3929_v25 }
  0xfc   : > { %707 = vmatmul.f32.gmra.mxu0 %v592_v2  ;;  %1477 = vmatpush.msrb.mxu1 %v3919_v37  ;;  %v869_v20 = vld [vmem:[#allocation2 + $0x142] sm:$0xff] }
  0xfd   : > { %820 = vmatmul.f32.gmra.mxu1 %v5055_v59  ;;  %982 = vmatmul.f32.gmra.mxu2 %v867_v27  ;;  %v3951_v59 = vld [vmem:[%s7356_s2 + $0x3e0] sm:$0xff]  ;;  %v3945_v27 = vld [vmem:[%s7356_s2 + $0x3b0] sm:$0xff] }
  0xfe   : > { %1866 = vmatpush.msrb.mxu3 %v3951_v59  ;;  %1478 = vmatpush.msrb.mxu1 %v3918_v40  ;;  %v3927_v37 = vld [vmem:[%s7356_s2 + $0x320] sm:$0xff]  ;;  %v597_v25 = vld [vmem:[#allocation2 + $0x169] sm:$0xff] }
  0xff   : > { %1177 = vmatmul.f32.gmra.mxu3 %v5084_v24  ;;  %1679 = vmatpush.msrb.mxu2 %v3928_v31  ;;  %v3943_v40 = vld [vmem:[%s7356_s2 + $0x3a0] sm:$0xff] }
 0x100   : > { %v935_v44 = vpop.f32.mrf.mxu2  ;;  %1867 = vmatpush.msrb.mxu3 %v3950_v45  ;;  %1479 = vmatpush.msrb.mxu1 %v3917_v51 }
 0x101   : > { %v1013_v47 = vadd.f32 %v935_v44, %v774_v39  ;;  %v663_v18 = vpop.f32.mrf.mxu0  ;;  %v3911_v39 = vld [vmem:[%s7356_s2 + $0x2a0] sm:$0xff]  ;;  %1680 = vmatpush.msrb.mxu2 %v3927_v37 }
 0x102   : > { %v776_v48 = vpop.f32.mrf.mxu1  ;;  %v1130_v52 = vpop.f32.mrf.mxu3  ;;  %1868 = vmatpush.msrb.mxu3 %v3949_v55  ;;  %1480 = vmatpush.msrb.mxu1 %v3916_v1  ;;  %v3942_v55 = vld [vmem:[%s7356_s2 + $0x398] sm:$0xff]  ;;  %v3924_v1 = vld [vmem:[%s7356_s2 + $0x308] sm:$0xff] }
 0x103   : > { %v5205_v61 = vadd.f32 %v1130_v52, %v1013_v47  ;;  %v777_v8 = vadd.f32 %v776_v48, %v663_v18  ;;  %v595_v47 = vld [vmem:[#allocation2 + $0x151] sm:$0xff]  ;;  %v3892_v18 = vld [vmem:[%s7356_s2 + $0x208] sm:$0xff] }
 0x104   : > { %710 = vmatmul.f32.gmra.mxu0 %v593_v49  ;;  %1869 = vmatpush.msrb.mxu3 %v3948_v4  ;;  %v870_v49 = vld [vmem:[#allocation2 + $0x152] sm:$0xff]  ;;  %v3940_v4 = vld [vmem:[%s7356_s2 + $0x388] sm:$0xff] }
 0x105   : > { %823 = vmatmul.f32.gmra.mxu1 %v5075_v12  ;;  %985 = vmatmul.f32.gmra.mxu2 %v868_v50  ;;  %v3915_v12 = vld [vmem:[%s7356_s2 + $0x2c0] sm:$0xff]  ;;  %v3910_v50 = vld [vmem:[%s7356_s2 + $0x298] sm:$0xff] }
 0x106   : > { %1481 = vmatpush.msrb.mxu1 %v3915_v12  ;;  %1870 = vmatpush.msrb.mxu3 %v3947_v10  ;;  %v3926_v52 = vld [vmem:[%s7356_s2 + $0x318] sm:$0xff]  ;;  %v3907_v12 = vld [vmem:[%s7356_s2 + $0x280] sm:$0xff] }
 0x107   : > { %1180 = vmatmul.f32.gmra.mxu3 %v5104_v42  ;;  %1294 = vmatpush.msrb.mxu0 %v3892_v18 }
 0x108   : > { %v938_v46 = vpop.f32.mrf.mxu2  ;;  %1482 = vmatpush.msrb.mxu1 %v3914_v14  ;;  %1871 = vmatpush.msrb.mxu3 %v3946_v21  ;;  %v3939_v14 = vld [vmem:[%s7356_s2 + $0x380] sm:$0xff] }
 0x109   : > { %v1014_v15 = vadd.f32 %v938_v46, %v777_v8  ;;  %v666_v16 = vpop.f32.mrf.mxu0  ;;  %1681 = vmatpush.msrb.mxu2 %v3926_v52  ;;  %1295 = vmatpush.msrb.mxu0 %v3891_v62  ;;  %v871_v46 = vld [vmem:[#allocation2 + $0x15a] sm:$0xff] }
 0x10a   : > { %v779_v2 = vpop.f32.mrf.mxu1  ;;  %v1133_v19 = vpop.f32.mrf.mxu3  ;;  %1483 = vmatpush.msrb.mxu1 %v3913_v26  ;;  %1872 = vmatpush.msrb.mxu3 %v3945_v27  ;;  %v872_v27 = vld [vmem:[#allocation2 + $0x16a] sm:$0xff]  ;;  %v3970_v52 = vld [vmem:[%s7356_s2 + $0x478] sm:$0xff]  ;;  %v1232_v62 = vld [vmem:[#allocation2 + $0x21] sm:$0xff] }
 0x10b   : > { %v5246_v22 = vadd.f32 %v1133_v19, %v1014_v15  ;;  %v780_v36 = vadd.f32 %v779_v2, %v666_v16  ;;  %1682 = vmatpush.msrb.mxu2 %v3925_v60  ;;  %v3923_v16 = vld [vmem:[%s7356_s2 + $0x300] sm:$0xff]  ;;  %2057 = vmatpush.msra.mxu0 %v3970_v52 }
 0x10c   : > { %713 = vmatmul.f32.gmra.mxu0 %v594_v17  ;;  %1873 = vmatpush.msrb.mxu3 %v3944_v33 }
 0x10d   : > { %826 = vmatmul.f32.gmra.mxu1 %v5084_v24  ;;  %988 = vmatmul.f32.gmra.mxu2 %v869_v20  ;;  %v3912_v24 = vld [vmem:[%s7356_s2 + $0x2a8] sm:$0xff] }
 0x10e   : > { %1484 = vmatpush.msrb.mxu1 %v3912_v24  ;;  %1874 = vmatpush.msrb.mxu3 %v3943_v40 }
 0x10f   : > { %1183 = vmatmul.f32.gmra.mxu3 %v5113_v54  ;;  %1683 = vmatpush.msrb.mxu2 %v3924_v1 }
 0x110   : > { %v941_v59 = vpop.f32.mrf.mxu2  ;;  %1485 = vmatpush.msrb.mxu1 %v3911_v39  ;;  %1875 = vmatpush.msrb.mxu3 %v3942_v55 }
 0x111   : > { %v1015_v43 = vadd.f32 %v941_v59, %v780_v36  ;;  %v669_v44 = vpop.f32.mrf.mxu0  ;;  %1684 = vmatpush.msrb.mxu2 %v3923_v16  ;;  %v5338_v36 = vld [vmem:[#allocation2 + $0x171] sm:$0xff]  ;;  %v1816_v16 = vld [vmem:[#allocation2 + $0x49] sm:$0xff] }
 0x112   : > { %v782_v45 = vpop.f32.mrf.mxu1  ;;  %v1136_v48 = vpop.f32.mrf.mxu3  ;;  %1486 = vmatpush.msrb.mxu1 %v3910_v50  ;;  %v873_v59 = vld [vmem:[#allocation2 + $0x172] sm:$0xff] }
 0x113   : > { %v5290_v51 = vadd.f32 %v1136_v48, %v1015_v43  ;;  %v783_v0 = vadd.f32 %v782_v45, %v669_v44  ;;  %v1231_v45 = vld [vmem:[#allocation2 + $0x19] sm:$0xff]  ;;  %v1620_v48 = vld [vmem:[#allocation2 + $0x30] sm:$0xff] }
 0x114   : > { %716 = vmatmul.f32.gmra.mxu0 %v595_v47  ;;  %1487 = vmatpush.msrb.mxu1 %v3909_v56  ;;  %v1425_v47 = vld [vmem:[#allocation2 + $0x1a] sm:$0xff]  ;;  %v1814_v50 = vld [vmem:[#allocation2 + $0x31] sm:$0xff] }
 0x115   : > { %829 = vmatmul.f32.gmra.mxu1 %v5104_v42  ;;  %991 = vmatmul.f32.gmra.mxu2 %v870_v49  ;;  %v3941_v42 = vld [vmem:[%s7356_s2 + $0x390] sm:$0xff] }
 0x116   : > { %1876 = vmatpush.msrb.mxu3 %v3941_v42  ;;  %1488 = vmatpush.msrb.mxu1 %v3908_v63  ;;  %v1426_v42 = vld [vmem:[#allocation2 + $0x22] sm:$0xff] }
 0x117   : > { %1186 = vmatmul.f32.gmra.mxu3 %v5136_v11 }
 0x118   : > { %v944_v3 = vpop.f32.mrf.mxu2  ;;  %1877 = vmatpush.msrb.mxu3 %v3940_v4  ;;  %1489 = vmatpush.msrb.mxu1 %v3907_v12 }
 0x119   : > { %v1016_v5 = vadd.f32 %v944_v3, %v783_v0  ;;  %v672_v6 = vpop.f32.mrf.mxu0  ;;  %v1621_v0 = vld [vmem:[#allocation2 + $0x38] sm:$0xff] }
 0x11a   : > { %v785_v8 = vpop.f32.mrf.mxu1  ;;  %v1139_v10 = vpop.f32.mrf.mxu3  ;;  %1878 = vmatpush.msrb.mxu3 %v3939_v14  ;;  %v1815_v3 = vld [vmem:[#allocation2 + $0x39] sm:$0xff] }
 0x11b   : > { %v5327_v15 = vadd.f32 %v1139_v10, %v1016_v5  ;;  %v786_v2 = vadd.f32 %v785_v8, %v672_v6 }
 0x11c   : > { %719 = vmatmul.f32.gmra.mxu0 %v596_v9  ;;  %v5352_v9 = vld [vmem:[#allocation2 + $0x32] sm:$0xff] }
 0x11d   : > { %832 = vmatmul.f32.gmra.mxu1 %v5113_v54  ;;  %994 = vmatmul.f32.gmra.mxu2 %v871_v46  ;;  %v1622_v46 = vld [vmem:[#allocation2 + $0x48] sm:$0xff] }
 0x11f   : > { %1189 = vmatmul.f32.gmra.mxu3 %v5169_v35 }
 0x120   : > { %v947_v17 = vpop.f32.mrf.mxu2 }
 0x121   : > { %v1017_v19 = vadd.f32 %v947_v17, %v786_v2  ;;  %v675_v20 = vpop.f32.mrf.mxu0  ;;  %v3969_v2 = vld [vmem:[%s7356_s2 + $0x470] sm:$0xff] }
 0x122   : > { %v788_v21 = vpop.f32.mrf.mxu1  ;;  %v1142_v26 = vpop.f32.mrf.mxu3  ;;  %2058 = vmatpush.msra.mxu0 %v3969_v2 }
 0x123   : > { %v5334_v28 = vadd.f32 %v1142_v26, %v1017_v19  ;;  %v789_v54 = vadd.f32 %v788_v21, %v675_v20  ;;  %v5360_v26 = vld [vmem:[#allocation2 + $0x3a] sm:$0xff] }
 0x124   : > { %722 = vmatmul.f32.gmra.mxu0 %v597_v25 }
 0x125   : > { %835 = vmatmul.f32.gmra.mxu1 %v5136_v11  ;;  %997 = vmatmul.f32.gmra.mxu2 %v872_v27 }
 0x127   : > { %1192 = vmatmul.f32.gmra.mxu3 %v5237_v13 }
 0x128   : > { %v950_v31 = vpop.f32.mrf.mxu2 }
 0x129   : > { %v1018_v24 = vadd.f32 %v950_v31, %v789_v54  ;;  %v678_v33 = vpop.f32.mrf.mxu0  ;;  %v1623_v54 = vld [vmem:[#allocation2 + $0x50] sm:$0xff] }
 0x12a   : > { %v791_v34 = vpop.f32.mrf.mxu1  ;;  %v1145_v37 = vpop.f32.mrf.mxu3 }
 0x12b   : > { %v5340_v39 = vadd.f32 %v1145_v37, %v1018_v24  ;;  %v792_v11 = vadd.f32 %v791_v34, %v678_v33  ;;  %v1817_v24 = vld [vmem:[#allocation2 + $0x51] sm:$0xff] }
 0x12c   : > { %725 = vmatmul.f32.gmra.mxu0 %v5338_v36 }
 0x12d   : > { %838 = vmatmul.f32.gmra.mxu1 %v5169_v35  ;;  %1000 = vmatmul.f32.gmra.mxu2 %v873_v59 }
 0x12f   : > { %1195 = vmatmul.f32.gmra.mxu3 %v5275_v38 }
 0x130   : > { %v953_v13 = vpop.f32.mrf.mxu2 }
 0x131   : > { %v1019_v40 = vadd.f32 %v953_v13, %v792_v11  ;;  %v681_v43 = vpop.f32.mrf.mxu0  ;;  %v5365_v13 = vld [vmem:[#allocation2 + $0x4a] sm:$0xff] }
 0x132   : > { %v794_v44 = vpop.f32.mrf.mxu1  ;;  %v1148_v18 = vpop.f32.mrf.mxu3 }
 0x133   : > { %v5345_v49 = vadd.f32 %v1148_v18, %v1019_v40  ;;  %v795_v35 = vadd.f32 %v794_v44, %v681_v43  ;;  %v1624_v43 = vld [vmem:[#allocation2 + $0x60] sm:$0xff] }
 0x134   : > { %1296 = vmatmul.f32.vlgmr.msrb.gmra.mxu0 %v1231_v45  ;;  %v1818_v45 = vld [vmem:[#allocation2 + $0x61] sm:$0xff] }
 0x135   : > { %1490 = vmatmul.f32.vlgmr.msrb.gmra.mxu1 %v1425_v47  ;;  %1685 = vmatmul.f32.vlgmr.msrb.gmra.mxu2 %v1620_v48  ;;  %v3968_v47 = vld [vmem:[%s7356_s2 + $0x468] sm:$0xff] }
 0x136   : > { %2059 = vmatpush.msra.mxu0 %v3968_v47 }
 0x137   : > { %1879 = vmatmul.f32.vlgmr.msrb.gmra.mxu3 %v1814_v50 }
 0x138   : > { %v956_v38 = vpop.f32.mrf.mxu2 }
 0x139   : > { %v1020_v55 = vadd.f32 %v956_v38, %v795_v35  ;;  %v684_v56 = vpop.f32.mrf.mxu0  ;;  %v5373_v38 = vld [vmem:[#allocation2 + $0x52] sm:$0xff] }
 0x13a   : > { %v797_v60 = vpop.f32.mrf.mxu1  ;;  %v1151_v63 = vpop.f32.mrf.mxu3 }
 0x13b   : > { %v5350_v1 = vadd.f32 %v1151_v63, %v1020_v55  ;;  %v798_v4 = vadd.f32 %v797_v60, %v684_v56  ;;  %v1625_v56 = vld [vmem:[#allocation2 + $0x68] sm:$0xff] }
 0x13c   : > { %1299 = vmatmul.f32.gmra.mxu0 %v1232_v62  ;;  %v1819_v62 = vld [vmem:[#allocation2 + $0x69] sm:$0xff] }
 0x13d   : > { %1493 = vmatmul.f32.gmra.mxu1 %v1426_v42  ;;  %1688 = vmatmul.f32.gmra.mxu2 %v1621_v0 }
 0x13f   : > { %1882 = vmatmul.f32.gmra.mxu3 %v1815_v3 }
 0x140   : > { %v959_v12 = vpop.f32.mrf.mxu2 }
 0x141   : > { %v1021_v5 = vadd.f32 %v959_v12, %v798_v4  ;;  %v687_v6 = vpop.f32.mrf.mxu0  ;;  %v5378_v12 = vld [vmem:[#allocation2 + $0x62] sm:$0xff] }
 0x142   : > { %v800_v8 = vpop.f32.mrf.mxu1  ;;  %v1154_v10 = vpop.f32.mrf.mxu3 }
 0x143   : > { %v5354_v14 = vadd.f32 %v1154_v10, %v1021_v5  ;;  %v801_v17 = vadd.f32 %v800_v8, %v687_v6  ;;  %v1626_v6 = vld [vmem:[#allocation2 + $0x78] sm:$0xff] }
 0x144   : > { %1302 = vmatmul.f32.gmra.mxu0 %v1814_v50  ;;  %v1820_v10 = vld [vmem:[#allocation2 + $0x79] sm:$0xff] }
 0x145   : > { %1496 = vmatmul.f32.gmra.mxu1 %v5352_v9  ;;  %1691 = vmatmul.f32.gmra.mxu2 %v1622_v46  ;;  %v3967_v46 = vld [vmem:[%s7356_s2 + $0x460] sm:$0xff] }
 0x146   : > { %2060 = vmatpush.msra.mxu0 %v3967_v46 }
 0x147   : > { %1885 = vmatmul.f32.gmra.mxu3 %v1816_v16 }
 0x148   : > { %v962_v19 = vpop.f32.mrf.mxu2 }
 0x149   : > { %v1022_v20 = vadd.f32 %v962_v19, %v801_v17  ;;  %v690_v21 = vpop.f32.mrf.mxu0 }
 0x14a   : > { %v803_v25 = vpop.f32.mrf.mxu1  ;;  %v1157_v27 = vpop.f32.mrf.mxu3 }
 0x14b   : > { %v5362_v31 = vadd.f32 %v1157_v27, %v1022_v20  ;;  %v804_v33 = vadd.f32 %v803_v25, %v690_v21  ;;  %v5386_v21 = vld [vmem:[#allocation2 + $0x6a] sm:$0xff]  ;;  %v1627_v27 = vld [vmem:[#allocation2 + $0x80] sm:$0xff] }
 0x14c   : > { %1305 = vmatmul.f32.gmra.mxu0 %v1815_v3 }
 0x14d   : > { %7365 = vst [vmem:[#allocation10_spill] sm:$0xff] %v5362_v31  ;;  %1499 = vmatmul.f32.gmra.mxu1 %v5360_v26  ;;  %1694 = vmatmul.f32.gmra.mxu2 %v1623_v54 }
 0x14f   : > { %1888 = vmatmul.f32.gmra.mxu3 %v1817_v24 }
 0x150   : > { %v965_v34 = vpop.f32.mrf.mxu2 }
 0x151   : > { %v1023_v37 = vadd.f32 %v965_v34, %v804_v33  ;;  %v693_v59 = vpop.f32.mrf.mxu0 }
 0x152   : > { %v806_v11 = vpop.f32.mrf.mxu1  ;;  %v1160_v40 = vpop.f32.mrf.mxu3 }
 0x153   : > { %v5367_v44 = vadd.f32 %v1160_v40, %v1023_v37  ;;  %v807_v18 = vadd.f32 %v806_v11, %v693_v59  ;;  %v5391_v40 = vld [vmem:[#allocation2 + $0x7a] sm:$0xff] }
 0x154   : > { %1308 = vmatmul.f32.gmra.mxu0 %v1816_v16 }
 0x155   : > { %7366 = vst [vmem:[#allocation11_spill] sm:$0xff] %v5367_v44  ;;  %1502 = vmatmul.f32.gmra.mxu1 %v5365_v13  ;;  %1697 = vmatmul.f32.gmra.mxu2 %v1624_v43 }
 0x157   : > { %1891 = vmatmul.f32.gmra.mxu3 %v1818_v45 }
 0x158   : > { %v968_v48 = vpop.f32.mrf.mxu2 }
 0x159   : > { %v1024_v50 = vadd.f32 %v968_v48, %v807_v18  ;;  %v696_v52 = vpop.f32.mrf.mxu0  ;;  %v1822_v18 = vld [vmem:[#allocation2 + $0x91] sm:$0xff] }
 0x15a   : > { %v809_v35 = vpop.f32.mrf.mxu1  ;;  %v1163_v55 = vpop.f32.mrf.mxu3  ;;  %v3966_v48 = vld [vmem:[%s7356_s2 + $0x458] sm:$0xff] }
 0x15b   : > { %v5375_v60 = vadd.f32 %v1163_v55, %v1024_v50  ;;  %v810_v42 = vadd.f32 %v809_v35, %v696_v52  ;;  %2061 = vmatpush.msra.mxu0 %v3966_v48  ;;  %v1825_v48 = vld [vmem:[#allocation2 + $0xb1] sm:$0xff] }
 0x15c   : > { %1311 = vmatmul.f32.gmra.mxu0 %v1817_v24  ;;  %v1821_v24 = vld [vmem:[#allocation2 + $0x81] sm:$0xff] }
 0x15d   : > { %7367 = vst [vmem:[#allocation12_spill] sm:$0xff] %v5375_v60  ;;  %1505 = vmatmul.f32.gmra.mxu1 %v5373_v38  ;;  %1700 = vmatmul.f32.gmra.mxu2 %v1625_v56 }
 0x15f   : > { %1894 = vmatmul.f32.gmra.mxu3 %v1819_v62 }
 0x160   : > { %v971_v63 = vpop.f32.mrf.mxu2 }
 0x161   : > { %v1025_v0 = vadd.f32 %v971_v63, %v810_v42  ;;  %v699_v3 = vpop.f32.mrf.mxu0  ;;  %v1629_v63 = vld [vmem:[#allocation2 + $0x98] sm:$0xff] }
 0x162   : > { %v812_v4 = vpop.f32.mrf.mxu1  ;;  %v1166_v5 = vpop.f32.mrf.mxu3 }
 0x163   : > { %v5380_v8 = vadd.f32 %v1166_v5, %v1025_v0  ;;  %v813_v16 = vadd.f32 %v812_v4, %v699_v3  ;;  %v1823_v3 = vld [vmem:[#allocation2 + $0x99] sm:$0xff] }
 0x164   : > { %1314 = vmatmul.f32.gmra.mxu0 %v1818_v45  ;;  %v1628_v45 = vld [vmem:[#allocation2 + $0x90] sm:$0xff] }
 0x165   : > { %7368 = vst [vmem:[#allocation13_spill] sm:$0xff] %v5380_v8  ;;  %1508 = vmatmul.f32.gmra.mxu1 %v5378_v12  ;;  %1703 = vmatmul.f32.gmra.mxu2 %v1626_v6  ;;  %v5550_v8 = vld [vmem:[#allocation2 + $0x16a] sm:$0xff] }
 0x167   : > { %1897 = vmatmul.f32.gmra.mxu3 %v1820_v10 }
 0x168   : > { %v974_v2 = vpop.f32.mrf.mxu2 }
 0x169   : > { %v1026_v17 = vadd.f32 %v974_v2, %v813_v16  ;;  %v702_v19 = vpop.f32.mrf.mxu0  ;;  %v5404_v16 = vld [vmem:[#allocation2 + $0x92] sm:$0xff] }
 0x16a   : > { %v815_v20 = vpop.f32.mrf.mxu1  ;;  %v1169_v25 = vpop.f32.mrf.mxu3 }
 0x16b   : > { %v5388_v54 = vadd.f32 %v1169_v25, %v1026_v17  ;;  %v816_v33 = vadd.f32 %v815_v20, %v702_v19  ;;  %v1630_v17 = vld [vmem:[#allocation2 + $0xa8] sm:$0xff]  ;;  %v3965_v25 = vld [vmem:[%s7356_s2 + $0x450] sm:$0xff] }
 0x16c   : > { %1317 = vmatmul.f32.gmra.mxu0 %v1819_v62  ;;  %v5399_v62 = vld [vmem:[#allocation2 + $0x82] sm:$0xff] }
 0x16d   : > { %7369 = vst [vmem:[#allocation14_spill] sm:$0xff] %v5388_v54  ;;  %1511 = vmatmul.f32.gmra.mxu1 %v5386_v21  ;;  %1706 = vmatmul.f32.gmra.mxu2 %v1627_v27  ;;  %v1824_v20 = vld [vmem:[#allocation2 + $0xa9] sm:$0xff] }
 0x16e   : > { %2062 = vmatpush.msra.mxu0 %v3965_v25  ;;  %v5425_v25 = vld [vmem:[#allocation2 + $0xb2] sm:$0xff] }
 0x16f   : > { %1900 = vmatmul.f32.gmra.mxu3 %v1821_v24  ;;  %v1647_v54 = vld [vmem:[#allocation2 + $0x170] sm:$0xff] }
 0x170   : > { %v977_v34 = vpop.f32.mrf.mxu2 }
 0x171   : > { %v1027_v37 = vadd.f32 %v977_v34, %v816_v33  ;;  %v705_v59 = vpop.f32.mrf.mxu0 }
 0x172   : > { %v818_v11 = vpop.f32.mrf.mxu1  ;;  %v1172_v43 = vpop.f32.mrf.mxu3 }
 0x173   : > { %v5393_v47 = vadd.f32 %v1172_v43, %v1027_v37  ;;  %v819_v50 = vadd.f32 %v818_v11, %v705_v59  ;;  %v5412_v59 = vld [vmem:[#allocation2 + $0x9a] sm:$0xff]  ;;  %v1631_v43 = vld [vmem:[#allocation2 + $0xb0] sm:$0xff] }
 0x174   : > { %1320 = vmatmul.f32.gmra.mxu0 %v1820_v10 }
 0x175   : > { %7370 = vst [vmem:[#allocation15_spill] sm:$0xff] %v5393_v47  ;;  %1514 = vmatmul.f32.gmra.mxu1 %v5391_v40  ;;  %1709 = vmatmul.f32.gmra.mxu2 %v1628_v45  ;;  %v5544_v47 = vld [vmem:[#allocation2 + $0x15a] sm:$0xff] }
 0x177   : > { %1903 = vmatmul.f32.gmra.mxu3 %v1822_v18 }
 0x178   : > { %v980_v52 = vpop.f32.mrf.mxu2 }
 0x179   : > { %v1028_v35 = vadd.f32 %v980_v52, %v819_v50  ;;  %v708_v55 = vpop.f32.mrf.mxu0 }
 0x17a   : > { %v821_v56 = vpop.f32.mrf.mxu1  ;;  %v1175_v42 = vpop.f32.mrf.mxu3 }
 0x17b   : > { %v5401_v0 = vadd.f32 %v1175_v42, %v1028_v35  ;;  %v822_v4 = vadd.f32 %v821_v56, %v708_v55  ;;  %v5417_v56 = vld [vmem:[#allocation2 + $0xaa] sm:$0xff] }
 0x17c   : > { %1323 = vmatmul.f32.gmra.mxu0 %v1821_v24 }
 0x17d   : > { %7371 = vst [vmem:[#allocation16_spill] sm:$0xff] %v5401_v0  ;;  %1517 = vmatmul.f32.gmra.mxu1 %v5399_v62  ;;  %1712 = vmatmul.f32.gmra.mxu2 %v1629_v63  ;;  %v1632_v63 = vld [vmem:[#allocation2 + $0xc0] sm:$0xff]  ;;  %v3957_v0 = vld [vmem:[%s7356_s2 + $0x410] sm:$0xff] }
 0x17f   : > { %1906 = vmatmul.f32.gmra.mxu3 %v1823_v3 }
 0x180   : > { %v983_v5 = vpop.f32.mrf.mxu2 }
 0x181   : > { %v1029_v6 = vadd.f32 %v983_v5, %v822_v4  ;;  %v711_v10 = vpop.f32.mrf.mxu0  ;;  %v1826_v5 = vld [vmem:[#allocation2 + $0xc1] sm:$0xff] }
 0x182   : > { %v824_v46 = vpop.f32.mrf.mxu1  ;;  %v1178_v2 = vpop.f32.mrf.mxu3 }
 0x183   : > { %v5406_v19 = vadd.f32 %v1178_v2, %v1029_v6  ;;  %v825_v27 = vadd.f32 %v824_v46, %v711_v10 }
 0x184   : > { %1326 = vmatmul.f32.gmra.mxu0 %v1822_v18 }
 0x185   : > { %7372 = vst [vmem:[#allocation17_spill] sm:$0xff] %v5406_v19  ;;  %1520 = vmatmul.f32.gmra.mxu1 %v5404_v16  ;;  %1715 = vmatmul.f32.gmra.mxu2 %v1630_v17  ;;  %v1837_v19 = vld [vmem:[#allocation2 + $0x141] sm:$0xff] }
 0x187   : > { %1909 = vmatmul.f32.gmra.mxu3 %v1824_v20 }
 0x188   : > { %v986_v24 = vpop.f32.mrf.mxu2 }
 0x189   : > { %v1030_v33 = vadd.f32 %v986_v24, %v825_v27  ;;  %v714_v34 = vpop.f32.mrf.mxu0  ;;  %v1633_v24 = vld [vmem:[#allocation2 + $0xc8] sm:$0xff] }
 0x18a   : > { %v827_v37 = vpop.f32.mrf.mxu1  ;;  %v1181_v11 = vpop.f32.mrf.mxu3 }
 0x18b   : > { %v5414_v45 = vadd.f32 %v1181_v11, %v1030_v33  ;;  %v828_v18 = vadd.f32 %v827_v37, %v714_v34  ;;  %v1827_v34 = vld [vmem:[#allocation2 + $0xc9] sm:$0xff] }
 0x18c   : > { %1329 = vmatmul.f32.gmra.mxu0 %v1823_v3  ;;  %v3964_v3 = vld [vmem:[%s7356_s2 + $0x448] sm:$0xff] }
 0x18d   : > { %7373 = vst [vmem:[#allocation18_spill] sm:$0xff] %v5414_v45  ;;  %1523 = vmatmul.f32.gmra.mxu1 %v5412_v59  ;;  %1718 = vmatmul.f32.gmra.mxu2 %v1631_v43 }
 0x18e   : > { %2063 = vmatpush.msra.mxu0 %v3964_v3 }
 0x18f   : > { %1912 = vmatmul.f32.gmra.mxu3 %v1825_v48 }
 0x190   : > { %v989_v50 = vpop.f32.mrf.mxu2 }
 0x191   : > { %v1031_v52 = vadd.f32 %v989_v50, %v828_v18  ;;  %v717_v35 = vpop.f32.mrf.mxu0  ;;  %v5430_v50 = vld [vmem:[#allocation2 + $0xc2] sm:$0xff] }
 0x192   : > { %v830_v55 = vpop.f32.mrf.mxu1  ;;  %v1184_v42 = vpop.f32.mrf.mxu3 }
 0x193   : > { %v5419_v4 = vadd.f32 %v1184_v42, %v1031_v52  ;;  %v831_v6 = vadd.f32 %v830_v55, %v717_v35  ;;  %v1634_v35 = vld [vmem:[#allocation2 + $0xd8] sm:$0xff] }
 0x194   : > { %1332 = vmatmul.f32.gmra.mxu0 %v1824_v20  ;;  %v1828_v42 = vld [vmem:[#allocation2 + $0xd9] sm:$0xff] }
 0x195   : > { %7374 = vst [vmem:[#allocation19_spill] sm:$0xff] %v5419_v4  ;;  %1526 = vmatmul.f32.gmra.mxu1 %v5417_v56  ;;  %1721 = vmatmul.f32.gmra.mxu2 %v1632_v63  ;;  %v1835_v4 = vld [vmem:[#allocation2 + $0x129] sm:$0xff] }
 0x197   : > { %1915 = vmatmul.f32.gmra.mxu3 %v1826_v5 }
 0x198   : > { %v992_v10 = vpop.f32.mrf.mxu2 }
 0x199   : > { %v1032_v46 = vadd.f32 %v992_v10, %v831_v6  ;;  %v720_v2 = vpop.f32.mrf.mxu0 }
 0x19a   : > { %v833_v17 = vpop.f32.mrf.mxu1  ;;  %v1187_v27 = vpop.f32.mrf.mxu3 }
 0x19b   : > { %v5427_v33 = vadd.f32 %v1187_v27, %v1032_v46  ;;  %v834_v20 = vadd.f32 %v833_v17, %v720_v2  ;;  %v5438_v2 = vld [vmem:[#allocation2 + $0xca] sm:$0xff]  ;;  %v1635_v27 = vld [vmem:[#allocation2 + $0xe0] sm:$0xff] }
 0x19c   : > { %1335 = vmatmul.f32.gmra.mxu0 %v1825_v48  ;;  %v3963_v48 = vld [vmem:[%s7356_s2 + $0x440] sm:$0xff] }
 0x19d   : > { %7375 = vst [vmem:[#allocation20_spill] sm:$0xff] %v5427_v33  ;;  %1529 = vmatmul.f32.gmra.mxu1 %v5425_v25  ;;  %1724 = vmatmul.f32.gmra.mxu2 %v1633_v24 }
 0x19e   : > { %2064 = vmatpush.msra.mxu0 %v3963_v48 }
 0x19f   : > { %1918 = vmatmul.f32.gmra.mxu3 %v1827_v34 }
 0x1a0   : > { %v995_v37 = vpop.f32.mrf.mxu2 }
 0x1a1   : > { %v1033_v11 = vadd.f32 %v995_v37, %v834_v20  ;;  %v723_v43 = vpop.f32.mrf.mxu0  ;;  %v1829_v20 = vld [vmem:[#allocation2 + $0xe1] sm:$0xff] }
 0x1a2   : > { %v836_v18 = vpop.f32.mrf.mxu1  ;;  %v1190_v52 = vpop.f32.mrf.mxu3 }
 0x1a3   : > { %v5432_v55 = vadd.f32 %v1190_v52, %v1033_v11  ;;  %v837_v63 = vadd.f32 %v836_v18, %v723_v43  ;;  %v5443_v52 = vld [vmem:[#allocation2 + $0xda] sm:$0xff] }
 0x1a4   : > { %1338 = vmatmul.f32.gmra.mxu0 %v1826_v5 }
 0x1a5   : > { %7376 = vst [vmem:[#allocation21_spill] sm:$0xff] %v5432_v55  ;;  %1532 = vmatmul.f32.gmra.mxu1 %v5430_v50  ;;  %1727 = vmatmul.f32.gmra.mxu2 %v1634_v35  ;;  %v1833_v55 = vld [vmem:[#allocation2 + $0x111] sm:$0xff] }
 0x1a7   : > { %1921 = vmatmul.f32.gmra.mxu3 %v1828_v42 }
 0x1a8   : > { %v998_v3 = vpop.f32.mrf.mxu2 }
 0x1a9   : > { %v1034_v6 = vadd.f32 %v998_v3, %v837_v63  ;;  %v726_v10 = vpop.f32.mrf.mxu0  ;;  %v1636_v63 = vld [vmem:[#allocation2 + $0xf0] sm:$0xff] }
 0x1aa   : > { %v839_v46 = vpop.f32.mrf.mxu1  ;;  %v1193_v17 = vpop.f32.mrf.mxu3 }
 0x1ab   : > { %v5440_v24 = vadd.f32 %v1193_v17, %v1034_v6  ;;  %v840_v5 = vadd.f32 %v839_v46, %v726_v10  ;;  %v1830_v6 = vld [vmem:[#allocation2 + $0xf1] sm:$0xff] }
 0x1ac   : > { %1341 = vmatmul.f32.gmra.mxu0 %v1827_v34  ;;  %v3962_v34 = vld [vmem:[%s7356_s2 + $0x438] sm:$0xff] }
 0x1ad   : > { %7377 = vst [vmem:[#allocation22_spill] sm:$0xff] %v5440_v24  ;;  %1535 = vmatmul.f32.gmra.mxu1 %v5438_v2  ;;  %1730 = vmatmul.f32.gmra.mxu2 %v1635_v27 }
 0x1ae   : > { %2065 = vmatpush.msra.mxu0 %v3962_v34 }
 0x1af   : > { %1924 = vmatmul.f32.gmra.mxu3 %v1829_v20 }
 0x1b0   : > { %v1001_v37 = vpop.f32.mrf.mxu2 }
 0x1b1   : > { %v1035_v11 = vadd.f32 %v1001_v37, %v840_v5  ;;  %v1297_v43 = vpop.f32.mrf.mxu0 }
 0x1b2   : > { %v1491_v18 = vpop.f32.mrf.mxu1  ;;  %v1196_v35 = vpop.f32.mrf.mxu3  ;;  %v1393_v48 = vadd.f32 %v1297_v43, %v5024_v29  ;;  %v5452_v29 = vld [vmem:[#allocation2 + $0xe2] sm:$0xff]  ;;  %v1637_v43 = vld [vmem:[#allocation2 + $0xf8] sm:$0xff] }
 0x1b3   : > { %v5446_v3 = vadd.f32 %v1196_v35, %v1035_v11 }
 0x1b4   : > { %v1587_v17 = vadd.f32 %v1491_v18, %v1393_v48  ;;  %1344 = vmatmul.f32.gmra.mxu0 %v1828_v42 }
 0x1b5   : > { %7378 = vst [vmem:[#allocation23_spill] sm:$0xff] %v5446_v3  ;;  %1538 = vmatmul.f32.gmra.mxu1 %v5443_v52  ;;  %1733 = vmatmul.f32.gmra.mxu2 %v1636_v63  ;;  %v1831_v3 = vld [vmem:[#allocation2 + $0xf9] sm:$0xff] }
 0x1b7   : > { %1927 = vmatmul.f32.gmra.mxu3 %v1830_v6 }
 0x1b8   : > { %v1686_v10 = vpop.f32.mrf.mxu2 }
 0x1b9   : > { %v1782_v46 = vadd.f32 %v1686_v10, %v1587_v17  ;;  %v1300_v27 = vpop.f32.mrf.mxu0  ;;  %v5458_v17 = vld [vmem:[#allocation2 + $0xf2] sm:$0xff] }
 0x1ba   : > { %v1494_v5 = vpop.f32.mrf.mxu1  ;;  %v1394_v37 = vadd.f32 %v1300_v27, %v5035_v41  ;;  %v1880_v11 = vpop.f32.mrf.mxu3  ;;  %v1638_v27 = vld [vmem:[#allocation2 + $0x108] sm:$0xff] }
 0x1bb   : > { %v5455_v35 = vadd.f32 %v1880_v11, %v1782_v46  ;;  %v1832_v46 = vld [vmem:[#allocation2 + $0x109] sm:$0xff] }
 0x1bc   : > { %v1588_v18 = vadd.f32 %v1494_v5, %v1394_v37  ;;  %1347 = vmatmul.f32.gmra.mxu0 %v1829_v20  ;;  %v3961_v20 = vld [vmem:[%s7356_s2 + $0x430] sm:$0xff] }
 0x1bd   : > { %1541 = vmatmul.f32.gmra.mxu1 %v5452_v29  ;;  %1736 = vmatmul.f32.gmra.mxu2 %v1637_v43 }
 0x1be   : > { %2066 = vmatpush.msra.mxu0 %v3961_v20 }
 0x1bf   : > { %1930 = vmatmul.f32.gmra.mxu3 %v1831_v3 }
 0x1c0   : > { %v1689_v42 = vpop.f32.mrf.mxu2 }
 0x1c1   : > { %v1783_v48 = vadd.f32 %v1689_v42, %v1588_v18  ;;  %v1303_v63 = vpop.f32.mrf.mxu0  ;;  %v5467_v18 = vld [vmem:[#allocation2 + $0xfa] sm:$0xff] }
 0x1c2   : > { %v1497_v34 = vpop.f32.mrf.mxu1  ;;  %v1395_v10 = vadd.f32 %v1303_v63, %v5053_v58  ;;  %v1883_v41 = vpop.f32.mrf.mxu3  ;;  %v1639_v63 = vld [vmem:[#allocation2 + $0x110] sm:$0xff] }
 0x1c3   : > { %v5461_v24 = vadd.f32 %v1883_v41, %v1783_v48 }
 0x1c4   : > { %v1589_v5 = vadd.f32 %v1497_v34, %v1395_v10  ;;  %1350 = vmatmul.f32.gmra.mxu0 %v1830_v6 }
 0x1c5   : > { %1544 = vmatmul.f32.gmra.mxu1 %v5458_v17  ;;  %1739 = vmatmul.f32.gmra.mxu2 %v1638_v27 }
 0x1c7   : > { %1933 = vmatmul.f32.gmra.mxu3 %v1832_v46 }
 0x1c8   : > { %v1692_v37 = vpop.f32.mrf.mxu2 }
 0x1c9   : > { %v1784_v11 = vadd.f32 %v1692_v37, %v1589_v5  ;;  %v1306_v43 = vpop.f32.mrf.mxu0  ;;  %v5473_v5 = vld [vmem:[#allocation2 + $0x10a] sm:$0xff] }
 0x1ca   : > { %v1500_v58 = vpop.f32.mrf.mxu1  ;;  %v1396_v42 = vadd.f32 %v1306_v43, %v5064_v57  ;;  %v1886_v48 = vpop.f32.mrf.mxu3  ;;  %v1640_v43 = vld [vmem:[#allocation2 + $0x120] sm:$0xff] }
 0x1cb   : > { %v5470_v41 = vadd.f32 %v1886_v48, %v1784_v11  ;;  %v1834_v11 = vld [vmem:[#allocation2 + $0x121] sm:$0xff] }
 0x1cc   : > { %v1590_v34 = vadd.f32 %v1500_v58, %v1396_v42  ;;  %1353 = vmatmul.f32.gmra.mxu0 %v1831_v3  ;;  %v3960_v3 = vld [vmem:[%s7356_s2 + $0x428] sm:$0xff] }
 0x1cd   : > { %1547 = vmatmul.f32.gmra.mxu1 %v5467_v18  ;;  %1742 = vmatmul.f32.gmra.mxu2 %v1639_v63 }
 0x1ce   : > { %2067 = vmatpush.msra.mxu0 %v3960_v3 }
 0x1cf   : > { %1936 = vmatmul.f32.gmra.mxu3 %v1833_v55 }
 0x1d0   : > { %v1695_v6 = vpop.f32.mrf.mxu2 }
 0x1d1   : > { %v1785_v10 = vadd.f32 %v1695_v6, %v1590_v34  ;;  %v1309_v27 = vpop.f32.mrf.mxu0  ;;  %v5482_v34 = vld [vmem:[#allocation2 + $0x112] sm:$0xff] }
 0x1d2   : > { %v1503_v20 = vpop.f32.mrf.mxu1  ;;  %v1397_v37 = vadd.f32 %v1309_v27, %v5082_v23  ;;  %v1889_v57 = vpop.f32.mrf.mxu3  ;;  %v1641_v27 = vld [vmem:[#allocation2 + $0x128] sm:$0xff] }
 0x1d3   : > { %v5476_v33 = vadd.f32 %v1889_v57, %v1785_v10 }
 0x1d4   : > { %v1591_v58 = vadd.f32 %v1503_v20, %v1397_v37  ;;  %1356 = vmatmul.f32.gmra.mxu0 %v1832_v46 }
 0x1d5   : > { %1550 = vmatmul.f32.gmra.mxu1 %v5473_v5  ;;  %1745 = vmatmul.f32.gmra.mxu2 %v1640_v43 }
 0x1d7   : > { %1939 = vmatmul.f32.gmra.mxu3 %v1834_v11 }
 0x1d8   : > { %v1698_v42 = vpop.f32.mrf.mxu2 }
 0x1d9   : > { %v1786_v48 = vadd.f32 %v1698_v42, %v1591_v58  ;;  %v1312_v63 = vpop.f32.mrf.mxu0  ;;  %v5488_v58 = vld [vmem:[#allocation2 + $0x122] sm:$0xff] }
 0x1da   : > { %v1506_v23 = vpop.f32.mrf.mxu1  ;;  %v1398_v6 = vadd.f32 %v1312_v63, %v5093_v7  ;;  %v1892_v10 = vpop.f32.mrf.mxu3  ;;  %v1642_v63 = vld [vmem:[#allocation2 + $0x138] sm:$0xff] }
 0x1db   : > { %v5485_v57 = vadd.f32 %v1892_v10, %v1786_v48  ;;  %v1836_v48 = vld [vmem:[#allocation2 + $0x139] sm:$0xff] }
 0x1dc   : > { %v1592_v20 = vadd.f32 %v1506_v23, %v1398_v6  ;;  %1359 = vmatmul.f32.gmra.mxu0 %v1833_v55  ;;  %v3959_v55 = vld [vmem:[%s7356_s2 + $0x420] sm:$0xff] }
 0x1dd   : > { %1553 = vmatmul.f32.gmra.mxu1 %v5482_v34  ;;  %1748 = vmatmul.f32.gmra.mxu2 %v1641_v27 }
 0x1de   : > { %2068 = vmatpush.msra.mxu0 %v3959_v55  ;;  %v5505_v55 = vld [vmem:[#allocation2 + $0x13a] sm:$0xff] }
 0x1df   : > { %1942 = vmatmul.f32.gmra.mxu3 %v1835_v4 }
 0x1e0   : > { %v1701_v46 = vpop.f32.mrf.mxu2 }
 0x1e1   : > { %v1787_v37 = vadd.f32 %v1701_v46, %v1592_v20  ;;  %v1315_v43 = vpop.f32.mrf.mxu0  ;;  %v5497_v20 = vld [vmem:[#allocation2 + $0x12a] sm:$0xff] }
 0x1e2   : > { %v1509_v3 = vpop.f32.mrf.mxu1  ;;  %v1399_v42 = vadd.f32 %v1315_v43, %v5111_v53  ;;  %v1895_v7 = vpop.f32.mrf.mxu3  ;;  %v1643_v43 = vld [vmem:[#allocation2 + $0x140] sm:$0xff] }
 0x1e3   : > { %v5491_v45 = vadd.f32 %v1895_v7, %v1787_v37 }
 0x1e4   : > { %v1593_v23 = vadd.f32 %v1509_v3, %v1399_v42  ;;  %1362 = vmatmul.f32.gmra.mxu0 %v1834_v11 }
 0x1e5   : > { %1556 = vmatmul.f32.gmra.mxu1 %v5488_v58  ;;  %1751 = vmatmul.f32.gmra.mxu2 %v1642_v63 }
 0x1e7   : > { %1945 = vmatmul.f32.gmra.mxu3 %v1836_v48 }
 0x1e8   : > { %v1704_v6 = vpop.f32.mrf.mxu2 }
 0x1e9   : > { %v1788_v10 = vadd.f32 %v1704_v6, %v1593_v23  ;;  %v1318_v27 = vpop.f32.mrf.mxu0 }
 0x1ea   : > { %v1512_v53 = vpop.f32.mrf.mxu1  ;;  %v1400_v46 = vadd.f32 %v1318_v27, %v5122_v30  ;;  %v1898_v37 = vpop.f32.mrf.mxu3  ;;  %v1644_v30 = vld [vmem:[#allocation2 + $0x150] sm:$0xff]  ;;  %v3958_v27 = vld [vmem:[%s7356_s2 + $0x418] sm:$0xff] }
 0x1eb   : > { %v5500_v7 = vadd.f32 %v1898_v37, %v1788_v10  ;;  %v1838_v10 = vld [vmem:[#allocation2 + $0x151] sm:$0xff]  ;;  %2069 = vmatpush.msra.mxu0 %v3958_v27  ;;  %v409_v27 = vld [vmem:[%s7355_s1 + $0x1a0] sm:$0xff] }
 0x1ec   : > { %v1594_v3 = vadd.f32 %v1512_v53, %v1400_v46  ;;  %1365 = vmatmul.f32.gmra.mxu0 %v1835_v4  ;;  %v353_v4 = vld [vmem:[%s4689_s18 + $0x190] sm:$0x3] }
 0x1ed   : > { %1559 = vmatmul.f32.gmra.mxu1 %v5497_v20  ;;  %1754 = vmatmul.f32.gmra.mxu2 %v1643_v43  ;;  %v407_v53 = vld [vmem:[%s7355_s1 + $0x190] sm:$0x3]  ;;  %v5519_v43 = vld [vmem:[#allocation2 + $0x142] sm:$0xff] }
 0x1ee   : > { %v461_v46 = vmul.f32 %v407_v53, %v353_v4  ;;  %2070 = vmatpush.msra.mxu0 %v3957_v0  ;;  %v3956_v0 = vld [vmem:[%s7356_s2 + $0x408] sm:$0xff] }
 0x1ef   : > { %1948 = vmatmul.f32.gmra.mxu3 %v1837_v19 }
 0x1f0   : > { %v1707_v11 = vpop.f32.mrf.mxu2  ;;  %515 = vst [vmem:[#allocation2 + $0x190] sm:$0x3] %v461_v46  ;;  %v1646_v46 = vld [vmem:[#allocation2 + $0x168] sm:$0xff]  ;;  %2071 = vmatpush.msra.mxu0 %v3956_v0 }
 0x1f1   : > { %v1789_v42 = vadd.f32 %v1707_v11, %v1594_v3  ;;  %v5503_v63 = vpop.f32.mrf.mxu0  ;;  %v1645_v3 = vld [vmem:[#allocation2 + $0x158] sm:$0xff] }
 0x1f2   : > { %v1901_v23 = vpop.f32.mrf.mxu3  ;;  %v1839_v11 = vld [vmem:[#allocation2 + $0x159] sm:$0xff] }
 0x1f3   : > { %v5507_v6 = vadd.f32 %v1901_v23, %v1789_v42  ;;  %v408_v42 = vld [vmem:[%s7355_s1 + $0x198] sm:$0xff]  ;;  %v355_v23 = vld [vmem:[%s4689_s18 + $0x1a0] sm:$0xff] }
 0x1f4   : > { %1368 = vmatmul.f32.gmra.mxu0 %v1836_v48  ;;  %v354_v48 = vld [vmem:[%s4689_s18 + $0x198] sm:$0xff]  ;;  %v463_v4 = vmul.f32 %v409_v27, %v355_v23 }
 0x1f5   : > { %1562 = vmatmul.f32.gmra.mxu1 %v5505_v55  ;;  %1757 = vmatmul.f32.gmra.mxu2 %v1644_v30  ;;  %v462_v30 = vmul.f32 %v408_v42, %v354_v48  ;;  %v356_v48 = vld [vmem:[%s4689_s18 + $0x1a8] sm:$0x3]  ;;  %s3771_s18 = scalar_lea.sflag [#allocation8], %s296_s13 }
 0x1f6   : > { %517 = vst [vmem:[#allocation2 + $0x1a0] sm:$0xff] %v463_v4  ;;  %v410_v42 = vld [vmem:[%s7355_s1 + $0x1a8] sm:$0x3] }
 0x1f7   : > { %1951 = vmatmul.f32.gmra.mxu3 %v1838_v10  ;;  %516 = vst [vmem:[#allocation2 + $0x198] sm:$0xff] %v462_v30  ;;  %v464_v23 = vmul.f32 %v410_v42, %v356_v48  ;;  %v1842_v48 = vld [vmem:[#allocation2 + $0x181] sm:$0xff]  ;;  %v5561_v42 = vld [vmem:[#allocation2 + $0x172] sm:$0xff]  ;;  %v1843_v60 = vld [vmem:[#allocation2 + $0x189] sm:$0xff] }
 0x1f9   : > { %v5517_v37 = vpop.f32.mrf.mxu0  ;;  %518 = vst [vmem:[#allocation2 + $0x1a8] sm:$0x3] %v464_v23  ;;  %v1649_v23 = vld [vmem:[#allocation2 + $0x188] sm:$0xff] }
 0x1fc   : > { %1371 = vmatmul.f32.gmra.mxu0 %v1837_v19  ;;  %v5532_v19 = vld [vmem:[#allocation2 + $0x152] sm:$0xff] }
 0x1fd   : > { %1565 = vmatmul.f32.gmra.mxu1 %v5519_v43  ;;  %1760 = vmatmul.f32.gmra.mxu2 %v1645_v3  ;;  %v1840_v3 = vld [vmem:[#allocation2 + $0x169] sm:$0xff] }
 0x1fe   : > { %v1844_v44 = vld [vmem:[#allocation2 + $0x199] sm:$0xff] }
 0x1ff   : > { %1954 = vmatmul.f32.gmra.mxu3 %v1839_v11 }
 0x200   : > { %v1845_v31 = vld [vmem:[#allocation2 + $0x1a1] sm:$0xff] }
 0x201   : > { %v5530_v53 = vpop.f32.mrf.mxu0 }
 0x204   : > { %1374 = vmatmul.f32.gmra.mxu0 %v1838_v10 }
 0x205   : > { %1568 = vmatmul.f32.gmra.mxu1 %v5532_v19  ;;  %1763 = vmatmul.f32.gmra.mxu2 %v1646_v46  ;;  %v1648_v46 = vld [vmem:[#allocation2 + $0x180] sm:$0xff] }
 0x207   : > { %1957 = vmatmul.f32.gmra.mxu3 %v1840_v3 }
 0x209   : > { %v5542_v27 = vpop.f32.mrf.mxu0 }
 0x20c   : > { %1377 = vmatmul.f32.gmra.mxu0 %v1839_v11  ;;  %v3955_v11 = vld [vmem:[%s7356_s2 + $0x400] sm:$0xff] }
 0x20d   : > { %1571 = vmatmul.f32.gmra.mxu1 %v5544_v47  ;;  %1766 = vmatmul.f32.gmra.mxu2 %v1647_v54  ;;  %v1260_v54 = vld [vmem:[#allocation2 + $0x171] sm:$0xff] }
 0x20e   : > { %2072 = vmatpush.msra.mxu0 %v3955_v11  ;;  %v5571_v11 = vld [vmem:[#allocation2 + $0x18a] sm:$0xff] }
 0x20f   : > { %1960 = vmatmul.f32.gmra.mxu3 %v5338_v36 }
 0x211   : > { %v5548_v10 = vpop.f32.mrf.mxu0 }
 0x214   : > { %1380 = vmatmul.f32.gmra.mxu0 %v1840_v3  ;;  %v5566_v3 = vld [vmem:[#allocation2 + $0x182] sm:$0xff] }
 0x215   : > { %1574 = vmatmul.f32.gmra.mxu1 %v5550_v8  ;;  %1769 = vmatmul.f32.gmra.mxu2 %v1648_v46 }
 0x217   : > { %1963 = vmatmul.f32.gmra.mxu3 %v1842_v48 }
 0x219   : > { %v5559_v36 = vpop.f32.mrf.mxu0 }
 0x21c   : > { %1383 = vmatmul.f32.gmra.mxu0 %v1260_v54 }
 0x21d   : > { %1577 = vmatmul.f32.gmra.mxu1 %v5561_v42  ;;  %1772 = vmatmul.f32.gmra.mxu2 %v1649_v23 }
 0x21f   : > { %1966 = vmatmul.f32.gmra.mxu3 %v1843_v60 }
 0x221   : > { %v5564_v0 = vpop.f32.mrf.mxu0 }
 0x224   : > { %1386 = vmatmul.f32.gmra.mxu0 %v1842_v48  ;;  %v3985_v48 = vld [vmem:[%s7358_s4 + $0xf0] sm:$0xff] }
 0x225   : > { %1580 = vmatmul.f32.gmra.mxu1 %v5566_v3  ;;  %1775 = vmatmul.f32.gmra.mxu2 %v462_v30 }
 0x227   : > { %1969 = vmatmul.f32.gmra.mxu3 %v1844_v44 }
 0x229   : > { %v5569_v46 = vpop.f32.mrf.mxu0 }
 0x22c   : > { %1389 = vmatmul.f32.gmra.mxu0 %v1843_v60 }
 0x22d   : > { %1583 = vmatmul.f32.gmra.mxu1 %v5571_v11  ;;  %1778 = vmatmul.f32.gmra.mxu2 %v463_v4  ;;  %v4001_v4 = vld [vmem:[%s7358_s4 + $0x170] sm:$0xff] }
 0x22f   : > { %1972 = vmatmul.f32.gmra.mxu3 %v1845_v31 }
 0x231   : > { %v5574_v54 = vpop.f32.mrf.mxu0 }
 0x234   : > { %2073 = vmatmul.f32.vlgmr.msra.gmra.mxu0 %v5352_v9 }
 0x239   : > { %v5577_v23 = vpop.f32.mrf.mxu0 }
 0x23c   : > { %2076 = vmatmul.f32.gmra.mxu0 %v5360_v26 }
 0x241   : > { %v5580_v30 = vpop.f32.mrf.mxu0 }
 0x244   : > { %2079 = vmatmul.f32.gmra.mxu0 %v5365_v13  ;;  %v2441_v13 = vld [vmem:[%s7358_s4 + $0x78] sm:$0xff] }
 0x245   : > { %2508 = vmatpush.msra.mxu2 %v2441_v13 }
 0x249   : > { %v5583_v44 = vpop.f32.mrf.mxu0 }
 0x24c   : > { %2082 = vmatmul.f32.gmra.mxu0 %v5373_v38  ;;  %v4002_v38 = vld [vmem:[%s7358_s4 + $0x178] sm:$0xff] }
 0x24d   : > { %2574 = vmatpush.msra.mxu3 %v4002_v38  ;;  %v4000_v38 = vld [vmem:[%s7358_s4 + $0x168] sm:$0xff] }
 0x24f   : > { %2575 = vmatpush.msra.mxu3 %v4001_v4  ;;  %v3982_v4 = vld [vmem:[%s7358_s4 + $0xd8] sm:$0xff] }
 0x251   : > { %v5586_v60 = vpop.f32.mrf.mxu0  ;;  %2576 = vmatpush.msra.mxu3 %v4000_v38  ;;  %v3999_v38 = vld [vmem:[%s7358_s4 + $0x160] sm:$0xff] }
 0x253   : > { %2577 = vmatpush.msra.mxu3 %v3999_v38 }
 0x254   : > { %2085 = vmatmul.f32.gmra.mxu0 %v5378_v12  ;;  %v3986_v12 = vld [vmem:[%s7358_s4 + $0xf8] sm:$0xff] }
 0x255   : > { %2467 = vmatpush.msra.mxu1 %v3986_v12  ;;  %v3984_v12 = vld [vmem:[%s7358_s4 + $0xe8] sm:$0xff] }
 0x257   : > { %2468 = vmatpush.msra.mxu1 %v3985_v48  ;;  %v3981_v48 = vld [vmem:[%s7358_s4 + $0xd0] sm:$0xff] }
 0x259   : > { %v5589_v31 = vpop.f32.mrf.mxu0  ;;  %2469 = vmatpush.msra.mxu1 %v3984_v12  ;;  %v3979_v12 = vld [vmem:[%s7358_s4 + $0xc0] sm:$0xff] }
 0x25c   : > { %2088 = vmatmul.f32.gmra.mxu0 %v5386_v21 }
 0x261   : > { %v5592_v9 = vpop.f32.mrf.mxu0 }
 0x264   : > { %2091 = vmatmul.f32.gmra.mxu0 %v5391_v40 }
 0x269   : > { %v5595_v26 = vpop.f32.mrf.mxu0 }
 0x26a   : > { %7379 = vst [vmem:[#allocation24_spill] sm:$0xff] %v5595_v26 }
 0x26c   : > { %2094 = vmatmul.f32.gmra.mxu0 %v5399_v62  ;;  %v2440_v62 = vld [vmem:[%s7358_s4 + $0x70] sm:$0xff] }
 0x26d   : > { %2509 = vmatpush.msra.mxu2 %v2440_v62 }
 0x271   : > { %v5607_v21 = vpop.f32.mrf.mxu0 }
 0x272   : > { %7380 = vst [vmem:[#allocation25_spill] sm:$0xff] %v5607_v21 }
 0x274   : > { %2097 = vmatmul.f32.gmra.mxu0 %v5404_v16 }
 0x279   : > { %v5610_v40 = vpop.f32.mrf.mxu0 }
 0x27a   : > { %7381 = vst [vmem:[#allocation26_spill] sm:$0xff] %v5610_v40 }
 0x27c   : > { %2100 = vmatmul.f32.gmra.mxu0 %v5412_v59  ;;  %v2439_v59 = vld [vmem:[%s7358_s4 + $0x68] sm:$0xff] }
 0x27d   : > { %2510 = vmatpush.msra.mxu2 %v2439_v59  ;;  %v3980_v59 = vld [vmem:[%s7358_s4 + $0xc8] sm:$0xff] }
 0x281   : > { %v5622_v16 = vpop.f32.mrf.mxu0 }
 0x282   : > { %7382 = vst [vmem:[#allocation27_spill] sm:$0xff] %v5622_v16 }
 0x284   : > { %2103 = vmatmul.f32.gmra.mxu0 %v5417_v56 }
 0x289   : > { %v5625_v13 = vpop.f32.mrf.mxu0 }
 0x28a   : > { %7383 = vst [vmem:[#allocation28_spill] sm:$0xff] %v5625_v13 }
 0x28c   : > { %2106 = vmatmul.f32.gmra.mxu0 %v5425_v25  ;;  %v3983_v25 = vld [vmem:[%s7358_s4 + $0xe0] sm:$0xff] }
 0x28d   : > { %2470 = vmatpush.msra.mxu1 %v3983_v25  ;;  %v2437_v25 = vld [vmem:[%s7358_s4 + $0x58] sm:$0xff] }
 0x28f   : > { %2471 = vmatpush.msra.mxu1 %v3982_v4  ;;  %v3998_v4 = vld [vmem:[%s7358_s4 + $0x158] sm:$0xff] }
 0x290   : > { %2578 = vmatpush.msra.mxu3 %v3998_v4  ;;  %v3976_v4 = vld [vmem:[%s7358_s4 + $0xa8] sm:$0xff] }
 0x291   : > { %v5637_v56 = vpop.f32.mrf.mxu0  ;;  %2472 = vmatpush.msra.mxu1 %v3981_v48  ;;  %v3978_v48 = vld [vmem:[%s7358_s4 + $0xb8] sm:$0xff] }
 0x292   : > { %7384 = vst [vmem:[#allocation29_spill] sm:$0xff] %v5637_v56 }
 0x293   : > { %2473 = vmatpush.msra.mxu1 %v3980_v59  ;;  %v3997_v59 = vld [vmem:[%s7358_s4 + $0x150] sm:$0xff] }
 0x294   : > { %2109 = vmatmul.f32.gmra.mxu0 %v5430_v50  ;;  %2579 = vmatpush.msra.mxu3 %v3997_v59  ;;  %v3975_v59 = vld [vmem:[%s7358_s4 + $0xa0] sm:$0xff] }
 0x295   : > { %2474 = vmatpush.msra.mxu1 %v3979_v12  ;;  %v2435_v12 = vld [vmem:[%s7358_s4 + $0x48] sm:$0xff] }
 0x297   : > { %2475 = vmatpush.msra.mxu1 %v3978_v48  ;;  %v2434_v48 = vld [vmem:[%s7358_s4 + $0x40] sm:$0xff] }
 0x299   : > { %v5640_v62 = vpop.f32.mrf.mxu0 }
 0x29a   : > { %7385 = vst [vmem:[#allocation30_spill] sm:$0xff] %v5640_v62 }
 0x29c   : > { %2112 = vmatmul.f32.gmra.mxu0 %v5438_v2  ;;  %v2438_v2 = vld [vmem:[%s7358_s4 + $0x60] sm:$0xff] }
 0x29d   : > { %2511 = vmatpush.msra.mxu2 %v2438_v2  ;;  %v3977_v2 = vld [vmem:[%s7358_s4 + $0xb0] sm:$0xff] }
 0x29e   : > { %2476 = vmatpush.msra.mxu1 %v3977_v2  ;;  %v2433_v2 = vld [vmem:[%s7358_s4 + $0x38] sm:$0xff] }
 0x29f   : > { %2512 = vmatpush.msra.mxu2 %v2437_v25  ;;  %v3996_v25 = vld [vmem:[%s7358_s4 + $0x148] sm:$0xff] }
 0x2a0   : > { %2580 = vmatpush.msra.mxu3 %v3996_v25  ;;  %2477 = vmatpush.msra.mxu1 %v3976_v4  ;;  %v3974_v25 = vld [vmem:[%s7358_s4 + $0x98] sm:$0xff]  ;;  %v4456_v4 = vmov 0.0  }
 0x2a1   : > { %v5652_v50 = vpop.f32.mrf.mxu0  ;;  %2389 = vst [vmem:[#allocation4] sm:$0xff] %v4456_v4 }
 0x2a2   : > { %7386 = vst [vmem:[#allocation31_spill] sm:$0xff] %v5652_v50  ;;  %2478 = vmatpush.msra.mxu1 %v3975_v59  ;;  %v5730_v59 = vld [vmem:[%s7357_s3] ss:$0 sm:$0xff] }
 0x2a3   : > { %2390 = vst [vmem:[#allocation4 + $0x8] sm:$0x3] %v4456_v4  ;;  %v3971_v50 = vld [vmem:[%s7358_s4 + $0x80] sm:$0xff] }
 0x2a4   : > { %2115 = vmatmul.f32.gmra.mxu0 %v5443_v52  ;;  %v2436_v52 = vld [vmem:[%s7358_s4 + $0x50] sm:$0xff]  ;;  %2479 = vmatpush.msra.mxu1 %v3974_v25  ;;  %2391 = vst [vmem:[#allocation4 + $0x10] sm:$0xff] %v4456_v4  ;;  %v3992_v25 = vld [vmem:[%s7358_s4 + $0x128] sm:$0xff] }
 0x2a5   : > { %2513 = vmatpush.msra.mxu2 %v2436_v52  ;;  %v3995_v52 = vld [vmem:[%s7358_s4 + $0x140] sm:$0xff]  ;;  %2392 = vst [vmem:[#allocation4 + $0x18] sm:$0x3] %v4456_v4 }
 0x2a6   : > { %2581 = vmatpush.msra.mxu3 %v3995_v52  ;;  %v3973_v52 = vld [vmem:[%s7358_s4 + $0x90] sm:$0xff]  ;;  %2393 = vst [vmem:[#allocation4 + $0x20] sm:$0xff] %v4456_v4 }
 0x2a7   : > { %2514 = vmatpush.msra.mxu2 %v2435_v12  ;;  %v3994_v12 = vld [vmem:[%s7358_s4 + $0x138] sm:$0xff]  ;;  %2480 = vmatpush.msra.mxu1 %v3973_v52  ;;  %2394 = vst [vmem:[#allocation4 + $0x28] sm:$0x3] %v4456_v4  ;;  %v3991_v52 = vld [vmem:[%s7358_s4 + $0x120] sm:$0xff] }
 0x2a8   : > { %2582 = vmatpush.msra.mxu3 %v3994_v12  ;;  %v2431_v12 = vld [vmem:[%s7358_s4 + $0x28] sm:$0xff]  ;;  %2395 = vst [vmem:[#allocation4 + $0x30] sm:$0xff] %v4456_v4 }
 0x2a9   : > { %v5685_v38 = vpop.f32.mrf.mxu0  ;;  %2515 = vmatpush.msra.mxu2 %v2434_v48  ;;  %v3993_v48 = vld [vmem:[%s7358_s4 + $0x130] sm:$0xff]  ;;  %2396 = vst [vmem:[#allocation4 + $0x38] sm:$0x3] %v4456_v4 }
 0x2aa   : > { %7387 = vst [vmem:[#allocation32_spill] sm:$0xff] %v5685_v38  ;;  %2583 = vmatpush.msra.mxu3 %v3993_v48  ;;  %v3972_v38 = vld [vmem:[%s7358_s4 + $0x88] sm:$0xff]  ;;  %v2430_v48 = vld [vmem:[%s7358_s4 + $0x20] sm:$0xff] }
 0x2ab   : > { %2516 = vmatpush.msra.mxu2 %v2433_v2  ;;  %2481 = vmatpush.msra.mxu1 %v3972_v38  ;;  %v3990_v38 = vld [vmem:[%s7358_s4 + $0x118] sm:$0xff]  ;;  %2397 = vst [vmem:[#allocation4 + $0x40] sm:$0xff] %v4456_v4 }
 0x2ac   : > { %2118 = vmatmul.f32.gmra.mxu0 %v5452_v29  ;;  %v2432_v29 = vld [vmem:[%s7358_s4 + $0x30] sm:$0xff]  ;;  %2584 = vmatpush.msra.mxu3 %v3992_v25  ;;  %v5765_v25 = vpop.f32.mrf.mxu1  ;;  %2398 = vst [vmem:[#allocation4 + $0x48] sm:$0x3] %v4456_v4 }
 0x2ad   : > { %2517 = vmatpush.msra.mxu2 %v2432_v29  ;;  %2482 = vmatpush.msra.mxu1 %v3971_v50  ;;  %v3989_v50 = vld [vmem:[%s7358_s4 + $0x110] sm:$0xff]  ;;  %2399 = vst [vmem:[#allocation4 + $0x50] sm:$0xff] %v4456_v4 }
 0x2ae   : > { %2585 = vmatpush.msra.mxu3 %v3991_v52  ;;  %v5777_v52 = vpop.f32.mrf.mxu3  ;;  %2400 = vst [vmem:[#allocation4 + $0x58] sm:$0x3] %v4456_v4 }
 0x2af   : > { %2518 = vmatpush.msra.mxu2 %v2431_v12  ;;  %v2442_v12 = vld [vmem:[#allocation4 + $0x1] sm:$0xff]  ;;  %2401 = vst [vmem:[#allocation4 + $0x60] sm:$0xff] %v4456_v4 }
 0x2b0   : > { %2483 = vmatmul.f32.vlgmr.msra.gmra.mxu1 %v2442_v12  ;;  %2586 = vmatpush.msra.mxu3 %v3990_v38  ;;  %v3988_v38 = vld [vmem:[%s7358_s4 + $0x108] sm:$0xff]  ;;  %2402 = vst [vmem:[#allocation4 + $0x68] sm:$0x3] %v4456_v4 }
 0x2b1   : > { %v2074_v2 = vpop.f32.mrf.mxu0  ;;  %2519 = vmatpush.msra.mxu2 %v2430_v48  ;;  %v2428_v48 = vld [vmem:[%s7358_s4 + $0x10] sm:$0xff]  ;;  %2403 = vst [vmem:[#allocation4 + $0x70] sm:$0xff] %v4456_v4 }
 0x2b2   : > { %v2170_v29 = vadd.f32 %v2074_v2, %v5455_v35  ;;  %v2429_v2 = vld [vmem:[%s7358_s4 + $0x18] sm:$0xff]  ;;  %2587 = vmatpush.msra.mxu3 %v3989_v50  ;;  %2404 = vst [vmem:[#allocation4 + $0x78] sm:$0x3] %v4456_v4 }
 0x2b3   : > { %2520 = vmatpush.msra.mxu2 %v2429_v2  ;;  %v2427_v2 = vld [vmem:[%s7358_s4 + $0x8] sm:$0xff]  ;;  %2405 = vst [vmem:[#allocation4 + $0x80] sm:$0xff] %v4456_v4 }
 0x2b4   : > { %v2206_v35 = vadd.f32 %v5730_v59, %v2170_v29  ;;  %2121 = vmatmul.f32.gmra.mxu0 %v5458_v17  ;;  %v5768_v17 = vpop.f32.mrf.mxu2  ;;  %2588 = vmatpush.msra.mxu3 %v3988_v38  ;;  %2406 = vst [vmem:[#allocation4 + $0x88] sm:$0x3] %v4456_v4 }
 0x2b5   : > { %2521 = vmatpush.msra.mxu2 %v2428_v48  ;;  %v3987_v48 = vld [vmem:[%s7358_s4 + $0x100] sm:$0xff]  ;;  %2407 = vst [vmem:[#allocation4 + $0x90] sm:$0xff] %v4456_v4 }
 0x2b6   : > { %v2238_v29 = vmax.f32 %v2206_v35, 0.0  ;;  %2589 = vmatpush.msra.mxu3 %v3987_v48  ;;  %2408 = vst [vmem:[#allocation4 + $0x98] sm:$0x3] %v4456_v4 }
 0x2b7   : > { %2522 = vmatpush.msra.mxu2 %v2427_v2  ;;  %v5802_v2 = vpop.f32.mrf.mxu1 }
 0x2b8   : > { %2270 = vst [vmem:[#allocation3] sm:$0xff] %v2238_v29  ;;  %v2426_v29 = vld [vmem:[%s7358_s4] sm:$0xff] }
 0x2b9   : > { %v2077_v35 = vpop.f32.mrf.mxu0  ;;  %2523 = vmatpush.msra.mxu2 %v2426_v29  ;;  %v5809_v29 = vpop.f32.mrf.mxu3 }
 0x2ba   : > { %v2171_v12 = vadd.f32 %v2077_v35, %v5461_v24  ;;  %v2549_v24 = vld [vmem:[#allocation4 + $0x2] sm:$0xff]  ;;  %2524 = vmatmul.f32.vlgmr.msra.gmra.mxu2 %v4456_v4 }
 0x2bb   : > { %2590 = vmatmul.f32.vlgmr.msra.gmra.mxu3 %v2549_v24 }
 0x2bc   : > { %v2207_v50 = vadd.f32 %v5730_v59, %v2171_v12  ;;  %2124 = vmatmul.f32.gmra.mxu0 %v5467_v18  ;;  %v5804_v38 = vpop.f32.mrf.mxu2 }
 0x2be   : > { %v2239_v35 = vmax.f32 %v2207_v50, 0.0 }
 0x2bf   : > { %v5813_v62 = vpop.f32.mrf.mxu1 }
 0x2c0   : > { %2271 = vst [vmem:[#allocation3 + $0x8] sm:$0xff] %v2239_v35 }
 0x2c1   : > { %v2080_v18 = vpop.f32.mrf.mxu0 }
 0x2c2   : > { %v2172_v12 = vadd.f32 %v2080_v18, %v5470_v41  ;;  %v5820_v41 = vpop.f32.mrf.mxu3 }
 0x2c4   : > { %v2208_v48 = vadd.f32 %v5730_v59, %v2172_v12  ;;  %2127 = vmatmul.f32.gmra.mxu0 %v5473_v5  ;;  %v5816_v56 = vpop.f32.mrf.mxu2 }
 0x2c6   : > { %v2240_v50 = vmax.f32 %v2208_v48, 0.0 }
 0x2c7   : > { %v5823_v12 = vpop.f32.mrf.mxu1 }
 0x2c8   : > { %2272 = vst [vmem:[#allocation3 + $0x10] sm:$0xff] %v2240_v50  ;;  %v2302_v50 = vld [vmem:[#allocation3] ss:$2 sm:$0xff] }
 0x2c9   : > { %v2083_v24 = vpop.f32.mrf.mxu0 }
 0x2ca   : > { %v2173_v35 = vadd.f32 %v2083_v24, %v5476_v33  ;;  %v2334_v24 = vld [vmem:[#allocation3 + $0x1] ss:$2 sm:$0xff]  ;;  %v5829_v16 = vpop.f32.mrf.mxu3 }
 0x2cc   : > { %v2209_v13 = vadd.f32 %v5730_v59, %v2173_v35  ;;  %2130 = vmatmul.f32.gmra.mxu0 %v5482_v34  ;;  %v5827_v33 = vpop.f32.mrf.mxu2 }
 0x2ce   : > { %v2241_v4 = vmax.f32 %v2209_v13, 0.0  ;;  %v2365_v13 = vmax.f32 %v2302_v50, %v2334_v24 }
 0x2d0   : > { %2273 = vst [vmem:[#allocation3 + $0x18] sm:$0xff] %v2241_v4 }
 0x2d1   : > { %v2086_v18 = vpop.f32.mrf.mxu0 }
 0x2d2   : > { %v2174_v5 = vadd.f32 %v2086_v18, %v5485_v57 }
 0x2d4   : > { %v2210_v48 = vadd.f32 %v5730_v59, %v2174_v5  ;;  %2133 = vmatmul.f32.gmra.mxu0 %v5488_v58  ;;  %v5838_v58 = vpop.f32.mrf.mxu1  ;;  %v5840_v26 = vpop.f32.mrf.mxu2 }
 0x2d6   : > { %v2242_v35 = vmax.f32 %v2210_v48, 0.0 }
 0x2d7   : > { %v2304_v34 = vld [vmem:[#allocation3 + $0x10] ss:$2 sm:$0xff]  ;;  %v2336_v40 = vld [vmem:[#allocation3 + $0x11] ss:$2 sm:$0xff] }
 0x2d8   : > { %v2366_v4 = vmax.f32 %v2304_v34, %v2336_v40  ;;  %2274 = vst [vmem:[#allocation3 + $0x20] sm:$0xff] %v2242_v35  ;;  %v5842_v40 = vpop.f32.mrf.mxu3  ;;  %v1401_v35 = vadd.f32 %v5503_v63, %v5161_v32  ;;  %v1402_v32 = vadd.f32 %v5517_v37, %v5205_v61 }
 0x2d9   : > { %v2089_v21 = vpop.f32.mrf.mxu0 }
 0x2da   : > { %v2175_v57 = vadd.f32 %v2089_v21, %v5491_v45  ;;  %v5832_v18 = vmax.f32 %v2365_v13, %v2366_v4 }
 0x2dc   : > { %v2211_v5 = vadd.f32 %v5730_v59, %v2175_v57  ;;  %2136 = vmatmul.f32.gmra.mxu0 %v5497_v20  ;;  %2410 = vst [vmem:[#allocation4 + $0x11] sm:$0xff] %v5832_v18  ;;  %2486 = vmatmul.f32.gmra.mxu1 %v5832_v18  ;;  %v5855_v13 = vpop.f32.mrf.mxu1  ;;  %v1595_v57 = vadd.f32 %v5765_v25, %v1401_v35 }
 0x2dd   : > { %v1596_v25 = vadd.f32 %v5802_v2, %v1402_v32 }
 0x2de   : > { %v2243_v48 = vmax.f32 %v2211_v5, 0.0 }
 0x2e0   : > { %2275 = vst [vmem:[#allocation3 + $0x28] sm:$0xff] %v2243_v48  ;;  %v5861_v48 = vpop.f32.mrf.mxu3 }
 0x2e1   : > { %v2092_v50 = vpop.f32.mrf.mxu0 }
 0x2e2   : > { %v2176_v45 = vadd.f32 %v2092_v50, %v5500_v7  ;;  %v5857_v7 = vpop.f32.mrf.mxu2 }
 0x2e3   : > { %v5845_v21 = vld [vmem:[#allocation4 + $0x10] sm:$0xff] }
 0x2e4   : > { %v5847_v24 = vld [vmem:[#allocation4 + $0x12] sm:$0xff]  ;;  %v2212_v20 = vadd.f32 %v5730_v59, %v2176_v45  ;;  %2139 = vmatmul.f32.gmra.mxu0 %v5505_v55  ;;  %2527 = vmatmul.f32.gmra.mxu2 %v5845_v21  ;;  %v1790_v55 = vadd.f32 %v5768_v17, %v1595_v57  ;;  %v5870_v35 = vpop.f32.mrf.mxu1  ;;  %v1791_v17 = vadd.f32 %v5804_v38, %v1596_v25 }
 0x2e5   : > { %2593 = vmatmul.f32.gmra.mxu3 %v5847_v24 }
 0x2e6   : > { %v2244_v34 = vmax.f32 %v2212_v20, 0.0  ;;  %v1984_v45 = vadd.f32 %v5777_v52, %v1790_v55  ;;  %v1403_v52 = vadd.f32 %v5530_v53, %v5246_v22  ;;  %v1985_v55 = vadd.f32 %v5809_v29, %v1791_v17 }
 0x2e7   : > { %v2306_v61 = vld [vmem:[#allocation3 + $0x20] ss:$2 sm:$0xff]  ;;  %v2338_v37 = vld [vmem:[#allocation3 + $0x21] ss:$2 sm:$0xff] }
 0x2e8   : > { %2276 = vst [vmem:[#allocation3 + $0x30] sm:$0xff] %v2244_v34 }
 0x2e9   : > { %v2095_v4 = vpop.f32.mrf.mxu0 }
 0x2ea   : > { %v2177_v5 = vadd.f32 %v2095_v4, %v5507_v6  ;;  %v5872_v34 = vpop.f32.mrf.mxu2 }
 0x2ec   : > { %v2213_v50 = vadd.f32 %v5730_v59, %v2177_v5  ;;  %2142 = vmatmul.f32.gmra.mxu0 %v5519_v43  ;;  %v5877_v43 = vpop.f32.mrf.mxu3  ;;  %v5886_v25 = vpop.f32.mrf.mxu1 }
 0x2ee   : > { %v2245_v63 = vmax.f32 %v2213_v50, 0.0  ;;  %v2367_v50 = vmax.f32 %v2306_v61, %v2338_v37 }
 0x2f0   : > { %2277 = vst [vmem:[#allocation3 + $0x38] sm:$0xff] %v2245_v63  ;;  %v1597_v63 = vadd.f32 %v5813_v62, %v1403_v52  ;;  %v1404_v62 = vadd.f32 %v5542_v27, %v5290_v51  ;;  %v1405_v51 = vadd.f32 %v5548_v10, %v5327_v15  ;;  %v1406_v15 = vadd.f32 %v5559_v36, %v5334_v28 }
 0x2f1   : > { %v2098_v20 = vpop.f32.mrf.mxu0 }
 0x2f2   : > { %v2178_v6 = vadd.f32 %v2098_v20, %v1984_v45  ;;  %v1792_v20 = vadd.f32 %v5816_v56, %v1597_v63  ;;  %v5892_v53 = vpop.f32.mrf.mxu2 }
 0x2f4   : > { %v2214_v4 = vadd.f32 %v5730_v59, %v2178_v6  ;;  %2145 = vmatmul.f32.gmra.mxu0 %v5532_v19  ;;  %v5896_v6 = vpop.f32.mrf.mxu3  ;;  %v1986_v56 = vadd.f32 %v5820_v41, %v1792_v20  ;;  %v5911_v27 = vpop.f32.mrf.mxu1 }
 0x2f6   : > { %v2246_v57 = vmax.f32 %v2214_v4, 0.0  ;;  %v1598_v4 = vadd.f32 %v5823_v12, %v1404_v62 }
 0x2f7   : > { %v2308_v2 = vld [vmem:[#allocation3 + $0x30] ss:$2 sm:$0xff]  ;;  %v2340_v5 = vld [vmem:[#allocation3 + $0x31] ss:$2 sm:$0xff] }
 0x2f8   : > { %v2368_v32 = vmax.f32 %v2308_v2, %v2340_v5  ;;  %2278 = vst [vmem:[#allocation3 + $0x40] sm:$0xff] %v2246_v57  ;;  %v1793_v52 = vadd.f32 %v5827_v33, %v1598_v4 }
 0x2f9   : > { %v2101_v38 = vpop.f32.mrf.mxu0 }
 0x2fa   : > { %v2179_v45 = vadd.f32 %v2101_v38, %v1985_v55  ;;  %v5883_v19 = vmax.f32 %v2367_v50, %v2368_v32  ;;  %v5913_v12 = vpop.f32.mrf.mxu2  ;;  %v1987_v2 = vadd.f32 %v5829_v16, %v1793_v52 }
 0x2fc   : > { %v2215_v22 = vadd.f32 %v5730_v59, %v2179_v45  ;;  %2148 = vmatmul.f32.gmra.mxu0 %v5544_v47  ;;  %2411 = vst [vmem:[#allocation4 + $0x21] sm:$0xff] %v5883_v19  ;;  %2489 = vmatmul.f32.gmra.mxu1 %v5883_v19  ;;  %v5916_v33 = vpop.f32.mrf.mxu3  ;;  %v5925_v16 = vpop.f32.mrf.mxu1 }
 0x2fe   : > { %v2247_v29 = vmax.f32 %v2215_v22, 0.0 }
 0x300   : > { %2279 = vst [vmem:[#allocation3 + $0x48] sm:$0xff] %v2247_v29 }
 0x301   : > { %v2104_v17 = vpop.f32.mrf.mxu0 }
 0x302   : > { %v2180_v61 = vadd.f32 %v2104_v17, %v1986_v56  ;;  %v5927_v63 = vpop.f32.mrf.mxu2 }
 0x303   : > { %v5900_v47 = vld [vmem:[#allocation4 + $0x20] sm:$0xff] }
 0x304   : > { %v5902_v37 = vld [vmem:[#allocation4 + $0x22] sm:$0xff]  ;;  %v2216_v57 = vadd.f32 %v5730_v59, %v2180_v61  ;;  %2151 = vmatmul.f32.gmra.mxu0 %v5550_v8  ;;  %2530 = vmatmul.f32.gmra.mxu2 %v5900_v47  ;;  %v1599_v8 = vadd.f32 %v5838_v58, %v1405_v51  ;;  %v1600_v58 = vadd.f32 %v5855_v13, %v1406_v15  ;;  %v5939_v52 = vpop.f32.mrf.mxu1 }
 0x305   : > { %2596 = vmatmul.f32.gmra.mxu3 %v5902_v37 }
 0x306   : > { %v2248_v41 = vmax.f32 %v2216_v57, 0.0  ;;  %v1794_v50 = vadd.f32 %v5840_v26, %v1599_v8  ;;  %v5930_v26 = vpop.f32.mrf.mxu3  ;;  %v1795_v22 = vadd.f32 %v5857_v7, %v1600_v58  ;;  %v2038_v8 = vld [vmem:[#allocation2 + $0x19a] sm:$0xff]  ;;  %v2039_v58 = vld [vmem:[#allocation2 + $0x1a2] sm:$0xff] }
 0x307   : > { %v2310_v28 = vld [vmem:[#allocation3 + $0x40] ss:$2 sm:$0xff]  ;;  %v2342_v36 = vld [vmem:[#allocation3 + $0x41] ss:$2 sm:$0xff] }
 0x308   : > { %2280 = vst [vmem:[#allocation3 + $0x50] sm:$0xff] %v2248_v41  ;;  %v1988_v38 = vadd.f32 %v5842_v40, %v1794_v50  ;;  %v1407_v40 = vadd.f32 %v5564_v0, %v5340_v39  ;;  %v1989_v17 = vadd.f32 %v5861_v48, %v1795_v22  ;;  %v2369_v13 = vmax.f32 %v2310_v28, %v2342_v36 }
 0x309   : > { %v2107_v5 = vpop.f32.mrf.mxu0  ;;  %v1410_v28 = vadd.f32 %v5577_v23, %v5354_v14 }
 0x30a   : > { %v2181_v55 = vadd.f32 %v2107_v5, %v1987_v2  ;;  %v1601_v7 = vadd.f32 %v5870_v35, %v1407_v40  ;;  %v5943_v51 = vpop.f32.mrf.mxu2  ;;  %v1408_v35 = vadd.f32 %v5569_v46, %v5345_v49  ;;  %v1409_v46 = vadd.f32 %v5574_v54, %v5350_v1 }
 0x30c   : > { %v2217_v32 = vadd.f32 %v5730_v59, %v2181_v55  ;;  %2154 = vmatmul.f32.gmra.mxu0 %v5561_v42  ;;  %v1796_v39 = vadd.f32 %v5872_v34, %v1601_v7  ;;  %v1602_v34 = vadd.f32 %v5886_v25, %v1408_v35  ;;  %v1548_v15 = vpop.f32.mrf.mxu1 }
 0x30e   : > { %v2249_v10 = vmax.f32 %v2217_v32, 0.0  ;;  %v5950_v48 = vpop.f32.mrf.mxu3  ;;  %v1990_v2 = vadd.f32 %v5877_v43, %v1796_v39  ;;  %v1797_v32 = vadd.f32 %v5892_v53, %v1602_v34  ;;  %v1603_v53 = vadd.f32 %v5911_v27, %v1409_v46 }
 0x310   : > { %2281 = vst [vmem:[#allocation3 + $0x58] sm:$0xff] %v2249_v10  ;;  %v1798_v22 = vadd.f32 %v5913_v12, %v1603_v53 }
 0x311   : > { %v2110_v45 = vpop.f32.mrf.mxu0 }
 0x312   : > { %v2182_v20 = vadd.f32 %v2110_v45, %v1988_v38  ;;  %v1743_v49 = vpop.f32.mrf.mxu2  ;;  %v1991_v38 = vadd.f32 %v5896_v6, %v1797_v32  ;;  %v1992_v40 = vadd.f32 %v5916_v33, %v1798_v22 }
 0x314   : > { %v2218_v42 = vadd.f32 %v5730_v59, %v2182_v20  ;;  %2157 = vmatmul.f32.gmra.mxu0 %v5566_v3  ;;  %v1551_v36 = vpop.f32.mrf.mxu1 }
 0x316   : > { %v2250_v62 = vmax.f32 %v2218_v42, 0.0  ;;  %v1937_v25 = vpop.f32.mrf.mxu3 }
 0x317   : > { %v2312_v29 = vld [vmem:[#allocation3 + $0x50] ss:$2 sm:$0xff]  ;;  %v2344_v56 = vld [vmem:[#allocation3 + $0x51] ss:$2 sm:$0xff] }
 0x318   : > { %v2370_v4 = vmax.f32 %v2312_v29, %v2344_v56  ;;  %2282 = vst [vmem:[#allocation3 + $0x60] sm:$0xff] %v2250_v62  ;;  %v1604_v29 = vadd.f32 %v5925_v16, %v1410_v28 }
 0x319   : > { %v2113_v61 = vpop.f32.mrf.mxu0 }
 0x31a   : > { %v2183_v57 = vadd.f32 %v2113_v61, %v1989_v17  ;;  %v5941_v3 = vmax.f32 %v2369_v13, %v2370_v4  ;;  %v1746_v54 = vpop.f32.mrf.mxu2  ;;  %v1799_v56 = vadd.f32 %v5927_v63, %v1604_v29  ;;  %v7388_v4 = vld [vmem:[#allocation10_spill] sm:$0xff] }
 0x31b   : > { %v1411_v14 = vadd.f32 %v5580_v30, %v7388_v4 }
 0x31c   : > { %v2219_v0 = vadd.f32 %v5730_v59, %v2183_v57  ;;  %2160 = vmatmul.f32.gmra.mxu0 %v5571_v11  ;;  %2412 = vst [vmem:[#allocation4 + $0x31] sm:$0xff] %v5941_v3  ;;  %2492 = vmatmul.f32.gmra.mxu1 %v5941_v3  ;;  %v1993_v33 = vadd.f32 %v5930_v26, %v1799_v56  ;;  %v1554_v57 = vpop.f32.mrf.mxu1  ;;  %v7389_v26 = vld [vmem:[#allocation11_spill] sm:$0xff] }
 0x31d   : > { %v1605_v63 = vadd.f32 %v5939_v52, %v1411_v14  ;;  %v1412_v34 = vadd.f32 %v5583_v44, %v7389_v26 }
 0x31e   : > { %v2251_v41 = vmax.f32 %v2219_v0, 0.0  ;;  %v1940_v6 = vpop.f32.mrf.mxu3 }
 0x320   : > { %2283 = vst [vmem:[#allocation3 + $0x68] sm:$0xff] %v2251_v41 }
 0x321   : > { %v2116_v5 = vpop.f32.mrf.mxu0 }
 0x322   : > { %v2184_v55 = vadd.f32 %v2116_v5, %v1990_v2  ;;  %v1749_v16 = vpop.f32.mrf.mxu2 }
 0x323   : > { %v5956_v50 = vld [vmem:[#allocation4 + $0x30] sm:$0xff] }
 0x324   : > { %v5958_v11 = vld [vmem:[#allocation4 + $0x32] sm:$0xff]  ;;  %v2220_v10 = vadd.f32 %v5730_v59, %v2184_v55  ;;  %2163 = vmatmul.f32.gmra.mxu0 %v2038_v8  ;;  %2533 = vmatmul.f32.gmra.mxu2 %v5956_v50  ;;  %v1800_v8 = vadd.f32 %v5943_v51, %v1605_v63  ;;  %v1557_v46 = vpop.f32.mrf.mxu1 }
 0x325   : > { %2599 = vmatmul.f32.gmra.mxu3 %v5958_v11 }
 0x326   : > { %v2252_v43 = vmax.f32 %v2220_v10, 0.0  ;;  %v1943_v5 = vpop.f32.mrf.mxu3  ;;  %v1994_v32 = vadd.f32 %v5950_v48, %v1800_v8  ;;  %v1606_v10 = vadd.f32 %v1548_v15, %v1412_v34 }
 0x327   : > { %v2314_v17 = vld [vmem:[#allocation3 + $0x60] ss:$2 sm:$0xff]  ;;  %v2346_v13 = vld [vmem:[#allocation3 + $0x61] ss:$2 sm:$0xff] }
 0x328   : > { %2284 = vst [vmem:[#allocation3 + $0x70] sm:$0xff] %v2252_v43  ;;  %v2371_v39 = vmax.f32 %v2314_v17, %v2346_v13 }
 0x329   : > { %v2119_v45 = vpop.f32.mrf.mxu0 }
 0x32a   : > { %v2185_v20 = vadd.f32 %v2119_v45, %v1991_v38  ;;  %v1752_v38 = vpop.f32.mrf.mxu2 }
 0x32c   : > { %v2221_v42 = vadd.f32 %v5730_v59, %v2185_v20  ;;  %2166 = vmatmul.f32.gmra.mxu0 %v2039_v58  ;;  %v1801_v58 = vadd.f32 %v1743_v49, %v1606_v10  ;;  %v7390_v20 = vld [vmem:[#allocation12_spill] sm:$0xff] }
 0x32d   : > { %v1413_v48 = vadd.f32 %v5586_v60, %v7390_v20 }
 0x32e   : > { %v2253_v1 = vmax.f32 %v2221_v42, 0.0  ;;  %v1946_v44 = vpop.f32.mrf.mxu3  ;;  %v1995_v15 = vadd.f32 %v1937_v25, %v1801_v58 }
 0x32f   : > { %v1607_v28 = vadd.f32 %v1551_v36, %v1413_v48 }
 0x330   : > { %2285 = vst [vmem:[#allocation3 + $0x78] sm:$0xff] %v2253_v1 }
 0x331   : > { %v2122_v62 = vpop.f32.mrf.mxu0 }
 0x332   : > { %v2186_v27 = vadd.f32 %v2122_v62, %v1992_v40  ;;  %v1802_v40 = vadd.f32 %v1746_v54, %v1607_v28  ;;  %v1560_v62 = vpop.f32.mrf.mxu1  ;;  %v1755_v29 = vpop.f32.mrf.mxu2  ;;  %v7392_v54 = vld [vmem:[#allocation14_spill] sm:$0xff]  ;;  %v7395_v28 = vld [vmem:[#allocation16_spill] sm:$0xff] }
 0x334   : > { %v2222_v12 = vadd.f32 %v5730_v59, %v2186_v27  ;;  %v7391_v27 = vld [vmem:[#allocation13_spill] sm:$0xff]  ;;  %v1996_v13 = vadd.f32 %v1940_v6, %v1802_v40 }
 0x335   : > { %v1414_v56 = vadd.f32 %v5589_v31, %v7391_v27 }
 0x336   : > { %v2254_v23 = vmax.f32 %v2222_v12, 0.0  ;;  %v1949_v17 = vpop.f32.mrf.mxu3 }
 0x337   : > { %v2316_v61 = vld [vmem:[#allocation3 + $0x70] ss:$2 sm:$0xff]  ;;  %v2348_v7 = vld [vmem:[#allocation3 + $0x71] ss:$2 sm:$0xff]  ;;  %v1608_v60 = vadd.f32 %v1554_v57, %v1414_v56 }
 0x338   : > { %v2372_v0 = vmax.f32 %v2316_v61, %v2348_v7  ;;  %2286 = vst [vmem:[#allocation3 + $0x80] sm:$0xff] %v2254_v23  ;;  %v1415_v7 = vadd.f32 %v5592_v9, %v7392_v54  ;;  %v7393_v9 = vld [vmem:[#allocation15_spill] sm:$0xff]  ;;  %v4014_v54 = vld [vmem:[%s7358_s4 + $0x1d8] sm:$0xff] }
 0x339   : > { %v2125_v35 = vpop.f32.mrf.mxu0  ;;  %v1803_v25 = vadd.f32 %v1749_v16, %v1608_v60  ;;  %v4016_v56 = vld [vmem:[%s7358_s4 + $0x1e8] sm:$0xff] }
 0x33a   : > { %v2187_v41 = vadd.f32 %v2125_v35, %v1993_v33  ;;  %v5980_v2 = vmax.f32 %v2371_v39, %v2372_v0  ;;  %v1563_v33 = vpop.f32.mrf.mxu1  ;;  %v1758_v0 = vpop.f32.mrf.mxu2 }
 0x33b   : > { %v1997_v63 = vadd.f32 %v1943_v5, %v1803_v25 }
 0x33c   : > { %v2223_v30 = vadd.f32 %v5730_v59, %v2187_v41  ;;  %2413 = vst [vmem:[#allocation4 + $0x41] sm:$0xff] %v5980_v2  ;;  %2495 = vmatmul.f32.gmra.mxu1 %v5980_v2 }
 0x33e   : > { %v2255_v55 = vmax.f32 %v2223_v30, 0.0  ;;  %v1952_v8 = vpop.f32.mrf.mxu3  ;;  %v1609_v30 = vadd.f32 %v1557_v46, %v1415_v7  ;;  %v7397_v7 = vld [vmem:[#allocation17_spill] sm:$0xff] }
 0x340   : > { %2287 = vst [vmem:[#allocation3 + $0x88] sm:$0xff] %v2255_v55  ;;  %v1804_v34 = vadd.f32 %v1752_v38, %v1609_v30  ;;  %v4048_v30 = vld [vmem:[%s7358_s4 + $0x2e8] sm:$0xff] }
 0x341   : > { %v2128_v52 = vpop.f32.mrf.mxu0 }
 0x342   : > { %v2188_v43 = vadd.f32 %v2128_v52, %v1994_v32  ;;  %v7394_v32 = vld [vmem:[#allocation24_spill] sm:$0xff]  ;;  %v1998_v10 = vadd.f32 %v1946_v44, %v1804_v34  ;;  %v1761_v58 = vpop.f32.mrf.mxu2 }
 0x343   : > { %v5989_v45 = vld [vmem:[#allocation4 + $0x40] sm:$0xff]  ;;  %v1416_v52 = vadd.f32 %v7394_v32, %v7393_v9  ;;  %v4018_v44 = vld [vmem:[%s7358_s4 + $0x1f8] sm:$0xff]  ;;  %v4047_v9 = vld [vmem:[%s7358_s4 + $0x2e0] sm:$0xff] }
 0x344   : > { %v5991_v51 = vld [vmem:[#allocation4 + $0x42] sm:$0xff]  ;;  %v2224_v53 = vadd.f32 %v5730_v59, %v2188_v43  ;;  %2536 = vmatmul.f32.gmra.mxu2 %v5989_v45  ;;  %v1566_v43 = vpop.f32.mrf.mxu1  ;;  %2648 = vmatpush.msrb.mxu1 %v4018_v44  ;;  %v4011_v32 = vld [vmem:[%s7358_s4 + $0x1c0] sm:$0xff]  ;;  %v7400_v44 = vld [vmem:[#allocation27_spill] sm:$0xff] }
 0x345   : > { %2602 = vmatmul.f32.gmra.mxu3 %v5991_v51  ;;  %v1610_v46 = vadd.f32 %v1560_v62, %v1416_v52 }
 0x346   : > { %v2256_v22 = vmax.f32 %v2224_v53, 0.0  ;;  %v6011_v48 = vpop.f32.mrf.mxu3 }
 0x347   : > { %v2318_v36 = vld [vmem:[#allocation3 + $0x80] ss:$2 sm:$0xff]  ;;  %v2350_v61 = vld [vmem:[#allocation3 + $0x81] ss:$2 sm:$0xff] }
 0x348   : > { %2288 = vst [vmem:[#allocation3 + $0x90] sm:$0xff] %v2256_v22  ;;  %v2373_v41 = vmax.f32 %v2318_v36, %v2350_v61  ;;  %v4034_v36 = vld [vmem:[%s7358_s4 + $0x278] sm:$0xff] }
 0x349   : > { %v2131_v42 = vpop.f32.mrf.mxu0  ;;  %v4050_v61 = vld [vmem:[%s7358_s4 + $0x2f8] sm:$0xff]  ;;  %2722 = vmatpush.msrb.mxu2 %v4034_v36  ;;  %v4008_v36 = vld [vmem:[%s7358_s4 + $0x1a8] sm:$0xff] }
 0x34a   : > { %v2189_v1 = vadd.f32 %v2131_v42, %v1995_v15  ;;  %v1805_v15 = vadd.f32 %v1755_v29, %v1610_v46  ;;  %v6033_v60 = vpop.f32.mrf.mxu2  ;;  %2796 = vmatpush.msrb.mxu3 %v4050_v61 }
 0x34c   : > { %v2225_v49 = vadd.f32 %v5730_v59, %v2189_v1  ;;  %v7396_v1 = vld [vmem:[#allocation25_spill] sm:$0xff]  ;;  %v1999_v29 = vadd.f32 %v1949_v17, %v1805_v15 }
 0x34d   : > { %v1417_v40 = vadd.f32 %v7396_v1, %v7395_v28  ;;  %v4046_v15 = vld [vmem:[%s7358_s4 + $0x2d8] sm:$0xff] }
 0x34e   : > { %v2257_v12 = vmax.f32 %v2225_v49, 0.0  ;;  %v4017_v49 = vld [vmem:[%s7358_s4 + $0x1f0] sm:$0xff] }
 0x34f   : > { %2649 = vmatpush.msrb.mxu1 %v4017_v49 }
 0x350   : > { %2289 = vst [vmem:[#allocation3 + $0x98] sm:$0xff] %v2257_v12  ;;  %v1611_v12 = vadd.f32 %v1563_v33, %v1417_v40  ;;  %v7398_v33 = vld [vmem:[#allocation26_spill] sm:$0xff] }
 0x351   : > { %v2134_v4 = vpop.f32.mrf.mxu0  ;;  %2650 = vmatpush.msrb.mxu1 %v4016_v56 }
 0x352   : > { %v2190_v14 = vadd.f32 %v2134_v4, %v1996_v13  ;;  %v6031_v13 = vpop.f32.mrf.mxu1  ;;  %v1806_v25 = vadd.f32 %v1758_v0, %v1611_v12  ;;  %v6082_v46 = vpop.f32.mrf.mxu2 }
 0x354   : > { %v2226_v23 = vadd.f32 %v5730_v59, %v2190_v14  ;;  %v4015_v14 = vld [vmem:[%s7358_s4 + $0x1e0] sm:$0xff] }
 0x355   : > { %2651 = vmatpush.msrb.mxu1 %v4015_v14  ;;  %v4009_v14 = vld [vmem:[%s7358_s4 + $0x1b0] sm:$0xff] }
 0x356   : > { %v2258_v39 = vmax.f32 %v2226_v23, 0.0  ;;  %v6039_v23 = vpop.f32.mrf.mxu3 }
 0x357   : > { %v2320_v35 = vld [vmem:[#allocation3 + $0x90] ss:$2 sm:$0xff]  ;;  %v2352_v31 = vld [vmem:[#allocation3 + $0x91] ss:$2 sm:$0xff]  ;;  %2652 = vmatpush.msrb.mxu1 %v4014_v54 }
 0x358   : > { %v2374_v6 = vmax.f32 %v2320_v35, %v2352_v31  ;;  %2290 = vst [vmem:[#allocation3 + $0xa0] sm:$0xff] %v2258_v39  ;;  %v1418_v39 = vadd.f32 %v7398_v33, %v7397_v7  ;;  %v4033_v35 = vld [vmem:[%s7358_s4 + $0x270] sm:$0xff]  ;;  %v4027_v33 = vld [vmem:[%s7358_s4 + $0x240] sm:$0xff] }
 0x359   : > { %v2137_v57 = vpop.f32.mrf.mxu0  ;;  %v4049_v31 = vld [vmem:[%s7358_s4 + $0x2f0] sm:$0xff]  ;;  %2723 = vmatpush.msrb.mxu2 %v4033_v35 }
 0x35a   : > { %v2191_v16 = vadd.f32 %v2137_v57, %v1997_v63  ;;  %v6004_v26 = vmax.f32 %v2373_v41, %v2374_v6  ;;  %v4013_v63 = vld [vmem:[%s7358_s4 + $0x1d0] sm:$0xff]  ;;  %v2000_v41 = vadd.f32 %v1952_v8, %v1806_v25  ;;  %2797 = vmatpush.msrb.mxu3 %v4049_v31  ;;  %v4032_v57 = vld [vmem:[%s7358_s4 + $0x268] sm:$0xff]  ;;  %v1612_v34 = vadd.f32 %v1566_v43, %v1418_v39  ;;  %v4031_v8 = vld [vmem:[%s7358_s4 + $0x260] sm:$0xff] }
 0x35b   : > { %2653 = vmatpush.msrb.mxu1 %v4013_v63  ;;  %2724 = vmatpush.msrb.mxu2 %v4032_v57  ;;  %v4043_v39 = vld [vmem:[%s7358_s4 + $0x2c0] sm:$0xff]  ;;  %v4026_v31 = vld [vmem:[%s7358_s4 + $0x238] sm:$0xff] }
 0x35c   : > { %v2227_v55 = vadd.f32 %v5730_v59, %v2191_v16  ;;  %2414 = vst [vmem:[#allocation4 + $0x51] sm:$0xff] %v6004_v26  ;;  %2498 = vmatmul.f32.gmra.mxu1 %v6004_v26  ;;  %v4012_v16 = vld [vmem:[%s7358_s4 + $0x1c8] sm:$0xff]  ;;  %2798 = vmatpush.msrb.mxu3 %v4048_v30  ;;  %v1807_v52 = vadd.f32 %v1761_v58, %v1612_v34  ;;  %v4010_v58 = vld [vmem:[%s7358_s4 + $0x1b8] sm:$0xff]  ;;  %v1770_v34 = vpop.f32.mrf.mxu2 }
 0x35d   : > { %2654 = vmatpush.msrb.mxu1 %v4012_v16  ;;  %2725 = vmatpush.msrb.mxu2 %v4031_v8  ;;  %v4042_v63 = vld [vmem:[%s7358_s4 + $0x2b8] sm:$0xff]  ;;  %v4041_v8 = vld [vmem:[%s7358_s4 + $0x2b0] sm:$0xff] }
 0x35e   : > { %v2259_v5 = vmax.f32 %v2227_v55, 0.0  ;;  %2799 = vmatpush.msrb.mxu3 %v4047_v9  ;;  %v6095_v40 = vpop.f32.mrf.mxu3  ;;  %v4005_v9 = vld [vmem:[%s7358_s4 + $0x190] sm:$0xff] }
 0x35f   : > { %2655 = vmatpush.msrb.mxu1 %v4011_v32 }
 0x360   : > { %2291 = vst [vmem:[#allocation3 + $0xa8] sm:$0xff] %v2259_v5  ;;  %v6079_v5 = vpop.f32.mrf.mxu1  ;;  %2800 = vmatpush.msrb.mxu3 %v4046_v15 }
 0x361   : > { %v2140_v53 = vpop.f32.mrf.mxu0  ;;  %2656 = vmatpush.msrb.mxu1 %v4010_v58 }
 0x362   : > { %v2192_v20 = vadd.f32 %v2140_v53, %v1998_v10 }
 0x363   : > { %v6013_v38 = vld [vmem:[#allocation4 + $0x50] sm:$0xff]  ;;  %2657 = vmatpush.msrb.mxu1 %v4009_v14 }
 0x364   : > { %v6015_v22 = vld [vmem:[#allocation4 + $0x52] sm:$0xff]  ;;  %v2228_v42 = vadd.f32 %v5730_v59, %v2192_v20  ;;  %2539 = vmatmul.f32.gmra.mxu2 %v6013_v38  ;;  %v4030_v20 = vld [vmem:[%s7358_s4 + $0x258] sm:$0xff] }
 0x365   : > { %2605 = vmatmul.f32.gmra.mxu3 %v6015_v22  ;;  %2726 = vmatpush.msrb.mxu2 %v4030_v20  ;;  %v4004_v20 = vld [vmem:[%s7358_s4 + $0x188] sm:$0xff] }
 0x366   : > { %v2260_v62 = vmax.f32 %v2228_v42, 0.0  ;;  %v7399_v42 = vld [vmem:[#allocation18_spill] sm:$0xff]  ;;  %2658 = vmatpush.msrb.mxu1 %v4008_v36 }
 0x367   : > { %v2322_v10 = vld [vmem:[#allocation3 + $0xa0] ss:$2 sm:$0xff]  ;;  %v2354_v43 = vld [vmem:[#allocation3 + $0xa1] ss:$2 sm:$0xff]  ;;  %v1419_v28 = vadd.f32 %v7400_v44, %v7399_v42  ;;  %v4023_v44 = vld [vmem:[%s7358_s4 + $0x220] sm:$0xff] }
 0x368   : > { %2292 = vst [vmem:[#allocation3 + $0xb0] sm:$0xff] %v2260_v62  ;;  %v2375_v56 = vmax.f32 %v2322_v10, %v2354_v43  ;;  %v1575_v30 = vpop.f32.mrf.mxu1  ;;  %v4024_v43 = vld [vmem:[%s7358_s4 + $0x228] sm:$0xff] }
 0x369   : > { %v2143_v27 = vpop.f32.mrf.mxu0  ;;  %v1613_v61 = vadd.f32 %v6031_v13, %v1419_v28  ;;  %v4020_v36 = vld [vmem:[%s7358_s4 + $0x208] sm:$0xff] }
 0x36a   : > { %v2193_v4 = vadd.f32 %v2143_v27, %v1999_v29  ;;  %v4029_v29 = vld [vmem:[%s7358_s4 + $0x250] sm:$0xff]  ;;  %v2001_v27 = vadd.f32 %v6011_v48, %v1807_v52  ;;  %v4044_v48 = vld [vmem:[%s7358_s4 + $0x2c8] sm:$0xff]  ;;  %v1964_v52 = vpop.f32.mrf.mxu3 }
 0x36b   : > { %2727 = vmatpush.msrb.mxu2 %v4029_v29  ;;  %v1808_v13 = vadd.f32 %v6033_v60, %v1613_v61  ;;  %v4006_v60 = vld [vmem:[%s7358_s4 + $0x198] sm:$0xff]  ;;  %v4036_v61 = vld [vmem:[%s7358_s4 + $0x288] sm:$0xff] }
 0x36c   : > { %v2229_v17 = vadd.f32 %v5730_v59, %v2193_v4  ;;  %v4045_v4 = vld [vmem:[%s7358_s4 + $0x2d0] sm:$0xff]  ;;  %v7404_v29 = vld [vmem:[#allocation29_spill] sm:$0xff] }
 0x36d   : > { %2801 = vmatpush.msrb.mxu3 %v4045_v4  ;;  %v2002_v32 = vadd.f32 %v6039_v23, %v1808_v13 }
 0x36e   : > { %v2261_v0 = vmax.f32 %v2229_v17, 0.0  ;;  %v4028_v17 = vld [vmem:[%s7358_s4 + $0x248] sm:$0xff] }
 0x36f   : > { %2728 = vmatpush.msrb.mxu2 %v4028_v17  ;;  %2802 = vmatpush.msrb.mxu3 %v4044_v48  ;;  %v1773_v17 = vpop.f32.mrf.mxu2 }
 0x370   : > { %2293 = vst [vmem:[#allocation3 + $0xb8] sm:$0xff] %v2261_v0  ;;  %v4007_v0 = vld [vmem:[%s7358_s4 + $0x1a0] sm:$0xff]  ;;  %v1578_v14 = vpop.f32.mrf.mxu1 }
 0x371   : > { %v2146_v6 = vpop.f32.mrf.mxu0  ;;  %2729 = vmatpush.msrb.mxu2 %v4027_v33  ;;  %2803 = vmatpush.msrb.mxu3 %v4043_v39  ;;  %v4019_v39 = vld [vmem:[%s7358_s4 + $0x200] sm:$0xff] }
 0x372   : > { %v2194_v55 = vadd.f32 %v2146_v6, %v2000_v41  ;;  %2659 = vmatpush.msrb.mxu1 %v4007_v0  ;;  %v7401_v41 = vld [vmem:[#allocation19_spill] sm:$0xff]  ;;  %v7402_v6 = vld [vmem:[#allocation28_spill] sm:$0xff]  ;;  %v1967_v33 = vpop.f32.mrf.mxu3  ;;  %v4035_v0 = vld [vmem:[%s7358_s4 + $0x280] sm:$0xff] }
 0x373   : > { %v1420_v57 = vadd.f32 %v7402_v6, %v7401_v41  ;;  %2730 = vmatpush.msrb.mxu2 %v4026_v31  ;;  %2804 = vmatpush.msrb.mxu3 %v4042_v63  ;;  %v7405_v63 = vld [vmem:[#allocation21_spill] sm:$0xff] }
 0x374   : > { %v2230_v53 = vadd.f32 %v5730_v59, %v2194_v55  ;;  %v4025_v55 = vld [vmem:[%s7358_s4 + $0x230] sm:$0xff]  ;;  %2660 = vmatpush.msrb.mxu1 %v4006_v60  ;;  %v7406_v60 = vld [vmem:[#allocation30_spill] sm:$0xff] }
 0x375   : > { %2731 = vmatpush.msrb.mxu2 %v4025_v55  ;;  %2805 = vmatpush.msrb.mxu3 %v4041_v8  ;;  %v1614_v23 = vadd.f32 %v6079_v5, %v1420_v57  ;;  %v4039_v5 = vld [vmem:[%s7358_s4 + $0x2a0] sm:$0xff]  ;;  %v1422_v41 = vadd.f32 %v7406_v60, %v7405_v63 }
 0x376   : > { %v2262_v1 = vmax.f32 %v2230_v53, 0.0  ;;  %v4040_v53 = vld [vmem:[%s7358_s4 + $0x2a8] sm:$0xff]  ;;  %2661 = vmatpush.msrb.mxu1 %v4005_v9 }
 0x377   : > { %v2324_v62 = vld [vmem:[#allocation3 + $0xb0] ss:$2 sm:$0xff]  ;;  %v2356_v49 = vld [vmem:[#allocation3 + $0xb1] ss:$2 sm:$0xff]  ;;  %2732 = vmatpush.msrb.mxu2 %v4024_v43  ;;  %2806 = vmatpush.msrb.mxu3 %v4040_v53  ;;  %v1809_v28 = vadd.f32 %v6082_v46, %v1614_v23  ;;  %v4022_v46 = vld [vmem:[%s7358_s4 + $0x218] sm:$0xff] }
 0x378   : > { %v2376_v12 = vmax.f32 %v2324_v62, %v2356_v49  ;;  %2294 = vst [vmem:[#allocation3 + $0xc0] sm:$0xff] %v2262_v1  ;;  %2662 = vmatpush.msrb.mxu1 %v4004_v20  ;;  %v4003_v62 = vld [vmem:[%s7358_s4 + $0x180] sm:$0xff]  ;;  %v7403_v49 = vld [vmem:[#allocation20_spill] sm:$0xff]  ;;  %v1581_v8 = vpop.f32.mrf.mxu1  ;;  %v7408_v23 = vld [vmem:[#allocation31_spill] sm:$0xff] }
 0x379   : > { %v2149_v25 = vpop.f32.mrf.mxu0  ;;  %2733 = vmatpush.msrb.mxu2 %v4023_v44  ;;  %2807 = vmatpush.msrb.mxu3 %v4039_v5  ;;  %v2003_v4 = vadd.f32 %v6095_v40, %v1809_v28  ;;  %v7407_v20 = vld [vmem:[#allocation22_spill] sm:$0xff] }
 0x37a   : > { %v2195_v54 = vadd.f32 %v2149_v25, %v2001_v27  ;;  %v6117_v7 = vmax.f32 %v2375_v56, %v2376_v12  ;;  %v1421_v27 = vadd.f32 %v7404_v29, %v7403_v49  ;;  %2663 = vmatpush.msrb.mxu1 %v4003_v62  ;;  %v4021_v12 = vld [vmem:[%s7358_s4 + $0x210] sm:$0xff] }
 0x37b   : > { %2734 = vmatpush.msrb.mxu2 %v4022_v46  ;;  %v4037_v25 = vld [vmem:[%s7358_s4 + $0x290] sm:$0xff] }
 0x37c   : > { %v2231_v35 = vadd.f32 %v5730_v59, %v2195_v54  ;;  %2415 = vst [vmem:[#allocation4 + $0x61] sm:$0xff] %v6117_v7  ;;  %2501 = vmatmul.f32.gmra.mxu1 %v6117_v7  ;;  %v1615_v54 = vadd.f32 %v1575_v30, %v1421_v27 }
 0x37d   : > { %2735 = vmatpush.msrb.mxu2 %v4021_v12 }
 0x37e   : > { %v2263_v16 = vmax.f32 %v2231_v35, 0.0  ;;  %v1810_v13 = vadd.f32 %v1770_v34, %v1615_v54  ;;  %v6210_v35 = vld [vmem:[%s7357_s3] ss:$0 sm:$0xff]  ;;  %v1776_v34 = vpop.f32.mrf.mxu2 }
 0x37f   : > { %2736 = vmatpush.msrb.mxu2 %v4020_v36 }
 0x380   : > { %2295 = vst [vmem:[#allocation3 + $0xc8] sm:$0xff] %v2263_v16  ;;  %v2004_v57 = vadd.f32 %v1964_v52, %v1810_v13  ;;  %v1616_v16 = vadd.f32 %v1578_v14, %v1422_v41  ;;  %v1584_v12 = vpop.f32.mrf.mxu1  ;;  %v7409_v14 = vld [vmem:[#allocation23_spill] sm:$0xff]  ;;  %v4066_v41 = vld [vmem:[%s7358_s4 + $0x378] sm:$0xff] }
 0x381   : > { %v2152_v10 = vpop.f32.mrf.mxu0  ;;  %2737 = vmatpush.msrb.mxu2 %v4019_v39  ;;  %2871 = vmatpush.msra.mxu1 %v4066_v41  ;;  %v4090_v41 = vld [vmem:[%s7358_s4 + $0x438] sm:$0xff] }
 0x382   : > { %v2196_v15 = vadd.f32 %v2152_v10, %v2002_v32  ;;  %v1811_v9 = vadd.f32 %v1773_v17, %v1616_v16  ;;  %v1970_v10 = vpop.f32.mrf.mxu3 }
 0x383   : > { %v6163_v58 = vld [vmem:[#allocation4 + $0x60] sm:$0xff] }
 0x384   : > { %v6165_v42 = vld [vmem:[#allocation4 + $0x62] sm:$0xff]  ;;  %v2232_v1 = vadd.f32 %v5730_v59, %v2196_v15  ;;  %2542 = vmatmul.f32.gmra.mxu2 %v6163_v58  ;;  %v1423_v15 = vadd.f32 %v7408_v23, %v7407_v20  ;;  %v2005_v5 = vadd.f32 %v1967_v33, %v1811_v9  ;;  %v4063_v9 = vld [vmem:[%s7358_s4 + $0x360] sm:$0xff]  ;;  %v4096_v20 = vld [vmem:[%s7358_s4 + $0x468] sm:$0xff] }
 0x385   : > { %2608 = vmatmul.f32.gmra.mxu3 %v6165_v42  ;;  %v4038_v59 = vld [vmem:[%s7358_s4 + $0x298] sm:$0xff] }
 0x386   : > { %v2264_v56 = vmax.f32 %v2232_v1, 0.0  ;;  %2808 = vmatpush.msrb.mxu3 %v4038_v59  ;;  %v1617_v59 = vadd.f32 %v1581_v8, %v1423_v15 }
 0x387   : > { %v2326_v43 = vld [vmem:[#allocation3 + $0xc0] ss:$2 sm:$0xff]  ;;  %v2358_v53 = vld [vmem:[#allocation3 + $0xc1] ss:$2 sm:$0xff] }
 0x388   : > { %2296 = vst [vmem:[#allocation3 + $0xd0] sm:$0xff] %v2264_v56  ;;  %2809 = vmatpush.msrb.mxu3 %v4037_v25  ;;  %v2377_v52 = vmax.f32 %v2326_v43, %v2358_v53  ;;  %v1812_v27 = vadd.f32 %v1776_v34, %v1617_v59  ;;  %v7410_v25 = vld [vmem:[#allocation32_spill] sm:$0xff]  ;;  %v6232_v63 = vpop.f32.mrf.mxu1 }
 0x389   : > { %v2155_v48 = vpop.f32.mrf.mxu0  ;;  %v1424_v17 = vadd.f32 %v7410_v25, %v7409_v14  ;;  %v4082_v34 = vld [vmem:[%s7358_s4 + $0x3f8] sm:$0xff]  ;;  %v4081_v43 = vld [vmem:[%s7358_s4 + $0x3f0] sm:$0xff] }
 0x38a   : > { %v2197_v40 = vadd.f32 %v2155_v48, %v2003_v4  ;;  %2810 = vmatpush.msrb.mxu3 %v4036_v61  ;;  %v1779_v4 = vpop.f32.mrf.mxu2  ;;  %v1973_v36 = vpop.f32.mrf.mxu3  ;;  %v2006_v61 = vadd.f32 %v1970_v10, %v1812_v27  ;;  %2945 = vmatpush.msra.mxu2 %v4082_v34  ;;  %v4098_v10 = vld [vmem:[%s7358_s4 + $0x478] sm:$0xff]  ;;  %v4097_v53 = vld [vmem:[%s7358_s4 + $0x470] sm:$0xff]  ;;  %v4088_v34 = vld [vmem:[%s7358_s4 + $0x428] sm:$0xff] }
 0x38b   : > { %v4094_v59 = vld [vmem:[%s7358_s4 + $0x458] sm:$0xff] }
 0x38c   : > { %v2233_v31 = vadd.f32 %v6210_v35, %v2197_v40  ;;  %2811 = vmatpush.msrb.mxu3 %v4035_v0  ;;  %v1618_v40 = vadd.f32 %v1584_v12, %v1424_v17  ;;  %2946 = vmatpush.msra.mxu2 %v4081_v43  ;;  %v4092_v12 = vld [vmem:[%s7358_s4 + $0x448] sm:$0xff]  ;;  %v4058_v17 = vld [vmem:[%s7358_s4 + $0x338] sm:$0xff] }
 0x38d   : > { %v4054_v43 = vld [vmem:[%s7358_s4 + $0x318] sm:$0xff] }
 0x38e   : > { %v2265_v6 = vmax.f32 %v2233_v31, 0.0  ;;  %v1813_v13 = vadd.f32 %v1779_v4, %v1618_v40  ;;  %3019 = vmatpush.msra.mxu3 %v4098_v10  ;;  %v4091_v40 = vld [vmem:[%s7358_s4 + $0x440] sm:$0xff] }
 0x38f   : > { %v4087_v10 = vld [vmem:[%s7358_s4 + $0x420] sm:$0xff] }
 0x390   : > { %2297 = vst [vmem:[#allocation3 + $0xd8] sm:$0xff] %v2265_v6  ;;  %v2007_v16 = vadd.f32 %v1973_v36, %v1813_v13  ;;  %v6279_v23 = vpop.f32.mrf.mxu1  ;;  %3020 = vmatpush.msra.mxu3 %v4097_v53  ;;  %v4057_v13 = vld [vmem:[%s7358_s4 + $0x330] sm:$0xff]  ;;  %v4070_v53 = vld [vmem:[%s7358_s4 + $0x398] sm:$0xff] }
 0x391   : > { %v2158_v30 = vpop.f32.mrf.mxu0 }
 0x392   : > { %v2198_v55 = vadd.f32 %v2158_v30, %v2004_v57  ;;  %v6234_v60 = vpop.f32.mrf.mxu2  ;;  %v6240_v57 = vpop.f32.mrf.mxu3  ;;  %v4065_v30 = vld [vmem:[%s7358_s4 + $0x370] sm:$0xff]  ;;  %3021 = vmatpush.msra.mxu3 %v4096_v20 }
 0x393   : > { %2872 = vmatpush.msra.mxu1 %v4065_v30  ;;  %v4089_v30 = vld [vmem:[%s7358_s4 + $0x430] sm:$0xff] }
 0x394   : > { %v2234_v32 = vadd.f32 %v6210_v35, %v2198_v55 }
 0x396   : > { %v2266_v44 = vmax.f32 %v2234_v32, 0.0 }
 0x397   : > { %v2328_v28 = vld [vmem:[#allocation3 + $0xd0] ss:$2 sm:$0xff]  ;;  %v2360_v1 = vld [vmem:[#allocation3 + $0xd1] ss:$2 sm:$0xff] }
 0x398   : > { %v2378_v62 = vmax.f32 %v2328_v28, %v2360_v1  ;;  %2298 = vst [vmem:[#allocation3 + $0xe0] sm:$0xff] %v2266_v44  ;;  %v4079_v44 = vld [vmem:[%s7358_s4 + $0x3e0] sm:$0xff]  ;;  %v4061_v1 = vld [vmem:[%s7358_s4 + $0x350] sm:$0xff] }
 0x399   : > { %v2161_v46 = vpop.f32.mrf.mxu0  ;;  %v4095_v28 = vld [vmem:[%s7358_s4 + $0x460] sm:$0xff] }
 0x39a   : > { %v2199_v49 = vadd.f32 %v2161_v46, %v2005_v5  ;;  %v6218_v29 = vmax.f32 %v2377_v52, %v2378_v62  ;;  %v6281_v15 = vpop.f32.mrf.mxu2  ;;  %v6292_v5 = vpop.f32.mrf.mxu3  ;;  %3022 = vmatpush.msra.mxu3 %v4095_v28  ;;  %v4060_v62 = vld [vmem:[%s7358_s4 + $0x348] sm:$0xff]  ;;  %v4078_v46 = vld [vmem:[%s7358_s4 + $0x3d8] sm:$0xff] }
 0x39b   : > { %v4052_v28 = vld [vmem:[%s7358_s4 + $0x308] sm:$0xff] }
 0x39c   : > { %v2235_v56 = vadd.f32 %v6210_v35, %v2199_v49  ;;  %2416 = vst [vmem:[#allocation4 + $0x71] sm:$0xff] %v6218_v29  ;;  %2504 = vmatmul.f32.gmra.mxu1 %v6218_v29  ;;  %v4077_v49 = vld [vmem:[%s7358_s4 + $0x3d0] sm:$0xff]  ;;  %3023 = vmatpush.msra.mxu3 %v4094_v59  ;;  %v4084_v59 = vld [vmem:[%s7358_s4 + $0x408] sm:$0xff] }
 0x39e   : > { %v2267_v48 = vmax.f32 %v2235_v56, 0.0  ;;  %v4076_v56 = vld [vmem:[%s7358_s4 + $0x3c8] sm:$0xff] }
 0x3a0   : > { %2299 = vst [vmem:[#allocation3 + $0xe8] sm:$0xff] %v2267_v48 }
 0x3a1   : > { %v2164_v54 = vpop.f32.mrf.mxu0 }
 0x3a2   : > { %v2200_v33 = vadd.f32 %v2164_v54, %v2006_v61  ;;  %v6323_v4 = vpop.f32.mrf.mxu2  ;;  %v4075_v61 = vld [vmem:[%s7358_s4 + $0x3c0] sm:$0xff]  ;;  %v6331_v54 = vpop.f32.mrf.mxu3 }
 0x3a3   : > { %v6225_v39 = vld [vmem:[#allocation4 + $0x70] sm:$0xff] }
 0x3a4   : > { %v6227_v0 = vld [vmem:[#allocation4 + $0x72] sm:$0xff]  ;;  %v2236_v31 = vadd.f32 %v6210_v35, %v2200_v33  ;;  %2545 = vmatmul.f32.gmra.mxu2 %v6225_v39  ;;  %2664 = vmatmul.f32.vlgmr.msrb.gmra.mxu1 %v5845_v21 }
 0x3a5   : > { %2611 = vmatmul.f32.gmra.mxu3 %v6227_v0  ;;  %v4064_v21 = vld [vmem:[%s7358_s4 + $0x368] sm:$0xff] }
 0x3a6   : > { %v2268_v6 = vmax.f32 %v2236_v31, 0.0  ;;  %2873 = vmatpush.msra.mxu1 %v4064_v21  ;;  %v4074_v31 = vld [vmem:[%s7358_s4 + $0x3b8] sm:$0xff]  ;;  %v4072_v21 = vld [vmem:[%s7358_s4 + $0x3a8] sm:$0xff] }
 0x3a7   : > { %v2330_v52 = vld [vmem:[#allocation3 + $0xe0] ss:$2 sm:$0xff]  ;;  %v2362_v27 = vld [vmem:[#allocation3 + $0xe1] ss:$2 sm:$0xff] }
 0x3a8   : > { %2300 = vst [vmem:[#allocation3 + $0xf0] sm:$0xff] %v2268_v6  ;;  %2874 = vmatpush.msra.mxu1 %v4063_v9  ;;  %v2379_v48 = vmax.f32 %v2330_v52, %v2362_v27  ;;  %v4073_v6 = vld [vmem:[%s7358_s4 + $0x3b0] sm:$0xff]  ;;  %v4067_v27 = vld [vmem:[%s7358_s4 + $0x380] sm:$0xff] }
 0x3a9   : > { %v2167_v55 = vpop.f32.mrf.mxu0 }
 0x3aa   : > { %v2201_v8 = vadd.f32 %v2167_v55, %v2007_v16  ;;  %v6365_v55 = vpop.f32.mrf.mxu2  ;;  %v6376_v9 = vpop.f32.mrf.mxu3 }
 0x3ac   : > { %v2237_v32 = vadd.f32 %v6210_v35, %v2201_v8  ;;  %2738 = vmatmul.f32.vlgmr.msrb.gmra.mxu2 %v5832_v18  ;;  %2667 = vmatmul.f32.gmra.mxu1 %v5900_v47  ;;  %v4194_v18 = vld [vmem:[%s7360_s6 + $0x378] sm:$0xff]  ;;  %v4055_v8 = vld [vmem:[%s7358_s4 + $0x320] sm:$0xff] }
 0x3ad   : > { %2812 = vmatmul.f32.vlgmr.msrb.gmra.mxu3 %v5847_v24  ;;  %v4080_v24 = vld [vmem:[%s7358_s4 + $0x3e8] sm:$0xff]  ;;  %3393 = vmatpush.msrb.mxu0 %v4194_v18  ;;  %v4062_v47 = vld [vmem:[%s7358_s4 + $0x358] sm:$0xff] }
 0x3ae   : > { %v2269_v35 = vmax.f32 %v2237_v32, 0.0  ;;  %2947 = vmatpush.msra.mxu2 %v4080_v24  ;;  %2875 = vmatpush.msra.mxu1 %v4062_v47  ;;  %v4071_v32 = vld [vmem:[%s7358_s4 + $0x3a0] sm:$0xff]  ;;  %v4086_v18 = vld [vmem:[%s7358_s4 + $0x418] sm:$0xff]  ;;  %v4053_v24 = vld [vmem:[%s7358_s4 + $0x310] sm:$0xff] }
 0x3af   : > { %v4069_v47 = vld [vmem:[%s7358_s4 + $0x390] sm:$0xff] }
 0x3b0   : > { %2301 = vst [vmem:[#allocation3 + $0xf8] sm:$0xff] %v2269_v35  ;;  %2948 = vmatpush.msra.mxu2 %v4079_v44  ;;  %2876 = vmatpush.msra.mxu1 %v4061_v1  ;;  %v4085_v44 = vld [vmem:[%s7358_s4 + $0x410] sm:$0xff] }
 0x3b2   : > { %2949 = vmatpush.msra.mxu2 %v4078_v46  ;;  %2877 = vmatpush.msra.mxu1 %v4060_v62  ;;  %v4068_v62 = vld [vmem:[%s7358_s4 + $0x388] sm:$0xff] }
 0x3b4   : > { %2741 = vmatmul.f32.gmra.mxu2 %v5883_v19  ;;  %2670 = vmatmul.f32.gmra.mxu1 %v5956_v50  ;;  %v4093_v19 = vld [vmem:[%s7358_s4 + $0x450] sm:$0xff]  ;;  %v6321_v50 = vpop.f32.mrf.mxu1 }
 0x3b5   : > { %2815 = vmatmul.f32.gmra.mxu3 %v5902_v37  ;;  %v4059_v37 = vld [vmem:[%s7358_s4 + $0x340] sm:$0xff]  ;;  %2950 = vmatpush.msra.mxu2 %v4077_v49 }
 0x3b6   : > { %3024 = vmatpush.msra.mxu3 %v4093_v19  ;;  %2878 = vmatpush.msra.mxu1 %v4059_v37  ;;  %v4051_v49 = vld [vmem:[%s7358_s4 + $0x300] sm:$0xff]  ;;  %v4192_v37 = vld [vmem:[%s7360_s6 + $0x368] sm:$0xff] }
 0x3b7   : > { %v2332_v14 = vld [vmem:[#allocation3 + $0xf0] ss:$2 sm:$0xff]  ;;  %v2364_v25 = vld [vmem:[#allocation3 + $0xf1] ss:$2 sm:$0xff]  ;;  %2951 = vmatpush.msra.mxu2 %v4076_v56 }
 0x3b8   : > { %v2380_v36 = vmax.f32 %v2332_v14, %v2364_v25  ;;  %3025 = vmatpush.msra.mxu3 %v4092_v12  ;;  %2879 = vmatpush.msra.mxu1 %v4058_v17  ;;  %v4083_v19 = vld [vmem:[%s7358_s4 + $0x400] sm:$0xff]  ;;  %v4385_v25 = vld [vmem:[#allocation4 + $0x20] sm:$0xff] }
 0x3b9   : > { %2952 = vmatpush.msra.mxu2 %v4075_v61  ;;  %v4191_v12 = vld [vmem:[%s7360_s6 + $0x360] sm:$0xff] }
 0x3ba   : > { %v6336_v33 = vmax.f32 %v2379_v48, %v2380_v36  ;;  %3026 = vmatpush.msra.mxu3 %v4091_v40  ;;  %2880 = vmatpush.msra.mxu1 %v4057_v13  ;;  %v4386_v13 = vld [vmem:[#allocation4 + $0x21] sm:$0xff] }
 0x3bb   : > { %2953 = vmatpush.msra.mxu2 %v4074_v31  ;;  %v4387_v31 = vld [vmem:[#allocation4 + $0x22] sm:$0xff] }
 0x3bc   : > { %2744 = vmatmul.f32.gmra.mxu2 %v5941_v3  ;;  %2417 = vst [vmem:[#allocation4 + $0x81] sm:$0xff] %v6336_v33  ;;  %2673 = vmatmul.f32.gmra.mxu1 %v5989_v45  ;;  %v4193_v3 = vld [vmem:[%s7360_s6 + $0x370] sm:$0xff]  ;;  %v6363_v16 = vpop.f32.mrf.mxu1 }
 0x3bd   : > { %2818 = vmatmul.f32.gmra.mxu3 %v5958_v11  ;;  %v4056_v11 = vld [vmem:[%s7358_s4 + $0x328] sm:$0xff]  ;;  %3394 = vmatpush.msrb.mxu0 %v4193_v3 }
 0x3be   : > { %3027 = vmatpush.msra.mxu3 %v4090_v41  ;;  %2954 = vmatpush.msra.mxu2 %v4073_v6  ;;  %v4190_v41 = vld [vmem:[%s7360_s6 + $0x358] sm:$0xff]  ;;  %v4388_v6 = vld [vmem:[#allocation4 + $0x30] sm:$0xff] }
 0x3bf   : > { %2881 = vmatpush.msra.mxu1 %v4056_v11  ;;  %3395 = vmatpush.msrb.mxu0 %v4192_v37  ;;  %v4389_v3 = vld [vmem:[#allocation4 + $0x31] sm:$0xff] }
 0x3c0   : > { %3028 = vmatpush.msra.mxu3 %v4089_v30  ;;  %2955 = vmatpush.msra.mxu2 %v4072_v21  ;;  %v4390_v11 = vld [vmem:[#allocation4 + $0x32] sm:$0xff]  ;;  %v4189_v30 = vld [vmem:[%s7360_s6 + $0x350] sm:$0xff] }
 0x3c1   : > { %2882 = vmatpush.msra.mxu1 %v4055_v8  ;;  %3396 = vmatpush.msrb.mxu0 %v4191_v12  ;;  %v3156_v37 = vld [vmem:[%s7360_s6 + $0x60] sm:$0xff]  ;;  %v4110_v12 = vld [vmem:[%s7360_s6 + $0xd8] sm:$0xff] }
 0x3c2   : > { %3029 = vmatpush.msra.mxu3 %v4088_v34  ;;  %2956 = vmatpush.msra.mxu2 %v4071_v32 }
 0x3c3   : > { %2883 = vmatpush.msra.mxu1 %v4054_v43  ;;  %v2630_v56 = vld [vmem:[#allocation4 + $0x80] sm:$0xff]  ;;  %3397 = vmatpush.msrb.mxu0 %v4190_v41 }
 0x3c4   : > { %2747 = vmatmul.f32.gmra.mxu2 %v5980_v2  ;;  %2676 = vmatmul.f32.gmra.mxu1 %v6013_v38  ;;  %v2496_v35 = vpop.f32.mrf.mxu1  ;;  %v2778_v14 = vld [vmem:[#allocation4 + $0x82] sm:$0xff] }
 0x3c5   : > { %2821 = vmatmul.f32.gmra.mxu3 %v5991_v51  ;;  %2957 = vmatpush.msra.mxu2 %v4070_v53  ;;  %v4185_v41 = vld [vmem:[%s7360_s6 + $0x330] sm:$0xff] }
 0x3c6   : > { %3030 = vmatpush.msra.mxu3 %v4087_v10  ;;  %2884 = vmatpush.msra.mxu1 %v4053_v24  ;;  %v4114_v24 = vld [vmem:[%s7360_s6 + $0xf8] sm:$0xff] }
 0x3c7   : > { %v2537_v20 = vpop.f32.mrf.mxu2  ;;  %2958 = vmatpush.msra.mxu2 %v4069_v47  ;;  %3398 = vmatpush.msrb.mxu0 %v4189_v30  ;;  %v4107_v30 = vld [vmem:[%s7360_s6 + $0xc0] sm:$0xff] }
 0x3c8   : > { %v2538_v1 = vadd.f32 %v2537_v20, %v2496_v35  ;;  %3031 = vmatpush.msra.mxu3 %v4086_v18  ;;  %v2603_v52 = vpop.f32.mrf.mxu3  ;;  %2885 = vmatpush.msra.mxu1 %v4052_v28  ;;  %v4186_v18 = vld [vmem:[%s7360_s6 + $0x338] sm:$0xff]  ;;  %v4113_v28 = vld [vmem:[%s7360_s6 + $0xf0] sm:$0xff] }
 0x3c9   : > { %2959 = vmatpush.msra.mxu2 %v4068_v62  ;;  %v3159_v35 = vld [vmem:[%s7360_s6 + $0x78] sm:$0xff] }
 0x3ca   : > { %v6411_v46 = vadd.f32 %v2603_v52, %v2538_v1  ;;  %3032 = vmatpush.msra.mxu3 %v4085_v44  ;;  %2886 = vmatpush.msra.mxu1 %v4051_v49  ;;  %v4130_v20 = vld [vmem:[%s7360_s6 + $0x178] sm:$0xff]  ;;  %v3158_v1 = vld [vmem:[%s7360_s6 + $0x70] sm:$0xff]  ;;  %v3157_v49 = vld [vmem:[%s7360_s6 + $0x68] sm:$0xff] }
 0x3cb   : > { %2960 = vmatpush.msra.mxu2 %v4067_v27  ;;  %v4129_v52 = vld [vmem:[%s7360_s6 + $0x170] sm:$0xff]  ;;  %v4128_v27 = vld [vmem:[%s7360_s6 + $0x168] sm:$0xff] }
 0x3cc   : > { %2750 = vmatmul.f32.gmra.mxu2 %v6004_v26  ;;  %2679 = vmatmul.f32.gmra.mxu1 %v6163_v58 }
 0x3cd   : > { %2824 = vmatmul.f32.gmra.mxu3 %v6015_v22  ;;  %3178 = vmatpush.msrb.mxu1 %v4114_v24  ;;  %v4103_v24 = vld [vmem:[%s7360_s6 + $0xa0] sm:$0xff] }
 0x3ce   : > { %3033 = vmatpush.msra.mxu3 %v4084_v59  ;;  %3198 = vmatpush.msrb.mxu2 %v3159_v35  ;;  %v4112_v59 = vld [vmem:[%s7360_s6 + $0xe8] sm:$0xff]  ;;  %v3148_v35 = vld [vmem:[%s7360_s6 + $0x20] sm:$0xff] }
 0x3cf   : > { %3179 = vmatpush.msrb.mxu1 %v4113_v28  ;;  %v4102_v28 = vld [vmem:[%s7360_s6 + $0x98] sm:$0xff] }
 0x3d0   : > { %3034 = vmatpush.msra.mxu3 %v4083_v19  ;;  %3199 = vmatpush.msrb.mxu2 %v3158_v1  ;;  %v4111_v19 = vld [vmem:[%s7360_s6 + $0xe0] sm:$0xff]  ;;  %v3147_v1 = vld [vmem:[%s7360_s6 + $0x18] sm:$0xff] }
 0x3d1   : > { %3180 = vmatpush.msrb.mxu1 %v4112_v59 }
 0x3d2   : > { %3236 = vmatpush.msrb.mxu3 %v4130_v20  ;;  %3200 = vmatpush.msrb.mxu2 %v3157_v49  ;;  %v4119_v20 = vld [vmem:[%s7360_s6 + $0x120] sm:$0xff] }
 0x3d3   : > { %3181 = vmatpush.msrb.mxu1 %v4111_v19  ;;  %v3146_v19 = vld [vmem:[%s7360_s6 + $0x10] sm:$0xff] }
 0x3d4   : > { %2753 = vmatmul.f32.gmra.mxu2 %v6117_v7  ;;  %2682 = vmatmul.f32.gmra.mxu1 %v6225_v39 }
 0x3d5   : > { %2827 = vmatmul.f32.gmra.mxu3 %v6165_v42  ;;  %3201 = vmatpush.msrb.mxu2 %v3156_v37  ;;  %v4117_v37 = vld [vmem:[%s7360_s6 + $0x110] sm:$0xff] }
 0x3d6   : > { %3237 = vmatpush.msrb.mxu3 %v4129_v52  ;;  %3182 = vmatpush.msrb.mxu1 %v4110_v12  ;;  %v4118_v52 = vld [vmem:[%s7360_s6 + $0x118] sm:$0xff]  ;;  %v4100_v12 = vld [vmem:[%s7360_s6 + $0x88] sm:$0xff] }
 0x3d8   : > { %3238 = vmatpush.msrb.mxu3 %v4128_v27  ;;  %v4101_v27 = vld [vmem:[%s7360_s6 + $0x90] sm:$0xff] }
 0x3d9   : > { %v2499_v17 = vpop.f32.mrf.mxu1 }
 0x3dc   : > { %2756 = vmatmul.f32.gmra.mxu2 %v6218_v29  ;;  %2685 = vmatmul.f32.gmra.mxu1 %v2630_v56 }
 0x3dd   : > { %2830 = vmatmul.f32.gmra.mxu3 %v6227_v0 }
 0x3e4   : > { %2759 = vmatmul.f32.gmra.mxu2 %v6336_v33  ;;  %2887 = vmatmul.f32.vlgmr.msra.gmra.mxu1 %v4385_v25  ;;  %v4126_v25 = vld [vmem:[%s7360_s6 + $0x158] sm:$0xff] }
 0x3e5   : > { %2833 = vmatmul.f32.gmra.mxu3 %v2778_v14 }
 0x3e7   : > { %v2540_v48 = vpop.f32.mrf.mxu2 }
 0x3e8   : > { %v2541_v36 = vadd.f32 %v2540_v48, %v2499_v17  ;;  %v2606_v61 = vpop.f32.mrf.mxu3 }
 0x3ea   : > { %v6440_v40 = vadd.f32 %v2606_v61, %v2541_v36  ;;  %v4109_v36 = vld [vmem:[%s7360_s6 + $0xd0] sm:$0xff] }
 0x3eb   : > { %v3154_v61 = vld [vmem:[%s7360_s6 + $0x50] sm:$0xff]  ;;  %3183 = vmatpush.msrb.mxu1 %v4109_v36  ;;  %v4099_v36 = vld [vmem:[%s7360_s6 + $0x80] sm:$0xff] }
 0x3ec   : > { %2961 = vmatmul.f32.vlgmr.msra.gmra.mxu2 %v4386_v13  ;;  %2890 = vmatmul.f32.gmra.mxu1 %v4388_v6  ;;  %v4125_v13 = vld [vmem:[%s7360_s6 + $0x150] sm:$0xff]  ;;  %v4108_v6 = vld [vmem:[%s7360_s6 + $0xc8] sm:$0xff] }
 0x3ed   : > { %3035 = vmatmul.f32.vlgmr.msra.gmra.mxu3 %v4387_v31  ;;  %3184 = vmatpush.msrb.mxu1 %v4108_v6  ;;  %v4162_v6 = vld [vmem:[%s7360_s6 + $0x278] sm:$0xff] }
 0x3ef   : > { %3185 = vmatpush.msrb.mxu1 %v4107_v30 }
 0x3f4   : > { %2964 = vmatmul.f32.gmra.mxu2 %v4389_v3  ;;  %2893 = vmatmul.f32.gmra.mxu1 %v5989_v45  ;;  %v3153_v3 = vld [vmem:[%s7360_s6 + $0x48] sm:$0xff] }
 0x3f5   : > { %3038 = vmatmul.f32.gmra.mxu3 %v4390_v11  ;;  %v4124_v11 = vld [vmem:[%s7360_s6 + $0x148] sm:$0xff] }
 0x3f9   : > { %v2502_v21 = vpop.f32.mrf.mxu1 }
 0x3fc   : > { %2967 = vmatmul.f32.gmra.mxu2 %v5980_v2  ;;  %2896 = vmatmul.f32.gmra.mxu1 %v6013_v38  ;;  %v4391_v38 = vld [vmem:[#allocation4] sm:$0xff] }
 0x3fd   : > { %3041 = vmatmul.f32.gmra.mxu3 %v5991_v51  ;;  %v4188_v51 = vld [vmem:[%s7360_s6 + $0x348] sm:$0xff] }
 0x3fe   : > { %3399 = vmatpush.msrb.mxu0 %v4188_v51  ;;  %v4122_v51 = vld [vmem:[%s7360_s6 + $0x138] sm:$0xff] }
 0x404   : > { %2970 = vmatmul.f32.gmra.mxu2 %v6004_v26  ;;  %2899 = vmatmul.f32.gmra.mxu1 %v6163_v58 }
 0x405   : > { %3044 = vmatmul.f32.gmra.mxu3 %v6015_v22  ;;  %v2927_v22 = vld [vmem:[#allocation4 + $0x91] sm:$0xff] }
 0x407   : > { %v2543_v8 = vpop.f32.mrf.mxu2 }
 0x408   : > { %v2544_v45 = vadd.f32 %v2543_v8, %v2502_v21  ;;  %v2609_v34 = vpop.f32.mrf.mxu3  ;;  %v3152_v21 = vld [vmem:[%s7360_s6 + $0x40] sm:$0xff] }
 0x409   : > { %v4123_v8 = vld [vmem:[%s7360_s6 + $0x140] sm:$0xff] }
 0x40a   : > { %v6455_v2 = vadd.f32 %v2609_v34, %v2544_v45  ;;  %v4106_v45 = vld [vmem:[%s7360_s6 + $0xb8] sm:$0xff] }
 0x40b   : > { %v3151_v34 = vld [vmem:[%s7360_s6 + $0x38] sm:$0xff]  ;;  %3186 = vmatpush.msrb.mxu1 %v4106_v45  ;;  %v4177_v45 = vld [vmem:[%s7360_s6 + $0x2f0] sm:$0xff] }
 0x40c   : > { %2973 = vmatmul.f32.gmra.mxu2 %v6117_v7  ;;  %2902 = vmatmul.f32.gmra.mxu1 %v6225_v39  ;;  %v3001_v7 = vld [vmem:[#allocation4 + $0x92] sm:$0xff] }
 0x40d   : > { %3047 = vmatmul.f32.gmra.mxu3 %v6165_v42  ;;  %v4187_v42 = vld [vmem:[%s7360_s6 + $0x340] sm:$0xff] }
 0x40e   : > { %3400 = vmatpush.msrb.mxu0 %v4187_v42  ;;  %v4121_v42 = vld [vmem:[%s7360_s6 + $0x130] sm:$0xff] }
 0x410   : > { %3401 = vmatpush.msrb.mxu0 %v4186_v18  ;;  %v4120_v18 = vld [vmem:[%s7360_s6 + $0x128] sm:$0xff] }
 0x412   : > { %3402 = vmatpush.msrb.mxu0 %v4185_v41  ;;  %v4146_v41 = vld [vmem:[%s7360_s6 + $0x1f8] sm:$0xff] }
 0x414   : > { %2976 = vmatmul.f32.gmra.mxu2 %v6218_v29  ;;  %2905 = vmatmul.f32.gmra.mxu1 %v2630_v56  ;;  %v4127_v56 = vld [vmem:[%s7360_s6 + $0x160] sm:$0xff] }
 0x415   : > { %3050 = vmatmul.f32.gmra.mxu3 %v6227_v0 }
 0x416   : > { %3239 = vmatpush.msrb.mxu3 %v4127_v56 }
 0x418   : > { %3240 = vmatpush.msrb.mxu3 %v4126_v25  ;;  %v4116_v25 = vld [vmem:[%s7360_s6 + $0x108] sm:$0xff] }
 0x419   : > { %v2505_v26 = vpop.f32.mrf.mxu1 }
 0x41a   : > { %3241 = vmatpush.msrb.mxu3 %v4125_v13  ;;  %v4115_v13 = vld [vmem:[%s7360_s6 + $0x100] sm:$0xff] }
 0x41c   : > { %2979 = vmatmul.f32.gmra.mxu2 %v6336_v33  ;;  %2908 = vmatmul.f32.gmra.mxu1 %v4391_v38 }
 0x41d   : > { %3053 = vmatmul.f32.gmra.mxu3 %v2778_v14  ;;  %v3155_v14 = vld [vmem:[%s7360_s6 + $0x58] sm:$0xff] }
 0x41e   : > { %3202 = vmatpush.msrb.mxu2 %v3155_v14  ;;  %3242 = vmatpush.msrb.mxu3 %v4124_v11  ;;  %v3145_v14 = vld [vmem:[%s7360_s6 + $0x8] sm:$0xff] }
 0x420   : > { %3203 = vmatpush.msrb.mxu2 %v3154_v61  ;;  %3243 = vmatpush.msrb.mxu3 %v4123_v8  ;;  %v3144_v61 = vld [vmem:[%s7360_s6] sm:$0xff]  ;;  %v4161_v8 = vld [vmem:[%s7360_s6 + $0x270] sm:$0xff] }
 0x421   : > { %v6466_v58 = vpop.f32.mrf.mxu1 }
 0x422   : > { %3204 = vmatpush.msrb.mxu2 %v3153_v3  ;;  %3244 = vmatpush.msrb.mxu3 %v4122_v51  ;;  %v4178_v3 = vld [vmem:[%s7360_s6 + $0x2f8] sm:$0xff]  ;;  %v4160_v51 = vld [vmem:[%s7360_s6 + $0x268] sm:$0xff] }
 0x424   : > { %2982 = vmatmul.f32.gmra.mxu2 %v2927_v22  ;;  %v4105_v22 = vld [vmem:[%s7360_s6 + $0xb0] sm:$0xff]  ;;  %3245 = vmatpush.msrb.mxu3 %v4121_v42  ;;  %v4184_v42 = vld [vmem:[%s7360_s6 + $0x328] sm:$0xff] }
 0x425   : > { %3056 = vmatmul.f32.gmra.mxu3 %v3001_v7  ;;  %3205 = vmatpush.msrb.mxu2 %v3152_v21  ;;  %v3150_v7 = vld [vmem:[%s7360_s6 + $0x30] sm:$0xff] }
 0x426   : > { %3187 = vmatpush.msrb.mxu1 %v4105_v22  ;;  %3246 = vmatpush.msrb.mxu3 %v4120_v18  ;;  %v4145_v21 = vld [vmem:[%s7360_s6 + $0x1f0] sm:$0xff]  ;;  %v4176_v22 = vld [vmem:[%s7360_s6 + $0x2e8] sm:$0xff]  ;;  %v4175_v18 = vld [vmem:[%s7360_s6 + $0x2e0] sm:$0xff] }
 0x427   : > { %v2546_v29 = vpop.f32.mrf.mxu2  ;;  %3206 = vmatpush.msrb.mxu2 %v3151_v34  ;;  %v4144_v34 = vld [vmem:[%s7360_s6 + $0x1e8] sm:$0xff]  ;;  %3403 = vmatpush.msrb.mxu0 %v4184_v42 }
 0x428   : > { %v2612_v39 = vpop.f32.mrf.mxu3  ;;  %v2547_v0 = vadd.f32 %v2546_v29, %v2505_v26  ;;  %3247 = vmatpush.msrb.mxu3 %v4119_v20  ;;  %v4174_v20 = vld [vmem:[%s7360_s6 + $0x2d8] sm:$0xff] }
 0x429   : > { %v6473_v33 = vpop.f32.mrf.mxu1  ;;  %3207 = vmatpush.msrb.mxu2 %v3150_v7 }
 0x42a   : > { %v6471_v32 = vadd.f32 %v2612_v39, %v2547_v0  ;;  %v4104_v39 = vld [vmem:[%s7360_s6 + $0xa8] sm:$0xff]  ;;  %3248 = vmatpush.msrb.mxu3 %v4118_v52 }
 0x42b   : > { %v3149_v0 = vld [vmem:[%s7360_s6 + $0x28] sm:$0xff]  ;;  %3188 = vmatpush.msrb.mxu1 %v4104_v39  ;;  %v4143_v39 = vld [vmem:[%s7360_s6 + $0x1e0] sm:$0xff] }
 0x42c   : > { %3208 = vmatpush.msrb.mxu2 %v3149_v0  ;;  %3249 = vmatpush.msrb.mxu3 %v4117_v37  ;;  %v4159_v0 = vld [vmem:[%s7360_s6 + $0x260] sm:$0xff]  ;;  %v4173_v37 = vld [vmem:[%s7360_s6 + $0x2d0] sm:$0xff] }
 0x42d   : > { %3189 = vmatpush.msrb.mxu1 %v4103_v24  ;;  %v4142_v24 = vld [vmem:[%s7360_s6 + $0x1d8] sm:$0xff] }
 0x42e   : > { %3209 = vmatpush.msrb.mxu2 %v3148_v35  ;;  %3250 = vmatpush.msrb.mxu3 %v4116_v25  ;;  %v4158_v35 = vld [vmem:[%s7360_s6 + $0x258] sm:$0xff]  ;;  %v4140_v25 = vld [vmem:[%s7360_s6 + $0x1c8] sm:$0xff] }
 0x42f   : > { %v6475_v10 = vpop.f32.mrf.mxu2  ;;  %3190 = vmatpush.msrb.mxu1 %v4102_v28  ;;  %v4183_v28 = vld [vmem:[%s7360_s6 + $0x320] sm:$0xff] }
 0x430   : > { %v6477_v43 = vpop.f32.mrf.mxu3  ;;  %3210 = vmatpush.msrb.mxu2 %v3147_v1  ;;  %3251 = vmatpush.msrb.mxu3 %v4115_v13  ;;  %v4139_v13 = vld [vmem:[%s7360_s6 + $0x1c0] sm:$0xff] }
 0x431   : > { %v6479_v53 = vpop.f32.mrf.mxu1  ;;  %3191 = vmatpush.msrb.mxu1 %v4101_v27  ;;  %v4141_v27 = vld [vmem:[%s7360_s6 + $0x1d0] sm:$0xff]  ;;  %3404 = vmatpush.msrb.mxu0 %v4183_v28  ;;  %v4136_v28 = vld [vmem:[%s7360_s6 + $0x1a8] sm:$0xff] }
 0x432   : > { %3211 = vmatpush.msrb.mxu2 %v3146_v19  ;;  %3354 = vmatpush.msra.mxu3 %v4178_v3  ;;  %v4157_v19 = vld [vmem:[%s7360_s6 + $0x250] sm:$0xff] }
 0x433   : > { %3192 = vmatpush.msrb.mxu1 %v4100_v12  ;;  %v2526_v12 = vadd.f32 %v6234_v60, %v6232_v63  ;;  %v4172_v63 = vld [vmem:[%s7360_s6 + $0x2c8] sm:$0xff] }
 0x434   : > { %3212 = vmatpush.msrb.mxu2 %v3145_v14  ;;  %3355 = vmatpush.msra.mxu3 %v4177_v45  ;;  %v4182_v14 = vld [vmem:[%s7360_s6 + $0x318] sm:$0xff] }
 0x435   : > { %3193 = vmatpush.msrb.mxu1 %v4099_v36  ;;  %v4156_v36 = vld [vmem:[%s7360_s6 + $0x248] sm:$0xff]  ;;  %3405 = vmatpush.msrb.mxu0 %v4182_v14  ;;  %v2615_v3 = vadd.f32 %v6240_v57, %v2526_v12  ;;  %v4154_v45 = vld [vmem:[%s7360_s6 + $0x238] sm:$0xff]  ;;  %v4167_v12 = vld [vmem:[%s7360_s6 + $0x2a0] sm:$0xff] }
 0x436   : > { %3213 = vmatpush.msrb.mxu2 %v3144_v61  ;;  %3356 = vmatpush.msra.mxu3 %v4176_v22  ;;  %v4181_v61 = vld [vmem:[%s7360_s6 + $0x310] sm:$0xff]  ;;  %v4170_v57 = vld [vmem:[%s7360_s6 + $0x2b8] sm:$0xff] }
 0x437   : > { %v6493_v47 = vpop.f32.mrf.mxu2  ;;  %3275 = vmatpush.msra.mxu1 %v4146_v41  ;;  %v4155_v41 = vld [vmem:[%s7360_s6 + $0x240] sm:$0xff]  ;;  %3406 = vmatpush.msrb.mxu0 %v4181_v61  ;;  %v4258_v22 = vld [vmem:[%s7360_s6 + $0x578] sm:$0xff] }
 0x438   : > { %v6495_v44 = vpop.f32.mrf.mxu3  ;;  %3315 = vmatpush.msra.mxu2 %v4162_v6  ;;  %3357 = vmatpush.msra.mxu3 %v4175_v18  ;;  %v4171_v6 = vld [vmem:[%s7360_s6 + $0x2c0] sm:$0xff]  ;;  %v4169_v18 = vld [vmem:[%s7360_s6 + $0x2b0] sm:$0xff]  ;;  %v4150_v61 = vld [vmem:[%s7360_s6 + $0x218] sm:$0xff] }
 0x439   : > { %v6506_v62 = vpop.f32.mrf.mxu1  ;;  %3276 = vmatpush.msra.mxu1 %v4145_v21  ;;  %v4180_v21 = vld [vmem:[%s7360_s6 + $0x308] sm:$0xff] }
 0x43a   : > { %3316 = vmatpush.msra.mxu2 %v4161_v8  ;;  %3358 = vmatpush.msra.mxu3 %v4174_v20  ;;  %v4138_v8 = vld [vmem:[%s7360_s6 + $0x1b8] sm:$0xff]  ;;  %v4257_v20 = vld [vmem:[%s7360_s6 + $0x570] sm:$0xff] }
 0x43b   : > { %3277 = vmatpush.msra.mxu1 %v4144_v34  ;;  %v2689_v34 = vadd.f32 %v6466_v58, %v2615_v3  ;;  %3407 = vmatpush.msrb.mxu0 %v4180_v21  ;;  %v4137_v58 = vld [vmem:[%s7360_s6 + $0x1b0] sm:$0xff] }
 0x43c   : > { %3317 = vmatpush.msra.mxu2 %v4160_v51  ;;  %3359 = vmatpush.msra.mxu3 %v4173_v37  ;;  %v4179_v51 = vld [vmem:[%s7360_s6 + $0x300] sm:$0xff]  ;;  %v4133_v21 = vld [vmem:[%s7360_s6 + $0x190] sm:$0xff] }
 0x43d   : > { %3278 = vmatpush.msra.mxu1 %v4143_v39  ;;  %3408 = vmatpush.msrb.mxu0 %v4179_v51  ;;  %v4151_v37 = vld [vmem:[%s7360_s6 + $0x220] sm:$0xff]  ;;  %v4253_v51 = vld [vmem:[%s7360_s6 + $0x550] sm:$0xff] }
 0x43e   : > { %3318 = vmatpush.msra.mxu2 %v4159_v0  ;;  %3360 = vmatpush.msra.mxu3 %v4172_v63  ;;  %v4153_v0 = vld [vmem:[%s7360_s6 + $0x230] sm:$0xff]  ;;  %v4134_v63 = vld [vmem:[%s7360_s6 + $0x198] sm:$0xff] }
 0x43f   : > { %v6535_v17 = vpop.f32.mrf.mxu2  ;;  %3279 = vmatpush.msra.mxu1 %v4142_v24  ;;  %v2529_v24 = vadd.f32 %v6281_v15, %v6279_v23  ;;  %3550 = vmatpush.msra.mxu0 %v4258_v22  ;;  %v4168_v23 = vld [vmem:[%s7360_s6 + $0x2a8] sm:$0xff] }
 0x440   : > { %v6537_v48 = vpop.f32.mrf.mxu3  ;;  %3319 = vmatpush.msra.mxu2 %v4158_v35  ;;  %3361 = vmatpush.msra.mxu3 %v4171_v6  ;;  %v2763_v35 = vadd.f32 %v6475_v10, %v2689_v34  ;;  %v4256_v10 = vld [vmem:[%s7360_s6 + $0x568] sm:$0xff]  ;;  %v6846_v34 = vld [vmem:[%s7359_s5] ss:$0 sm:$0xff] }
 0x441   : > { %v6548_v31 = vpop.f32.mrf.mxu1  ;;  %3280 = vmatpush.msra.mxu1 %v4141_v27  ;;  %v4152_v27 = vld [vmem:[%s7360_s6 + $0x228] sm:$0xff]  ;;  %3551 = vmatpush.msra.mxu0 %v4257_v20  ;;  %v2616_v14 = vadd.f32 %v6292_v5, %v2529_v24  ;;  %v4166_v5 = vld [vmem:[%s7360_s6 + $0x298] sm:$0xff]  ;;  %v4147_v24 = vld [vmem:[%s7360_s6 + $0x200] sm:$0xff] }
 0x442   : > { %3320 = vmatpush.msra.mxu2 %v4157_v19  ;;  %3362 = vmatpush.msra.mxu3 %v4170_v57  ;;  %v4135_v19 = vld [vmem:[%s7360_s6 + $0x1a0] sm:$0xff] }
 0x443   : > { %3281 = vmatpush.msra.mxu1 %v4140_v25  ;;  %v2837_v25 = vadd.f32 %v6477_v43, %v2763_v35  ;;  %3552 = vmatpush.msra.mxu0 %v4256_v10  ;;  %v2690_v43 = vadd.f32 %v6473_v33, %v2616_v14  ;;  %v4165_v33 = vld [vmem:[%s7360_s6 + $0x290] sm:$0xff]  ;;  %v4163_v35 = vld [vmem:[%s7360_s6 + $0x280] sm:$0xff] }
 0x444   : > { %3321 = vmatpush.msra.mxu2 %v4156_v36  ;;  %3363 = vmatpush.msra.mxu3 %v4169_v18  ;;  %v4255_v36 = vld [vmem:[%s7360_s6 + $0x560] sm:$0xff] }
 0x445   : > { %3282 = vmatpush.msra.mxu1 %v4139_v13  ;;  %3553 = vmatpush.msra.mxu0 %v4255_v36  ;;  %v4131_v18 = vld [vmem:[%s7360_s6 + $0x180] sm:$0xff]  ;;  %v4250_v36 = vld [vmem:[%s7360_s6 + $0x538] sm:$0xff] }
 0x446   : > { %3322 = vmatpush.msra.mxu2 %v4155_v41  ;;  %3364 = vmatpush.msra.mxu3 %v4168_v23  ;;  %v4254_v41 = vld [vmem:[%s7360_s6 + $0x558] sm:$0xff]  ;;  %v4251_v23 = vld [vmem:[%s7360_s6 + $0x540] sm:$0xff] }
 0x447   : > { %v6580_v26 = vpop.f32.mrf.mxu2  ;;  %3283 = vmatpush.msra.mxu1 %v4138_v8  ;;  %v4149_v8 = vld [vmem:[%s7360_s6 + $0x210] sm:$0xff]  ;;  %3554 = vmatpush.msra.mxu0 %v4254_v41  ;;  %v4247_v41 = vld [vmem:[%s7360_s6 + $0x520] sm:$0xff] }
 0x448   : > { %v6582_v38 = vpop.f32.mrf.mxu3  ;;  %3323 = vmatpush.msra.mxu2 %v4154_v45  ;;  %3365 = vmatpush.msra.mxu3 %v4167_v12  ;;  %v2764_v45 = vadd.f32 %v6493_v47, %v2690_v43  ;;  %v4164_v47 = vld [vmem:[%s7360_s6 + $0x288] sm:$0xff] }
 0x449   : > { %v6593_v29 = vpop.f32.mrf.mxu1  ;;  %3284 = vmatpush.msra.mxu1 %v4137_v58  ;;  %3555 = vmatpush.msra.mxu0 %v4253_v51  ;;  %v4244_v51 = vld [vmem:[%s7360_s6 + $0x508] sm:$0xff] }
 0x44a   : > { %3324 = vmatpush.msra.mxu2 %v4153_v0  ;;  %3366 = vmatpush.msra.mxu3 %v4166_v5  ;;  %v4252_v0 = vld [vmem:[%s7360_s6 + $0x548] sm:$0xff] }
 0x44b   : > { %3285 = vmatpush.msra.mxu1 %v4136_v28  ;;  %v2838_v28 = vadd.f32 %v6495_v44, %v2764_v45  ;;  %3556 = vmatpush.msra.mxu0 %v4252_v0  ;;  %v2535_v44 = vadd.f32 %v6365_v55, %v6363_v16 }
 0x44c   : > { %3325 = vmatpush.msra.mxu2 %v4152_v27  ;;  %3367 = vmatpush.msra.mxu3 %v4165_v33 }
 0x44d   : > { %3286 = vmatpush.msra.mxu1 %v4135_v19  ;;  %3557 = vmatpush.msra.mxu0 %v4251_v23 }
 0x44e   : > { %3326 = vmatpush.msra.mxu2 %v4151_v37  ;;  %3368 = vmatpush.msra.mxu3 %v4164_v47 }
 0x44f   : > { %v6622_v59 = vpop.f32.mrf.mxu2  ;;  %3287 = vmatpush.msra.mxu1 %v4134_v63  ;;  %3558 = vmatpush.msra.mxu0 %v4250_v36  ;;  %v4226_v36 = vld [vmem:[%s7360_s6 + $0x478] sm:$0xff] }
 0x450   : > { %v6624_v49 = vpop.f32.mrf.mxu3  ;;  %3327 = vmatpush.msra.mxu2 %v4150_v61  ;;  %3369 = vmatpush.msra.mxu3 %v4163_v35  ;;  %v2618_v61 = vadd.f32 %v6376_v9, %v2535_v44 }
 0x451   : > { %v6635_v56 = vpop.f32.mrf.mxu1  ;;  %3288 = vmatpush.msra.mxu1 %v4133_v21  ;;  %v4246_v21 = vld [vmem:[%s7360_s6 + $0x518] sm:$0xff] }
 0x452   : > { %3328 = vmatpush.msra.mxu2 %v4149_v8  ;;  %v2692_v5 = vadd.f32 %v6506_v62, %v2618_v61  ;;  %v4245_v62 = vld [vmem:[%s7360_s6 + $0x510] sm:$0xff] }
 0x453   : > { %v4209_v61 = vld [vmem:[%s7360_s6 + $0x3f0] sm:$0xff] }
 0x454   : > { %v2766_v9 = vadd.f32 %v6580_v26, %v2692_v5 }
 0x456   : > { %v2840_v33 = vadd.f32 %v6582_v38, %v2766_v9 }
 0x457   : > { %v6664_v11 = vpop.f32.mrf.mxu2 }
 0x458   : > { %v6666_v30 = vpop.f32.mrf.mxu3 }
 0x459   : > { %v6686_v7 = vpop.f32.mrf.mxu1 }
 0x45f   : > { %v6712_v1 = vpop.f32.mrf.mxu2 }
 0x460   : > { %v6714_v52 = vpop.f32.mrf.mxu3 }
 0x461   : > { %v2888_v60 = vpop.f32.mrf.mxu1 }
 0x462   : > { %v2912_v13 = vadd.f32 %v2888_v60, %v2837_v25  ;;  %v2532_v60 = vadd.f32 %v6323_v4, %v6321_v50  ;;  %v4132_v50 = vld [vmem:[%s7360_s6 + $0x188] sm:$0xff] }
 0x463   : > { %v4148_v4 = vld [vmem:[%s7360_s6 + $0x208] sm:$0xff]  ;;  %3289 = vmatpush.msra.mxu1 %v4132_v50  ;;  %v2693_v50 = vadd.f32 %v6548_v31, %v6411_v46 }
 0x464   : > { %v2617_v20 = vadd.f32 %v6331_v54, %v2532_v60  ;;  %3329 = vmatpush.msra.mxu2 %v4148_v4 }
 0x465   : > { %3290 = vmatpush.msra.mxu1 %v4131_v18  ;;  %v2767_v18 = vadd.f32 %v6622_v59, %v2693_v50  ;;  %v4206_v50 = vld [vmem:[%s7360_s6 + $0x3d8] sm:$0xff] }
 0x466   : > { %v2691_v10 = vadd.f32 %v6479_v53, %v2617_v20  ;;  %3330 = vmatpush.msra.mxu2 %v4147_v24 }
 0x467   : > { %v6771_v42 = vpop.f32.mrf.mxu2  ;;  %v2841_v31 = vadd.f32 %v6624_v49, %v2767_v18  ;;  %v4210_v49 = vld [vmem:[%s7360_s6 + $0x3f8] sm:$0xff]  ;;  %v4221_v18 = vld [vmem:[%s7360_s6 + $0x450] sm:$0xff] }
 0x468   : > { %v6773_v39 = vpop.f32.mrf.mxu3  ;;  %v2765_v14 = vadd.f32 %v6535_v17, %v2691_v10  ;;  %v4248_v17 = vld [vmem:[%s7360_s6 + $0x528] sm:$0xff]  ;;  %v2694_v10 = vadd.f32 %v6593_v29, %v6440_v40  ;;  %v4242_v40 = vld [vmem:[%s7360_s6 + $0x4f8] sm:$0xff] }
 0x469   : > { %v6799_v15 = vpop.f32.mrf.mxu1 }
 0x46a   : > { %v2913_v37 = vadd.f32 %v6799_v15, %v2838_v28  ;;  %v4249_v15 = vld [vmem:[%s7360_s6 + $0x530] sm:$0xff]  ;;  %v2839_v16 = vadd.f32 %v6537_v48, %v2765_v14  ;;  %v4243_v28 = vld [vmem:[%s7360_s6 + $0x500] sm:$0xff]  ;;  %v2768_v44 = vadd.f32 %v6664_v11, %v2694_v10 }
 0x46b   : > { %3559 = vmatpush.msra.mxu0 %v4249_v15  ;;  %v4203_v10 = vld [vmem:[%s7360_s6 + $0x3c0] sm:$0xff] }
 0x46c   : > { %v2842_v11 = vadd.f32 %v6666_v30, %v2768_v44 }
 0x46d   : > { %3560 = vmatpush.msra.mxu0 %v4248_v17  ;;  %v2695_v17 = vadd.f32 %v6635_v56, %v6455_v2  ;;  %v4240_v2 = vld [vmem:[%s7360_s6 + $0x4e8] sm:$0xff] }
 0x46f   : > { %v2962_v6 = vpop.f32.mrf.mxu2  ;;  %3561 = vmatpush.msra.mxu0 %v4247_v41  ;;  %v4208_v41 = vld [vmem:[%s7360_s6 + $0x3e8] sm:$0xff]  ;;  %v2769_v56 = vadd.f32 %v6712_v1, %v2695_v17  ;;  %v4223_v1 = vld [vmem:[%s7360_s6 + $0x460] sm:$0xff] }
 0x470   : > { %v3036_v3 = vpop.f32.mrf.mxu3  ;;  %v2986_v57 = vadd.f32 %v2962_v6, %v2912_v13 }
 0x471   : > { %v2894_v58 = vpop.f32.mrf.mxu1  ;;  %3562 = vmatpush.msra.mxu0 %v4246_v21 }
 0x472   : > { %v3060_v22 = vadd.f32 %v3036_v3, %v2986_v57  ;;  %v2914_v13 = vadd.f32 %v2894_v58, %v2839_v16  ;;  %v4225_v16 = vld [vmem:[%s7360_s6 + $0x470] sm:$0xff] }
 0x473   : > { %3563 = vmatpush.msra.mxu0 %v4245_v62 }
 0x474   : > { %v3072_v27 = vadd.f32 %v6846_v34, %v3060_v22 }
 0x475   : > { %3564 = vmatpush.msra.mxu0 %v4244_v51 }
 0x476   : > { %v3080_v19 = vmax.f32 %v3072_v27, 0.0 }
 0x477   : > { %v2965_v54 = vpop.f32.mrf.mxu2  ;;  %3565 = vmatpush.msra.mxu0 %v4243_v28 }
 0x478   : > { %v3039_v12 = vpop.f32.mrf.mxu3  ;;  %3088 = vst [vmem:[#allocation5] sm:$0xff] %v3080_v19  ;;  %v2987_v25 = vadd.f32 %v2965_v54, %v2913_v37 }
 0x479   : > { %v2897_v63 = vpop.f32.mrf.mxu1 }
 0x47a   : > { %v3061_v53 = vadd.f32 %v3039_v12, %v2987_v25  ;;  %v2915_v47 = vadd.f32 %v2897_v63, %v2840_v33 }
 0x47c   : > { %v3073_v55 = vadd.f32 %v6846_v34, %v3061_v53 }
 0x47e   : > { %v3081_v43 = vmax.f32 %v3073_v55, 0.0  ;;  %v4241_v55 = vld [vmem:[%s7360_s6 + $0x4f0] sm:$0xff] }
 0x47f   : > { %v2968_v6 = vpop.f32.mrf.mxu2  ;;  %v3096_v60 = vld [vmem:[#allocation5] ss:$2 sm:$0xf]  ;;  %v3112_v26 = vld [vmem:[#allocation5 + $0x1] ss:$2 sm:$0xf] }
 0x480   : > { %v3042_v3 = vpop.f32.mrf.mxu3  ;;  %3089 = vst [vmem:[#allocation5 + $0x8] sm:$0xff] %v3081_v43  ;;  %v2988_v48 = vadd.f32 %v2968_v6, %v2914_v13  ;;  %v3127_v24 = vmax.f32 %v3096_v60, %v3112_v26  ;;  %v4224_v6 = vld [vmem:[%s7360_s6 + $0x468] sm:$0xff]  ;;  %v4207_v60 = vld [vmem:[%s7360_s6 + $0x3e0] sm:$0xff] }
 0x481   : > { %v2900_v57 = vpop.f32.mrf.mxu1 }
 0x482   : > { %v3062_v8 = vadd.f32 %v3042_v3, %v2988_v48  ;;  %v2916_v19 = vadd.f32 %v2900_v57, %v2841_v31  ;;  %v4239_v57 = vld [vmem:[%s7360_s6 + $0x4e0] sm:$0xff]  ;;  %v4220_v31 = vld [vmem:[%s7360_s6 + $0x448] sm:$0xff] }
 0x484   : > { %v3074_v45 = vadd.f32 %v6846_v34, %v3062_v8 }
 0x486   : > { %v3082_v4 = vmax.f32 %v3074_v45, 0.0 }
 0x487   : > { %v3098_v22 = vld [vmem:[#allocation5 + $0x8] ss:$2 sm:$0xf]  ;;  %v3114_v58 = vld [vmem:[#allocation5 + $0x9] ss:$2 sm:$0xf]  ;;  %v2971_v0 = vpop.f32.mrf.mxu2 }
 0x488   : > { %v3045_v38 = vpop.f32.mrf.mxu3  ;;  %v3128_v35 = vmax.f32 %v3098_v22, %v3114_v58  ;;  %3090 = vst [vmem:[#allocation5 + $0x10] sm:$0xff] %v3082_v4  ;;  %v2989_v20 = vadd.f32 %v2971_v0, %v2915_v47  ;;  %v4222_v4 = vld [vmem:[%s7360_s6 + $0x458] sm:$0xff]  ;;  %v2843_v47 = vadd.f32 %v6714_v52, %v2769_v56  ;;  %v2696_v52 = vadd.f32 %v6686_v7, %v6471_v32  ;;  %v4216_v56 = vld [vmem:[%s7360_s6 + $0x428] sm:$0xff] }
 0x489   : > { %v2903_v37 = vpop.f32.mrf.mxu1  ;;  %v4238_v0 = vld [vmem:[%s7360_s6 + $0x4d8] sm:$0xff] }
 0x48a   : > { %v3063_v27 = vadd.f32 %v3045_v38, %v2989_v20  ;;  %v3135_v46 = vmax.f32 %v3127_v24, %v3128_v35  ;;  %v2917_v13 = vadd.f32 %v2903_v37, %v2842_v11  ;;  %v4205_v38 = vld [vmem:[%s7360_s6 + $0x3d0] sm:$0xff]  ;;  %v2770_v32 = vadd.f32 %v6771_v42, %v2696_v52  ;;  %v4235_v42 = vld [vmem:[%s7360_s6 + $0x4c0] sm:$0xff]  ;;  %v4202_v37 = vld [vmem:[%s7360_s6 + $0x3b8] sm:$0xff] }
 0x48b   : > { %v4237_v20 = vld [vmem:[%s7360_s6 + $0x4d0] sm:$0xff]  ;;  %v4195_v52 = vld [vmem:[%s7360_s6 + $0x380] sm:$0xff] }
 0x48c   : > { %v3075_v23 = vadd.f32 %v6846_v34, %v3063_v27  ;;  %3139 = vst [vmem:[#allocation6] sm:$0xf] %v3135_v46  ;;  %v4204_v46 = vld [vmem:[%s7360_s6 + $0x3c8] sm:$0xff] }
 0x48e   : > { %v3083_v59 = vmax.f32 %v3075_v23, 0.0  ;;  %v4236_v23 = vld [vmem:[%s7360_s6 + $0x4c8] sm:$0xff] }
 0x48f   : > { %v2974_v54 = vpop.f32.mrf.mxu2  ;;  %v3100_v30 = vld [vmem:[#allocation5 + $0x10] ss:$2 sm:$0xf]  ;;  %v3116_v5 = vld [vmem:[#allocation5 + $0x11] ss:$2 sm:$0xf] }
 0x490   : > { %v3048_v12 = vpop.f32.mrf.mxu3  ;;  %3091 = vst [vmem:[#allocation5 + $0x18] sm:$0xff] %v3083_v59  ;;  %v2990_v14 = vadd.f32 %v2974_v54, %v2916_v19  ;;  %v3129_v8 = vmax.f32 %v3100_v30, %v3116_v5  ;;  %v4219_v59 = vld [vmem:[%s7360_s6 + $0x440] sm:$0xff]  ;;  %v4218_v54 = vld [vmem:[%s7360_s6 + $0x438] sm:$0xff] }
 0x491   : > { %v2906_v45 = vpop.f32.mrf.mxu1 }
 0x492   : > { %v3064_v25 = vadd.f32 %v3048_v12, %v2990_v14  ;;  %v2918_v35 = vadd.f32 %v2906_v45, %v2843_v47  ;;  %v4229_v47 = vld [vmem:[%s7360_s6 + $0x490] sm:$0xff] }
 0x493   : > { %v3160_v29 = vld [vmem:[#allocation6 + $0x1] sm:$0x1]  ;;  %v3143_v53 = vld [vmem:[#allocation6] sm:$0x1]  ;;  %v3218_v63 = vld [vmem:[#allocation6 + $0x2] sm:$0x1] }
 0x494   : > { %v3076_v15 = vadd.f32 %v6846_v34, %v3064_v25  ;;  %3194 = vmatmul.f32.vlgmr.msrb.gmra.mxu1 %v3160_v29  ;;  %3214 = vmatmul.f32.vlgmr.msrb.gmra.mxu2 %v3143_v53  ;;  %v3257_v58 = vld [vmem:[#allocation6 + $0x3] sm:$0x1]  ;;  %v4322_v29 = vld [vmem:[%s7360_s6 + $0x778] sm:$0xff] }
 0x495   : > { %3252 = vmatmul.f32.vlgmr.msrb.gmra.mxu3 %v3218_v63  ;;  %3432 = vmatpush.msrb.mxu1 %v4210_v49  ;;  %v2844_v49 = vadd.f32 %v6773_v39, %v2770_v32  ;;  %v4201_v53 = vld [vmem:[%s7360_s6 + $0x3b0] sm:$0xff] }
 0x496   : > { %v3084_v43 = vmax.f32 %v3076_v15, 0.0  ;;  %3472 = vmatpush.msrb.mxu2 %v4226_v36  ;;  %3511 = vmatpush.msrb.mxu3 %v4242_v40  ;;  %v4234_v40 = vld [vmem:[%s7360_s6 + $0x4b8] sm:$0xff] }
 0x497   : > { %v3102_v3 = vld [vmem:[#allocation5 + $0x18] ss:$2 sm:$0xf]  ;;  %v3118_v9 = vld [vmem:[#allocation5 + $0x19] ss:$2 sm:$0xf]  ;;  %3433 = vmatpush.msrb.mxu1 %v4209_v61  ;;  %v2977_v48 = vpop.f32.mrf.mxu2 }
 0x498   : > { %v3051_v21 = vpop.f32.mrf.mxu3  ;;  %v3130_v62 = vmax.f32 %v3102_v3, %v3118_v9  ;;  %3092 = vst [vmem:[#allocation5 + $0x20] sm:$0xff] %v3084_v43  ;;  %3473 = vmatpush.msrb.mxu2 %v4225_v16  ;;  %3512 = vmatpush.msrb.mxu3 %v4241_v55  ;;  %v2991_v33 = vadd.f32 %v2977_v48, %v2917_v13  ;;  %v4217_v61 = vld [vmem:[%s7360_s6 + $0x430] sm:$0xff]  ;;  %v4232_v3 = vld [vmem:[%s7360_s6 + $0x4a8] sm:$0xff] }
 0x499   : > { %3434 = vmatpush.msrb.mxu1 %v4208_v41  ;;  %v2909_v12 = vpop.f32.mrf.mxu1  ;;  %v4233_v16 = vld [vmem:[%s7360_s6 + $0x4b0] sm:$0xff]  ;;  %v4320_v9 = vld [vmem:[%s7360_s6 + $0x768] sm:$0xff] }
 0x49a   : > { %v3065_v26 = vadd.f32 %v3051_v21, %v2991_v33  ;;  %3474 = vmatpush.msrb.mxu2 %v4224_v6  ;;  %3513 = vmatpush.msrb.mxu3 %v4240_v2  ;;  %v3136_v51 = vmax.f32 %v3129_v8, %v3130_v62  ;;  %v2919_v15 = vadd.f32 %v2909_v12, %v2844_v49  ;;  %v4321_v55 = vld [vmem:[%s7360_s6 + $0x770] sm:$0xff]  ;;  %v4200_v2 = vld [vmem:[%s7360_s6 + $0x3a8] sm:$0xff]  ;;  %v4199_v21 = vld [vmem:[%s7360_s6 + $0x3a0] sm:$0xff] }
 0x49b   : > { %3435 = vmatpush.msrb.mxu1 %v4207_v60  ;;  %v4215_v8 = vld [vmem:[%s7360_s6 + $0x420] sm:$0xff]  ;;  %v4272_v49 = vld [vmem:[%s7360_s6 + $0x5e8] sm:$0xff] }
 0x49c   : > { %v3077_v22 = vadd.f32 %v6846_v34, %v3065_v26  ;;  %3475 = vmatpush.msrb.mxu2 %v4223_v1  ;;  %3514 = vmatpush.msrb.mxu3 %v4239_v57  ;;  %3140 = vst [vmem:[#allocation6 + $0x4] sm:$0xf] %v3136_v51  ;;  %v4231_v33 = vld [vmem:[%s7360_s6 + $0x4a0] sm:$0xff]  ;;  %v4198_v1 = vld [vmem:[%s7360_s6 + $0x398] sm:$0xff] }
 0x49d   : > { %3291 = vmatmul.f32.vlgmr.msra.gmra.mxu1 %v3257_v58  ;;  %v4319_v60 = vld [vmem:[%s7360_s6 + $0x760] sm:$0xff]  ;;  %v4214_v57 = vld [vmem:[%s7360_s6 + $0x418] sm:$0xff]  ;;  %v4196_v58 = vld [vmem:[%s7360_s6 + $0x388] sm:$0xff] }
 0x49e   : > { %v3085_v24 = vmax.f32 %v3077_v22, 0.0  ;;  %3436 = vmatpush.msrb.mxu1 %v4206_v50  ;;  %3476 = vmatpush.msrb.mxu2 %v4222_v4  ;;  %v4230_v26 = vld [vmem:[%s7360_s6 + $0x498] sm:$0xff]  ;;  %v4197_v50 = vld [vmem:[%s7360_s6 + $0x390] sm:$0xff] }
 0x49f   : > { %3515 = vmatpush.msrb.mxu3 %v4238_v0  ;;  %v2980_v28 = vpop.f32.mrf.mxu2  ;;  %v3104_v63 = vld [vmem:[#allocation5 + $0x20] ss:$2 sm:$0xf]  ;;  %v3120_v11 = vld [vmem:[#allocation5 + $0x21] ss:$2 sm:$0xf] }
 0x4a0   : > { %v3054_v27 = vpop.f32.mrf.mxu3  ;;  %3093 = vst [vmem:[#allocation5 + $0x28] sm:$0xff] %v3085_v24  ;;  %3437 = vmatpush.msrb.mxu1 %v4205_v38  ;;  %3477 = vmatpush.msrb.mxu2 %v4221_v18  ;;  %v2992_v7 = vadd.f32 %v2980_v28, %v2918_v35  ;;  %v3131_v13 = vmax.f32 %v3104_v63, %v3120_v11  ;;  %v4213_v4 = vld [vmem:[%s7360_s6 + $0x410] sm:$0xff]  ;;  %v4212_v0 = vld [vmem:[%s7360_s6 + $0x408] sm:$0xff]  ;;  %v4211_v24 = vld [vmem:[%s7360_s6 + $0x400] sm:$0xff] }
 0x4a1   : > { %3516 = vmatpush.msrb.mxu3 %v4237_v20  ;;  %v4317_v22 = vld [vmem:[%s7360_s6 + $0x750] sm:$0xff]  ;;  %v4228_v38 = vld [vmem:[%s7360_s6 + $0x488] sm:$0xff]  ;;  %v4227_v35 = vld [vmem:[%s7360_s6 + $0x480] sm:$0xff] }
 0x4a2   : > { %v3066_v19 = vadd.f32 %v3054_v27, %v2992_v7  ;;  %3438 = vmatpush.msrb.mxu1 %v4204_v46  ;;  %3478 = vmatpush.msrb.mxu2 %v4220_v31  ;;  %v4316_v18 = vld [vmem:[%s7360_s6 + $0x748] sm:$0xff]  ;;  %v4274_v20 = vld [vmem:[%s7360_s6 + $0x5f8] sm:$0xff]  ;;  %v4315_v31 = vld [vmem:[%s7360_s6 + $0x740] sm:$0xff] }
 0x4a3   : > { %3517 = vmatpush.msrb.mxu3 %v4236_v23  ;;  %v3297_v44 = vld [vmem:[#allocation6 + $0x4] sm:$0x1]  ;;  %v3336_v14 = vld [vmem:[#allocation6 + $0x5] sm:$0x1]  ;;  %v3375_v25 = vld [vmem:[#allocation6 + $0x6] sm:$0x1] }
 0x4a4   : > { %v3078_v36 = vadd.f32 %v6846_v34, %v3066_v19  ;;  %3439 = vmatpush.msrb.mxu1 %v4203_v10  ;;  %3479 = vmatpush.msrb.mxu2 %v4219_v59  ;;  %v4290_v28 = vld [vmem:[%s7360_s6 + $0x678] sm:$0xff]  ;;  %v3414_v27 = vld [vmem:[#allocation6 + $0x7] sm:$0x1]  ;;  %v4271_v63 = vld [vmem:[%s7360_s6 + $0x5e0] sm:$0xff] }
 0x4a5   : > { %3518 = vmatpush.msrb.mxu3 %v4235_v42  ;;  %3331 = vmatmul.f32.vlgmr.msra.gmra.mxu2 %v3297_v44  ;;  %v4306_v46 = vld [vmem:[%s7360_s6 + $0x6f8] sm:$0xff]  ;;  %v4273_v23 = vld [vmem:[%s7360_s6 + $0x5f0] sm:$0xff]  ;;  %v4287_v11 = vld [vmem:[%s7360_s6 + $0x660] sm:$0xff] }
 0x4a6   : > { %v3086_v39 = vmax.f32 %v3078_v36, 0.0  ;;  %3370 = vmatmul.f32.vlgmr.msra.gmra.mxu3 %v3336_v14  ;;  %3409 = vmatmul.f32.vlgmr.msrb.gmra.mxu0 %v3375_v25  ;;  %v4289_v44 = vld [vmem:[%s7360_s6 + $0x670] sm:$0xff]  ;;  %v4314_v25 = vld [vmem:[%s7360_s6 + $0x738] sm:$0xff]  ;;  %v4288_v36 = vld [vmem:[%s7360_s6 + $0x668] sm:$0xff] }
 0x4a7   : > { %v3106_v17 = vld [vmem:[#allocation5 + $0x28] ss:$2 sm:$0xf]  ;;  %v3122_v30 = vld [vmem:[#allocation5 + $0x29] ss:$2 sm:$0xf]  ;;  %3440 = vmatpush.msrb.mxu1 %v4202_v37  ;;  %3480 = vmatpush.msrb.mxu2 %v4218_v54  ;;  %v2983_v5 = vpop.f32.mrf.mxu2 }
 0x4a8   : > { %v3057_v43 = vpop.f32.mrf.mxu3  ;;  %v3132_v41 = vmax.f32 %v3106_v17, %v3122_v30  ;;  %3094 = vst [vmem:[#allocation5 + $0x30] sm:$0xff] %v3086_v39  ;;  %3519 = vmatpush.msrb.mxu3 %v4234_v40  ;;  %3707 = vmatpush.msrb.mxu0 %v4322_v29  ;;  %v2993_v6 = vadd.f32 %v2983_v5, %v2919_v15  ;;  %v4305_v14 = vld [vmem:[%s7360_s6 + $0x6f0] sm:$0xff]  ;;  %v4304_v40 = vld [vmem:[%s7360_s6 + $0x6e8] sm:$0xff]  ;;  %v4303_v39 = vld [vmem:[%s7360_s6 + $0x6e0] sm:$0xff] }
 0x4a9   : > { %3441 = vmatpush.msrb.mxu1 %v4201_v53  ;;  %3481 = vmatpush.msrb.mxu2 %v4217_v61  ;;  %v4313_v53 = vld [vmem:[%s7360_s6 + $0x730] sm:$0xff]  ;;  %v4312_v15 = vld [vmem:[%s7360_s6 + $0x728] sm:$0xff]  ;;  %v4270_v61 = vld [vmem:[%s7360_s6 + $0x5d8] sm:$0xff] }
 0x4aa   : > { %3520 = vmatpush.msrb.mxu3 %v4233_v16  ;;  %3708 = vmatpush.msrb.mxu0 %v4321_v55  ;;  %v3067_v48 = vadd.f32 %v3057_v43, %v2993_v6  ;;  %v3137_v62 = vmax.f32 %v3131_v13, %v3132_v41  ;;  %v4286_v16 = vld [vmem:[%s7360_s6 + $0x658] sm:$0xff]  ;;  %v4311_v17 = vld [vmem:[%s7360_s6 + $0x720] sm:$0xff]  ;;  %v4269_v30 = vld [vmem:[%s7360_s6 + $0x5d0] sm:$0xff] }
 0x4ab   : > { %3442 = vmatpush.msrb.mxu1 %v4200_v2  ;;  %3482 = vmatpush.msrb.mxu2 %v4216_v56  ;;  %v4302_v55 = vld [vmem:[%s7360_s6 + $0x6d8] sm:$0xff]  ;;  %v4285_v5 = vld [vmem:[%s7360_s6 + $0x650] sm:$0xff]  ;;  %v4268_v41 = vld [vmem:[%s7360_s6 + $0x5c8] sm:$0xff] }
 0x4ac   : > { %3521 = vmatpush.msrb.mxu3 %v4232_v3  ;;  %v3079_v45 = vadd.f32 %v6846_v34, %v3067_v48  ;;  %3709 = vmatpush.msrb.mxu0 %v4320_v9  ;;  %3141 = vst [vmem:[#allocation6 + $0x8] sm:$0xf] %v3137_v62  ;;  %v4318_v34 = vld [vmem:[%s7360_s6 + $0x758] sm:$0xff]  ;;  %v4301_v43 = vld [vmem:[%s7360_s6 + $0x6d0] sm:$0xff]  ;;  %v4284_v6 = vld [vmem:[%s7360_s6 + $0x648] sm:$0xff] }
 0x4ad   : > { %3443 = vmatpush.msrb.mxu1 %v4199_v21  ;;  %3483 = vmatpush.msrb.mxu2 %v4215_v8  ;;  %v4310_v13 = vld [vmem:[%s7360_s6 + $0x718] sm:$0xff]  ;;  %v4300_v2 = vld [vmem:[%s7360_s6 + $0x6c8] sm:$0xff]  ;;  %v4309_v56 = vld [vmem:[%s7360_s6 + $0x710] sm:$0xff] }
 0x4ae   : > { %v3087_v51 = vmax.f32 %v3079_v45, 0.0  ;;  %3522 = vmatpush.msrb.mxu3 %v4231_v33  ;;  %3710 = vmatpush.msrb.mxu0 %v4319_v60  ;;  %v4267_v3 = vld [vmem:[%s7360_s6 + $0x5c0] sm:$0xff]  ;;  %v4308_v21 = vld [vmem:[%s7360_s6 + $0x708] sm:$0xff]  ;;  %v4266_v8 = vld [vmem:[%s7360_s6 + $0x5b8] sm:$0xff] }
 0x4af   : > { %3444 = vmatpush.msrb.mxu1 %v4198_v1  ;;  %3484 = vmatpush.msrb.mxu2 %v4214_v57  ;;  %v3108_v32 = vld [vmem:[#allocation5 + $0x30] ss:$2 sm:$0xf]  ;;  %v3124_v7 = vld [vmem:[#allocation5 + $0x31] ss:$2 sm:$0xf] }
 0x4b0   : > { %3095 = vst [vmem:[#allocation5 + $0x38] sm:$0xff] %v3087_v51  ;;  %3523 = vmatpush.msrb.mxu3 %v4230_v26  ;;  %3711 = vmatpush.msrb.mxu0 %v4318_v34  ;;  %v3133_v54 = vmax.f32 %v3108_v32, %v3124_v7  ;;  %v4283_v9 = vld [vmem:[%s7360_s6 + $0x640] sm:$0xff]  ;;  %v4282_v62 = vld [vmem:[%s7360_s6 + $0x638] sm:$0xff]  ;;  %v4265_v45 = vld [vmem:[%s7360_s6 + $0x5b0] sm:$0xff] }
 0x4b1   : > { %3445 = vmatpush.msrb.mxu1 %v4197_v50  ;;  %3485 = vmatpush.msrb.mxu2 %v4213_v4  ;;  %v4299_v48 = vld [vmem:[%s7360_s6 + $0x6c0] sm:$0xff]  ;;  %v4298_v33 = vld [vmem:[%s7360_s6 + $0x6b8] sm:$0xff]  ;;  %v4281_v57 = vld [vmem:[%s7360_s6 + $0x630] sm:$0xff] }
 0x4b2   : > { %3524 = vmatpush.msrb.mxu3 %v4229_v47  ;;  %3712 = vmatpush.msrb.mxu0 %v4317_v22  ;;  %v4307_v60 = vld [vmem:[%s7360_s6 + $0x700] sm:$0xff]  ;;  %v4297_v26 = vld [vmem:[%s7360_s6 + $0x6b0] sm:$0xff]  ;;  %v4264_v34 = vld [vmem:[%s7360_s6 + $0x5a8] sm:$0xff] }
 0x4b3   : > { %3446 = vmatpush.msrb.mxu1 %v4196_v58  ;;  %3486 = vmatpush.msrb.mxu2 %v4212_v0  ;;  %v3454_v10 = vld [vmem:[#allocation6 + $0x8] sm:$0x1]  ;;  %v3493_v59 = vld [vmem:[#allocation6 + $0x9] sm:$0x1]  ;;  %v3532_v19 = vld [vmem:[#allocation6 + $0xa] sm:$0x1] }
 0x4b4   : > { %3525 = vmatpush.msrb.mxu3 %v4228_v38  ;;  %3713 = vmatpush.msrb.mxu0 %v4316_v18  ;;  %v4280_v51 = vld [vmem:[%s7360_s6 + $0x628] sm:$0xff]  ;;  %v4263_v4 = vld [vmem:[%s7360_s6 + $0x5a0] sm:$0xff]  ;;  %v4262_v58 = vld [vmem:[%s7360_s6 + $0x598] sm:$0xff] }
 0x4b5   : > { %3447 = vmatpush.msrb.mxu1 %v4195_v52  ;;  %3487 = vmatpush.msrb.mxu2 %v4211_v24  ;;  %v4296_v50 = vld [vmem:[%s7360_s6 + $0x6a8] sm:$0xff]  ;;  %v4279_v47 = vld [vmem:[%s7360_s6 + $0x620] sm:$0xff]  ;;  %v4278_v0 = vld [vmem:[%s7360_s6 + $0x618] sm:$0xff] }
 0x4b6   : > { %3526 = vmatpush.msrb.mxu3 %v4227_v35  ;;  %3448 = vmatmul.f32.vlgmr.msrb.gmra.mxu1 %v3414_v27  ;;  %v4295_v22 = vld [vmem:[%s7360_s6 + $0x6a0] sm:$0xff]  ;;  %v4294_v38 = vld [vmem:[%s7360_s6 + $0x698] sm:$0xff]  ;;  %v4261_v18 = vld [vmem:[%s7360_s6 + $0x590] sm:$0xff] }
 0x4b7   : > { %v3110_v42 = vld [vmem:[#allocation5 + $0x38] ss:$2 sm:$0xf]  ;;  %v3126_v37 = vld [vmem:[#allocation5 + $0x39] ss:$2 sm:$0xf]  ;;  %3589 = vmatpush.msra.mxu1 %v4274_v20  ;;  %3629 = vmatpush.msra.mxu2 %v4290_v28 }
 0x4b8   : > { %v3134_v12 = vmax.f32 %v3110_v42, %v3126_v37  ;;  %3668 = vmatpush.msra.mxu3 %v4306_v46  ;;  %3714 = vmatpush.msrb.mxu0 %v4315_v31  ;;  %v4277_v52 = vld [vmem:[%s7360_s6 + $0x610] sm:$0xff]  ;;  %v4260_v35 = vld [vmem:[%s7360_s6 + $0x588] sm:$0xff]  ;;  %v4259_v27 = vld [vmem:[%s7360_s6 + $0x580] sm:$0xff] }
 0x4b9   : > { %3488 = vmatmul.f32.vlgmr.msrb.gmra.mxu2 %v3454_v10  ;;  %3527 = vmatmul.f32.vlgmr.msrb.gmra.mxu3 %v3493_v59  ;;  %v4293_v24 = vld [vmem:[%s7360_s6 + $0x690] sm:$0xff]  ;;  %v4276_v20 = vld [vmem:[%s7360_s6 + $0x608] sm:$0xff]  ;;  %v4275_v46 = vld [vmem:[%s7360_s6 + $0x600] sm:$0xff] }
 0x4ba   : > { %3566 = vmatmul.f32.vlgmr.msra.gmra.mxu0 %v3532_v19  ;;  %3590 = vmatpush.msra.mxu1 %v4273_v23  ;;  %v3138_v29 = vmax.f32 %v3133_v54, %v3134_v12  ;;  %v4292_v28 = vld [vmem:[%s7360_s6 + $0x688] sm:$0xff]  ;;  %v4291_v31 = vld [vmem:[%s7360_s6 + $0x680] sm:$0xff]  ;;  %v3571_v32 = vld [vmem:[#allocation6 + $0xb] sm:$0x1] }
 0x4bb   : > { %3630 = vmatpush.msra.mxu2 %v4289_v44  ;;  %3669 = vmatpush.msra.mxu3 %v4305_v14  ;;  %v4338_v7 = vld [vmem:[%s7360_s6 + $0x7f8] sm:$0xff]  ;;  %v4337_v59 = vld [vmem:[%s7360_s6 + $0x7f0] sm:$0xff]  ;;  %v4336_v19 = vld [vmem:[%s7360_s6 + $0x7e8] sm:$0xff] }
 0x4bc   : > { %3715 = vmatpush.msrb.mxu0 %v4314_v25  ;;  %3591 = vmatpush.msra.mxu1 %v4272_v49  ;;  %3142 = vst [vmem:[#allocation6 + $0xc] sm:$0xf] %v3138_v29  ;;  %v4335_v42 = vld [vmem:[%s7360_s6 + $0x7e0] sm:$0xff]  ;;  %v4334_v37 = vld [vmem:[%s7360_s6 + $0x7d8] sm:$0xff]  ;;  %v4333_v54 = vld [vmem:[%s7360_s6 + $0x7d0] sm:$0xff] }
 0x4bd   : > { %3631 = vmatpush.msra.mxu2 %v4288_v36  ;;  %3670 = vmatpush.msra.mxu3 %v4304_v40  ;;  %v4332_v12 = vld [vmem:[%s7360_s6 + $0x7c8] sm:$0xff]  ;;  %v4331_v44 = vld [vmem:[%s7360_s6 + $0x7c0] sm:$0xff]  ;;  %v4330_v14 = vld [vmem:[%s7360_s6 + $0x7b8] sm:$0xff] }
 0x4be   : > { %3716 = vmatpush.msrb.mxu0 %v4313_v53  ;;  %3592 = vmatpush.msra.mxu1 %v4271_v63  ;;  %v4329_v25 = vld [vmem:[%s7360_s6 + $0x7b0] sm:$0xff]  ;;  %v4328_v49 = vld [vmem:[%s7360_s6 + $0x7a8] sm:$0xff]  ;;  %v4327_v36 = vld [vmem:[%s7360_s6 + $0x7a0] sm:$0xff] }
 0x4bf   : > { %3632 = vmatpush.msra.mxu2 %v4287_v11  ;;  %3671 = vmatpush.msra.mxu3 %v4303_v39  ;;  %v4326_v40 = vld [vmem:[%s7360_s6 + $0x798] sm:$0xff]  ;;  %v4325_v29 = vld [vmem:[%s7360_s6 + $0x790] sm:$0xff]  ;;  %v4324_v53 = vld [vmem:[%s7360_s6 + $0x788] sm:$0xff] }
 0x4c0   : > { %3717 = vmatpush.msrb.mxu0 %v4312_v15  ;;  %3593 = vmatpush.msra.mxu1 %v4270_v61  ;;  %v4323_v63 = vld [vmem:[%s7360_s6 + $0x780] sm:$0xff] }
 0x4c1   : > { %3633 = vmatpush.msra.mxu2 %v4286_v16  ;;  %3672 = vmatpush.msra.mxu3 %v4302_v55 }
 0x4c2   : > { %3718 = vmatpush.msrb.mxu0 %v4311_v17  ;;  %3594 = vmatpush.msra.mxu1 %v4269_v30 }
 0x4c3   : > { %3634 = vmatpush.msra.mxu2 %v4285_v5  ;;  %3673 = vmatpush.msra.mxu3 %v4301_v43  ;;  %v3689_v1 = vld [vmem:[#allocation6 + $0xe] sm:$0x1]  ;;  %v3611_v23 = vld [vmem:[#allocation6 + $0xc] sm:$0x1]  ;;  %v3650_v10 = vld [vmem:[#allocation6 + $0xd] sm:$0x1] }
 0x4c4   : > { %3719 = vmatpush.msrb.mxu0 %v4310_v13  ;;  %3595 = vmatpush.msra.mxu1 %v4268_v41  ;;  %v3728_v11 = vld [vmem:[#allocation6 + $0xf] sm:$0x1] }
 0x4c5   : > { %3635 = vmatpush.msra.mxu2 %v4284_v6  ;;  %3674 = vmatpush.msra.mxu3 %v4300_v2 }
 0x4c6   : > { %3720 = vmatpush.msrb.mxu0 %v4309_v56  ;;  %3596 = vmatpush.msra.mxu1 %v4267_v3 }
 0x4c7   : > { %3636 = vmatpush.msra.mxu2 %v4283_v9  ;;  %3675 = vmatpush.msra.mxu3 %v4299_v48 }
 0x4c8   : > { %3721 = vmatpush.msrb.mxu0 %v4308_v21  ;;  %3597 = vmatpush.msra.mxu1 %v4266_v8 }
 0x4c9   : > { %3637 = vmatpush.msra.mxu2 %v4282_v62  ;;  %3676 = vmatpush.msra.mxu3 %v4298_v33 }
 0x4ca   : > { %3722 = vmatpush.msrb.mxu0 %v4307_v60  ;;  %3598 = vmatpush.msra.mxu1 %v4265_v45 }
 0x4cb   : > { %3723 = vmatmul.f32.vlgmr.msrb.gmra.mxu0 %v3689_v1  ;;  %3638 = vmatpush.msra.mxu2 %v4281_v57 }
 0x4cc   : > { %3677 = vmatpush.msra.mxu3 %v4297_v26  ;;  %3599 = vmatpush.msra.mxu1 %v4264_v34 }
 0x4cd   : > { %3639 = vmatpush.msra.mxu2 %v4280_v51 }
 0x4ce   : > { %3678 = vmatpush.msra.mxu3 %v4296_v50  ;;  %3600 = vmatpush.msra.mxu1 %v4263_v4 }
 0x4cf   : > { %3640 = vmatpush.msra.mxu2 %v4279_v47  ;;  %v3767_v47 = vld [vmem:[%s7361_s7] sm:$0x1] }
 0x4d0   : > { %3679 = vmatpush.msra.mxu3 %v4295_v22  ;;  %3601 = vmatpush.msra.mxu1 %v4262_v58 }
 0x4d1   : > { %3641 = vmatpush.msra.mxu2 %v4278_v0 }
 0x4d2   : > { %3680 = vmatpush.msra.mxu3 %v4294_v38  ;;  %3602 = vmatpush.msra.mxu1 %v4261_v18 }
 0x4d3   : > { %3642 = vmatpush.msra.mxu2 %v4277_v52 }
 0x4d4   : > { %3681 = vmatpush.msra.mxu3 %v4293_v24  ;;  %3603 = vmatpush.msra.mxu1 %v4260_v35 }
 0x4d5   : > { %3643 = vmatpush.msra.mxu2 %v4276_v20 }
 0x4d6   : > { %3682 = vmatpush.msra.mxu3 %v4292_v28  ;;  %3604 = vmatpush.msra.mxu1 %v4259_v27 }
 0x4d7   : > { %3644 = vmatpush.msra.mxu2 %v4275_v46  ;;  %3605 = vmatmul.f32.vlgmr.msra.gmra.mxu1 %v3571_v32 }
 0x4d8   : > { %3683 = vmatpush.msra.mxu3 %v4291_v31  ;;  %3645 = vmatmul.f32.vlgmr.msra.gmra.mxu2 %v3611_v23 }
 0x4d9   : > { %3684 = vmatmul.f32.vlgmr.msra.gmra.mxu3 %v3650_v10  ;;  %3746 = vmatpush.msrb.mxu1 %v4338_v7 }
 0x4db   : > { %3747 = vmatpush.msrb.mxu1 %v4337_v59 }
 0x4dd   : > { %3748 = vmatpush.msrb.mxu1 %v4336_v19 }
 0x4df   : > { %3749 = vmatpush.msrb.mxu1 %v4335_v42 }
 0x4e1   : > { %3750 = vmatpush.msrb.mxu1 %v4334_v37 }
 0x4e3   : > { %3751 = vmatpush.msrb.mxu1 %v4333_v54 }
 0x4e5   : > { %3752 = vmatpush.msrb.mxu1 %v4332_v12 }
 0x4e7   : > { %3753 = vmatpush.msrb.mxu1 %v4331_v44 }
 0x4e9   : > { %3754 = vmatpush.msrb.mxu1 %v4330_v14 }
 0x4eb   : > { %3755 = vmatpush.msrb.mxu1 %v4329_v25 }
 0x4ed   : > { %3756 = vmatpush.msrb.mxu1 %v4328_v49 }
 0x4ef   : > { %3757 = vmatpush.msrb.mxu1 %v4327_v36 }
 0x4f1   : > { %3758 = vmatpush.msrb.mxu1 %v4326_v40 }
 0x4f3   : > { %3759 = vmatpush.msrb.mxu1 %v4325_v29 }
 0x4f5   : > { %3760 = vmatpush.msrb.mxu1 %v4324_v53 }
 0x4f7   : > { %3761 = vmatpush.msrb.mxu1 %v4323_v63 }
 0x4f8   : > { %3762 = vmatmul.f32.vlgmr.msrb.gmra.mxu1 %v3728_v11 }
 0x511   : > { %v3195_v39 = vpop.f32.mrf.mxu1 }
 0x517   : > { %v3215_v15 = vpop.f32.mrf.mxu2 }
 0x518   : > { %v3216_v61 = vadd.f32 %v3215_v15, %v3195_v39  ;;  %v3253_v16 = vpop.f32.mrf.mxu3 }
 0x51a   : > { %v3256_v55 = vadd.f32 %v3253_v16, %v3216_v61  ;;  %v3292_v17 = vpop.f32.mrf.mxu1 }
 0x51c   : > { %v3295_v5 = vadd.f32 %v3292_v17, %v3256_v55 }
 0x523   : > { %v3410_v6 = vpop.f32.mrf.mxu0 }
 0x528   : > { %v3332_v30 = vpop.f32.mrf.mxu2 }
 0x529   : > { %v3335_v43 = vadd.f32 %v3332_v30, %v3295_v5  ;;  %v3371_v13 = vpop.f32.mrf.mxu3 }
 0x52b   : > { %v3374_v41 = vadd.f32 %v3371_v13, %v3335_v43 }
 0x52d   : > { %v3413_v56 = vadd.f32 %v3410_v6, %v3374_v41 }
 0x533   : > { %v3449_v2 = vpop.f32.mrf.mxu1 }
 0x534   : > { %v3452_v9 = vadd.f32 %v3449_v2, %v3413_v56 }
 0x537   : > { %v3567_v62 = vpop.f32.mrf.mxu0 }
 0x53c   : > { %v3489_v3 = vpop.f32.mrf.mxu2  ;;  %v3528_v21 = vpop.f32.mrf.mxu3 }
 0x53d   : > { %v3492_v48 = vadd.f32 %v3489_v3, %v3452_v9 }
 0x53f   : > { %v3531_v8 = vadd.f32 %v3528_v21, %v3492_v48 }
 0x541   : > { %v3570_v60 = vadd.f32 %v3567_v62, %v3531_v8 }
 0x548   : > { %v3724_v51 = vpop.f32.mrf.mxu0 }
 0x554   : > { %v3606_v33 = vpop.f32.mrf.mxu1 }
 0x555   : > { %v3609_v1 = vadd.f32 %v3606_v33, %v3570_v60 }
 0x55b   : > { %v3646_v45 = vpop.f32.mrf.mxu2 }
 0x55c   : > { %v3649_v57 = vadd.f32 %v3646_v45, %v3609_v1  ;;  %v3685_v26 = vpop.f32.mrf.mxu3 }
 0x55e   : > { %v3688_v34 = vadd.f32 %v3685_v26, %v3649_v57 }
 0x560   : > { %v3727_v50 = vadd.f32 %v3724_v51, %v3688_v34 }
 0x575   : > { %v3763_v4 = vpop.f32.mrf.mxu1 }
 0x576   : > { %v3766_v22 = vadd.f32 %v3763_v4, %v3727_v50 }
 0x578   : > { %v3768_v58 = vadd.f32 %v3767_v47, %v3766_v22 }
 0x57a   : > { %3769 = vst [vmem:[%s297_s23] sm:$0x1] %v3768_v58 }
 0x57b   : > { %4419 = shalt.err (!%p4416_p3)
}
 0x57c   : > { %4342 = dma.vmem_to_hbm [thread:$0]  (%p4540_p5), %s3782_s24, 16, %s3784_s25, %s3771_s18  }
 0x57d PF: > { %p4348_p4 = scmp.ge.s32.totalorder %s4454_s30, 2  ;;  %s3795_s13 = sand.u32 1, %s4442_s27  }
 0x57e   : > { %s3796_s19 = scalar_lea.sflag [#allocation8], %s3795_s13 }
 0x57f   : > { %p4345_p7 = pnand %p4348_p4, %p4544_p6 }
 0x581   : > { %p4346_p8 = pneg %p4345_p7 }
 0x583   : > { %4437 = dma.done.wait (%p4346_p8), %s3796_s19, 16  }
 0x584   : > { %4439 = vsyncadd (%p4346_p8), %s3796_s19, 4294967280  ;;  %p18_p9 = scmp.ge.s32.totalorder %s4527_s11, 4   ;;  %s7411_s27 = smov %s4446_s28 }
 0x585   : > { %s7412_s28 = smov %s4450_s29  ;;  %s7413_s29 = smov %s4538_s14 }
 0x586   : > { %s7414_s30 = smov %s4527_s11  ;;  %20 = sbr.rel (!%p18_p9) target bundleno = 3 (0x3), region = 171 }
 0x58b   :  { %3801 = vsyncpa [#allocation8], 1 }
 0x58c   :  { %3803 = vsyncpa [#allocation8 + $0x1], 1 }

</bundles_post_ra>
